<compile_context>
chip_gen: v6e
topology: v6e:2x2x1
jax: 0.10.0
libtpu: 0.0.40
codegen_flags: <defaults>
</compile_context>

<pallas_src>
import jax
import jax.numpy as jnp
from jax import lax
from jax.experimental import pallas as pl
from jax.experimental.pallas import tpu as pltpu


def _round_up(x, m):
    return ((x + m - 1) // m) * m


def _log_sigmoid(x):
    # numerically stable log(sigmoid(x)) = min(x, 0) - log1p(exp(-|x|))
    return jnp.minimum(x, 0.0) - jnp.log1p(jnp.exp(-jnp.abs(x)))


def _pair_losses(tgt_f32, ctx_slot, num_neg):
    """Per-pair skip-gram NS loss.

    tgt_f32 : (BT, D) f32 target rows.
    ctx_slot: callable c -> (BT, D) f32 context rows (c=0 positive, 1..K negatives).

    Accumulates over the K+1 slots so only one (BT, D) product is live at a
    time (keeps vregs low at large BT, per perf review).
    """
    acc = _log_sigmoid(jnp.sum(tgt_f32 * ctx_slot(0), axis=-1, keepdims=True))
    for k in range(num_neg):
        s = jnp.sum(tgt_f32 * ctx_slot(1 + k), axis=-1, keepdims=True)
        acc = acc + _log_sigmoid(-s)
    return -acc                                            # (BT, 1)


def _resident_tables_call(tgt_tbl, ctx_tbl, tidx, cidx, nidx_flat,
                          *, block_pairs, num_neg, vmem_limit_bytes):
    """Path A: both tables VMEM-resident, gather fused in-kernel."""
    V, D = tgt_tbl.shape
    padded_pairs = int(tidx.shape[0])
    bt = block_pairs
    kn = num_neg

    def kernel(tidx_ref, cidx_ref, nidx_ref,      # scalar prefetch (SMEM)
               tgt_tbl_ref, ctx_tbl_ref,          # (V, D) VMEM-resident tables
               out_ref,                           # (bt, 128) output block
               tgt_buf, cn_buf):                  # f32 VMEM scratch
        base = pl.program_id(0) * bt

        def gather_pair(j, carry):
            p = base + j
            tgt_buf[pl.ds(j, 1), :] = (
                tgt_tbl_ref[pl.ds(tidx_ref[p], 1), :].astype(jnp.float32))
            cn_buf[0, pl.ds(j, 1), :] = (
                ctx_tbl_ref[pl.ds(cidx_ref[p], 1), :].astype(jnp.float32))
            for k in range(kn):
                cn_buf[1 + k, pl.ds(j, 1), :] = (
                    ctx_tbl_ref[pl.ds(nidx_ref[p * kn + k], 1), :]
                    .astype(jnp.float32))
            return carry

        lax.fori_loop(0, bt, gather_pair, 0)

        loss = _pair_losses(tgt_buf[...], lambda c: cn_buf[c], kn)   # (bt, 1)
        out_ref[...] = jnp.broadcast_to(loss, (bt, 128)).astype(out_ref.dtype)

    grid_spec = pltpu.PrefetchScalarGridSpec(
        num_scalar_prefetch=3,
        grid=(padded_pairs // bt,),
        in_specs=[
            # Full-array VMEM blocks; constant index_map -> fetched once,
            # resident across the whole grid (no per-row DMAs).
            pl.BlockSpec((V, D), lambda b, *_: (0, 0)),
            pl.BlockSpec((V, D), lambda b, *_: (0, 0)),
        ],
        out_specs=pl.BlockSpec((bt, 128), lambda b, *_: (b, 0)),
        scratch_shapes=[
            pltpu.VMEM((bt, D), jnp.float32),            # gathered target rows
            pltpu.VMEM((kn + 1, bt, D), jnp.float32),    # pos + neg context rows
        ],
    )
    return pl.pallas_call(
        kernel,
        out_shape=jax.ShapeDtypeStruct((padded_pairs, 128), jnp.float32),
        grid_spec=grid_spec,
        compiler_params=pltpu.CompilerParams(
            dimension_semantics=("parallel",),           # v7x megacore sharding
            vmem_limit_bytes=vmem_limit_bytes),
    )(tidx, cidx, nidx_flat, tgt_tbl, ctx_tbl)


def _pregathered_call(tgt_rows, cn_rows, *, block_pairs, num_neg):
    """Path B (big vocab): rows gathered by XLA, streamed as pipelined blocks."""
    padded_pairs, D = tgt_rows.shape
    bt = block_pairs
    kn = num_neg

    def kernel(tgt_ref, cn_ref, out_ref):
        tgt = tgt_ref[...].astype(jnp.float32)                         # (bt, D)
        loss = _pair_losses(tgt, lambda c: cn_ref[c].astype(jnp.float32), kn)
        out_ref[...] = jnp.broadcast_to(loss, (bt, 128)).astype(out_ref.dtype)

    grid_spec = pltpu.PrefetchScalarGridSpec(
        num_scalar_prefetch=0,
        grid=(padded_pairs // bt,),
        in_specs=[
            pl.BlockSpec((bt, D), lambda b: (b, 0)),
            pl.BlockSpec((kn + 1, bt, D), lambda b: (0, b, 0)),
        ],
        out_specs=pl.BlockSpec((bt, 128), lambda b: (b, 0)),
    )
    return pl.pallas_call(
        kernel,
        out_shape=jax.ShapeDtypeStruct((padded_pairs, 128), jnp.float32),
        grid_spec=grid_spec,
        compiler_params=pltpu.CompilerParams(
            dimension_semantics=("parallel",)),
    )(tgt_rows, cn_rows)


def skip_gram_loss_batched(emb_target_tbl, emb_context_tbl,
                           target_idx, context_idx, neg_idx,
                           *, block_pairs=64, vmem_budget_bytes=40 * 1024 * 1024):
    """Per-pair skip-gram negative-sampling loss for a batch of B triples.

    emb_target_tbl : (V, D)  target embedding table (f32 or bf16)
    emb_context_tbl: (V, D)  context embedding table
    target_idx     : (B,)    int
    context_idx    : (B,)    int
    neg_idx        : (B, K)  int
    returns        : (B,)    f32 per-pair loss (== original forward per pair)
    """
    V, D = emb_target_tbl.shape
    B = int(target_idx.shape[0])
    K = int(neg_idx.shape[1])

    bt = max(8, min(_round_up(block_pairs, 8), _round_up(B, 8)))
    padded = _round_up(B, bt)

    tidx = target_idx.astype(jnp.int32)
    cidx = context_idx.astype(jnp.int32)
    nidx = neg_idx.astype(jnp.int32)
    if padded != B:                         # pad batch with dummy (index 0) pairs
        pad = padded - B
        tidx = jnp.pad(tidx, (0, pad))
        cidx = jnp.pad(cidx, (0, pad))
        nidx = jnp.pad(nidx, ((0, pad), (0, 0)))

    itemsize = jnp.dtype(emb_target_tbl.dtype).itemsize
    # 2 tables (double-buffered input blocks) + f32 gather scratch + out blocks.
    resident_bytes = (2 * 2 * V * D * itemsize
                      + 4 * (bt * D + (K + 1) * bt * D)
                      + 2 * bt * 128 * 4)

    if resident_bytes <= vmem_budget_bytes:
        # Cap at 64 MiB so the same config fits v7x; v5e/v6e can go higher.
        vmem_limit = int(min(64 * 1024 * 1024,
                             max(32 * 1024 * 1024, 2 * resident_bytes)))
        out = _resident_tables_call(
            emb_target_tbl, emb_context_tbl, tidx, cidx, nidx.reshape(-1),
            block_pairs=bt, num_neg=K, vmem_limit_bytes=vmem_limit)
    else:
        # Tables too big for VMEM: one large pipelined block DMA per step
        # instead of hundreds of tiny row gathers.
        tgt_rows = emb_target_tbl[tidx]                                # (Bp, D)
        pos_rows = emb_context_tbl[cidx][None]                         # (1, Bp, D)
        neg_rows = jnp.moveaxis(emb_context_tbl[nidx], 1, 0)           # (K, Bp, D)
        cn_rows = jnp.concatenate([pos_rows, neg_rows], axis=0)        # (K+1, Bp, D)
        out = _pregathered_call(tgt_rows, cn_rows, block_pairs=bt, num_neg=K)

    return out[:B, 0]


def skip_gram_forward(emb_target_tbl, emb_context_tbl, word_to_index,
                      target_word, context_word, negative_context_words):
    """Mirrors Skip_Gram_Model.forward for a single (target, context, negatives)."""
    t = jnp.array([word_to_index[target_word]], dtype=jnp.int32)
    c = jnp.array([word_to_index[context_word]], dtype=jnp.int32)
    n = jnp.array([[word_to_index[w] for w in negative_context_words]],
                  dtype=jnp.int32)
    return skip_gram_loss_batched(emb_target_tbl, emb_context_tbl, t, c, n)[0]


# TODO(synk): add a fused Pallas backward (jax.custom_vjp) reusing the same
# gathered (K+1, D) rows for training; only the forward pass is implemented.


def reference_losses(tgt_tbl, ctx_tbl, tidx, cidx, nidx):
    et = tgt_tbl[tidx]                                    # (B, D)
    ec = ctx_tbl[cidx]                                    # (B, D)
    en = ctx_tbl[nidx]                                    # (B, K, D)
    pos = jnp.sum(et * ec, axis=-1)                       # (B,)
    neg = jnp.sum(et[:, None, :] * en, axis=-1)           # (B, K)
    return -(jax.nn.log_sigmoid(pos)
             + jnp.sum(jax.nn.log_sigmoid(-neg), axis=-1))


if __name__ == "__main__":
    vocabulary_size = 512
    embedding_size = 64
    num_negatives = 8
    batch = 256                                 # -> BT=64, grid of 4 steps

    key = jax.random.PRNGKey(0)
    k1, k2, k3, k4, k5 = jax.random.split(key, 5)
    # nn.Embedding default init ~ N(0, 1)
    emb_target_tbl = jax.random.normal(
        k1, (vocabulary_size, embedding_size), jnp.float32)
    emb_context_tbl = jax.random.normal(
        k2, (vocabulary_size, embedding_size), jnp.float32)

    target_idx = jax.random.randint(k3, (batch,), 0, vocabulary_size, dtype=jnp.int32)
    context_idx = jax.random.randint(k4, (batch,), 0, vocabulary_size, dtype=jnp.int32)
    neg_idx = jax.random.randint(k5, (batch, num_negatives), 0, vocabulary_size,
                                 dtype=jnp.int32)

    ref = reference_losses(emb_target_tbl, emb_context_tbl,
                           target_idx, context_idx, neg_idx)

    # Path A: VMEM-resident tables, in-kernel fused gather (default).
    losses = skip_gram_loss_batched(emb_target_tbl, emb_context_tbl,
                                    target_idx, context_idx, neg_idx)
    losses = jax.block_until_ready(losses)
    assert jnp.allclose(losses, ref, atol=1e-4, rtol=1e-4), (losses, ref)

    # Path B: big-vocab fallback (XLA gather + pipelined blocks), forced by a
    # zero VMEM budget so both code paths are exercised.
    losses2 = skip_gram_loss_batched(emb_target_tbl, emb_context_tbl,
                                     target_idx, context_idx, neg_idx,
                                     vmem_budget_bytes=0)
    losses2 = jax.block_until_ready(losses2)
    assert jnp.allclose(losses2, ref, atol=1e-4, rtol=1e-4), (losses2, ref)

    # Single-pair path == original Skip_Gram_Model.forward semantics.
    word_to_index = {f"w{i}": i for i in range(vocabulary_size)}
    neg_words = ["w5", "w9", "w21", "w30", "w42", "w7", "w11", "w63"]
    loss1 = skip_gram_forward(emb_target_tbl, emb_context_tbl, word_to_index,
                              "w3", "w17", neg_words)
    loss1 = jax.block_until_ready(loss1)
    ref1 = reference_losses(
        emb_target_tbl, emb_context_tbl,
        jnp.array([3], jnp.int32), jnp.array([17], jnp.int32),
        jnp.array([[word_to_index[w] for w in neg_words]], jnp.int32))[0]
    assert abs(float(loss1) - float(ref1)) < 1e-4, (float(loss1), float(ref1))

    print("KERNEL_OK")
</pallas_src>

<mosaic_0001>
module attributes {stable_mosaic.version = 11 : i64} {
  func.func @kernel(%arg0: i32, %arg1: memref<256xi32, #tpu.memory_space<smem>>, %arg2: memref<256xi32, #tpu.memory_space<smem>>, %arg3: memref<2048xi32, #tpu.memory_space<smem>>, %arg4: memref<512x64xf32, #tpu.memory_space<vmem>>, %arg5: memref<512x64xf32, #tpu.memory_space<vmem>>, %arg6: memref<64x128xf32, #tpu.memory_space<vmem>>, %arg7: memref<64x64xf32, #tpu.memory_space<vmem>>, %arg8: memref<9x64x64xf32, #tpu.memory_space<vmem>>) attributes {dimension_semantics = [#tpu.dimension_semantics<parallel>], iteration_bounds = array<i64: 4>, scalar_prefetch = 3 : i64, scratch_operands = 2 : i64, tpu.core_type = #tpu.core_type<tc>, window_params = [{pipeline_mode = #tpu.pipeline_mode<synchronous>, transform_indices = @transform_0, window_bounds = array<i64: 512, 64>}, {pipeline_mode = #tpu.pipeline_mode<synchronous>, transform_indices = @transform_1, window_bounds = array<i64: 512, 64>}, {transform_indices = @transform_2, window_bounds = array<i64: 64, 128>}]} {
    %c64_i32 = arith.constant 64 : i32
    %0 = arith.muli %arg0, %c64_i32 : i32
    %c0_i32 = arith.constant 0 : i32
    %c64_i32_0 = arith.constant 64 : i32
    %1 = arith.addi %c0_i32, %c64_i32_0 : i32
    %c1_i32 = arith.constant 1 : i32
    scf.for %arg9 = %c0_i32 to %1 step %c1_i32  : i32 {
      %149 = arith.addi %0, %arg9 : i32
      %150 = arith.index_cast %149 : i32 to index
      %151 = memref.load %arg1[%150] : memref<256xi32, #tpu.memory_space<smem>>
      %152 = arith.index_cast %151 : i32 to index
      %c0_59 = arith.constant 0 : index
      %153 = vector.load %arg4[%152, %c0_59] : memref<512x64xf32, #tpu.memory_space<vmem>>, vector<1x64xf32>
      %154 = arith.index_cast %arg9 : i32 to index
      %c0_60 = arith.constant 0 : index
      %155 = vector.load %arg7[%154, %c0_60] : memref<64x64xf32, #tpu.memory_space<vmem>>, vector<1x64xf32>
      tpu.vector_store %arg7[%154, %c0_60], %153 {strides = array<i32>} : memref<64x64xf32, #tpu.memory_space<vmem>>, vector<1x64xf32>,
      %156 = arith.index_cast %149 : i32 to index
      %157 = memref.load %arg2[%156] : memref<256xi32, #tpu.memory_space<smem>>
      %158 = arith.index_cast %157 : i32 to index
      %c0_61 = arith.constant 0 : index
      %159 = vector.load %arg5[%158, %c0_61] : memref<512x64xf32, #tpu.memory_space<vmem>>, vector<1x64xf32>
      %c0_62 = arith.constant 0 : index
      %160 = arith.index_cast %arg9 : i32 to index
      %c0_63 = arith.constant 0 : index
      %161 = vector.load %arg8[%c0_62, %160, %c0_63] : memref<9x64x64xf32, #tpu.memory_space<vmem>>, vector<1x1x64xf32>
      %162 = vector.shape_cast %161 : vector<1x1x64xf32> to vector<1x64xf32>
      %163 = vector.shape_cast %159 : vector<1x64xf32> to vector<1x1x64xf32>
      tpu.vector_store %arg8[%c0_62, %160, %c0_63], %163 {strides = array<i32>} : memref<9x64x64xf32, #tpu.memory_space<vmem>>, vector<1x1x64xf32>,
      %c8_i32 = arith.constant 8 : i32
      %164 = arith.muli %149, %c8_i32 : i32
      %c0_i32_64 = arith.constant 0 : i32
      %165 = arith.addi %164, %c0_i32_64 : i32
      %166 = arith.index_cast %165 : i32 to index
      %167 = memref.load %arg3[%166] : memref<2048xi32, #tpu.memory_space<smem>>
      %168 = arith.index_cast %167 : i32 to index
      %c0_65 = arith.constant 0 : index
      %169 = vector.load %arg5[%168, %c0_65] : memref<512x64xf32, #tpu.memory_space<vmem>>, vector<1x64xf32>
      %c1_66 = arith.constant 1 : index
      %170 = arith.index_cast %arg9 : i32 to index
      %c0_67 = arith.constant 0 : index
      %171 = vector.load %arg8[%c1_66, %170, %c0_67] : memref<9x64x64xf32, #tpu.memory_space<vmem>>, vector<1x1x64xf32>
      %172 = vector.shape_cast %171 : vector<1x1x64xf32> to vector<1x64xf32>
      %173 = vector.shape_cast %169 : vector<1x64xf32> to vector<1x1x64xf32>
      tpu.vector_store %arg8[%c1_66, %170, %c0_67], %173 {strides = array<i32>} : memref<9x64x64xf32, #tpu.memory_space<vmem>>, vector<1x1x64xf32>,
      %c8_i32_68 = arith.constant 8 : i32
      %174 = arith.muli %149, %c8_i32_68 : i32
      %c1_i32_69 = arith.constant 1 : i32
      %175 = arith.addi %174, %c1_i32_69 : i32
      %176 = arith.index_cast %175 : i32 to index
      %177 = memref.load %arg3[%176] : memref<2048xi32, #tpu.memory_space<smem>>
      %178 = arith.index_cast %177 : i32 to index
      %c0_70 = arith.constant 0 : index
      %179 = vector.load %arg5[%178, %c0_70] : memref<512x64xf32, #tpu.memory_space<vmem>>, vector<1x64xf32>
      %c2_71 = arith.constant 2 : index
      %180 = arith.index_cast %arg9 : i32 to index
      %c0_72 = arith.constant 0 : index
      %181 = vector.load %arg8[%c2_71, %180, %c0_72] : memref<9x64x64xf32, #tpu.memory_space<vmem>>, vector<1x1x64xf32>
      %182 = vector.shape_cast %181 : vector<1x1x64xf32> to vector<1x64xf32>
      %183 = vector.shape_cast %179 : vector<1x64xf32> to vector<1x1x64xf32>
      tpu.vector_store %arg8[%c2_71, %180, %c0_72], %183 {strides = array<i32>} : memref<9x64x64xf32, #tpu.memory_space<vmem>>, vector<1x1x64xf32>,
      %c8_i32_73 = arith.constant 8 : i32
      %184 = arith.muli %149, %c8_i32_73 : i32
      %c2_i32 = arith.constant 2 : i32
      %185 = arith.addi %184, %c2_i32 : i32
      %186 = arith.index_cast %185 : i32 to index
      %187 = memref.load %arg3[%186] : memref<2048xi32, #tpu.memory_space<smem>>
      %188 = arith.index_cast %187 : i32 to index
      %c0_74 = arith.constant 0 : index
      %189 = vector.load %arg5[%188, %c0_74] : memref<512x64xf32, #tpu.memory_space<vmem>>, vector<1x64xf32>
      %c3_75 = arith.constant 3 : index
      %190 = arith.index_cast %arg9 : i32 to index
      %c0_76 = arith.constant 0 : index
      %191 = vector.load %arg8[%c3_75, %190, %c0_76] : memref<9x64x64xf32, #tpu.memory_space<vmem>>, vector<1x1x64xf32>
      %192 = vector.shape_cast %191 : vector<1x1x64xf32> to vector<1x64xf32>
      %193 = vector.shape_cast %189 : vector<1x64xf32> to vector<1x1x64xf32>
      tpu.vector_store %arg8[%c3_75, %190, %c0_76], %193 {strides = array<i32>} : memref<9x64x64xf32, #tpu.memory_space<vmem>>, vector<1x1x64xf32>,
      %c8_i32_77 = arith.constant 8 : i32
      %194 = arith.muli %149, %c8_i32_77 : i32
      %c3_i32 = arith.constant 3 : i32
      %195 = arith.addi %194, %c3_i32 : i32
      %196 = arith.index_cast %195 : i32 to index
      %197 = memref.load %arg3[%196] : memref<2048xi32, #tpu.memory_space<smem>>
      %198 = arith.index_cast %197 : i32 to index
      %c0_78 = arith.constant 0 : index
      %199 = vector.load %arg5[%198, %c0_78] : memref<512x64xf32, #tpu.memory_space<vmem>>, vector<1x64xf32>
      %c4_79 = arith.constant 4 : index
      %200 = arith.index_cast %arg9 : i32 to index
      %c0_80 = arith.constant 0 : index
      %201 = vector.load %arg8[%c4_79, %200, %c0_80] : memref<9x64x64xf32, #tpu.memory_space<vmem>>, vector<1x1x64xf32>
      %202 = vector.shape_cast %201 : vector<1x1x64xf32> to vector<1x64xf32>
      %203 = vector.shape_cast %199 : vector<1x64xf32> to vector<1x1x64xf32>
      tpu.vector_store %arg8[%c4_79, %200, %c0_80], %203 {strides = array<i32>} : memref<9x64x64xf32, #tpu.memory_space<vmem>>, vector<1x1x64xf32>,
      %c8_i32_81 = arith.constant 8 : i32
      %204 = arith.muli %149, %c8_i32_81 : i32
      %c4_i32 = arith.constant 4 : i32
      %205 = arith.addi %204, %c4_i32 : i32
      %206 = arith.index_cast %205 : i32 to index
      %207 = memref.load %arg3[%206] : memref<2048xi32, #tpu.memory_space<smem>>
      %208 = arith.index_cast %207 : i32 to index
      %c0_82 = arith.constant 0 : index
      %209 = vector.load %arg5[%208, %c0_82] : memref<512x64xf32, #tpu.memory_space<vmem>>, vector<1x64xf32>
      %c5_83 = arith.constant 5 : index
      %210 = arith.index_cast %arg9 : i32 to index
      %c0_84 = arith.constant 0 : index
      %211 = vector.load %arg8[%c5_83, %210, %c0_84] : memref<9x64x64xf32, #tpu.memory_space<vmem>>, vector<1x1x64xf32>
      %212 = vector.shape_cast %211 : vector<1x1x64xf32> to vector<1x64xf32>
      %213 = vector.shape_cast %209 : vector<1x64xf32> to vector<1x1x64xf32>
      tpu.vector_store %arg8[%c5_83, %210, %c0_84], %213 {strides = array<i32>} : memref<9x64x64xf32, #tpu.memory_space<vmem>>, vector<1x1x64xf32>,
      %c8_i32_85 = arith.constant 8 : i32
      %214 = arith.muli %149, %c8_i32_85 : i32
      %c5_i32 = arith.constant 5 : i32
      %215 = arith.addi %214, %c5_i32 : i32
      %216 = arith.index_cast %215 : i32 to index
      %217 = memref.load %arg3[%216] : memref<2048xi32, #tpu.memory_space<smem>>
      %218 = arith.index_cast %217 : i32 to index
      %c0_86 = arith.constant 0 : index
      %219 = vector.load %arg5[%218, %c0_86] : memref<512x64xf32, #tpu.memory_space<vmem>>, vector<1x64xf32>
      %c6_87 = arith.constant 6 : index
      %220 = arith.index_cast %arg9 : i32 to index
      %c0_88 = arith.constant 0 : index
      %221 = vector.load %arg8[%c6_87, %220, %c0_88] : memref<9x64x64xf32, #tpu.memory_space<vmem>>, vector<1x1x64xf32>
      %222 = vector.shape_cast %221 : vector<1x1x64xf32> to vector<1x64xf32>
      %223 = vector.shape_cast %219 : vector<1x64xf32> to vector<1x1x64xf32>
      tpu.vector_store %arg8[%c6_87, %220, %c0_88], %223 {strides = array<i32>} : memref<9x64x64xf32, #tpu.memory_space<vmem>>, vector<1x1x64xf32>,
      %c8_i32_89 = arith.constant 8 : i32
      %224 = arith.muli %149, %c8_i32_89 : i32
      %c6_i32 = arith.constant 6 : i32
      %225 = arith.addi %224, %c6_i32 : i32
      %226 = arith.index_cast %225 : i32 to index
      %227 = memref.load %arg3[%226] : memref<2048xi32, #tpu.memory_space<smem>>
      %228 = arith.index_cast %227 : i32 to index
      %c0_90 = arith.constant 0 : index
      %229 = vector.load %arg5[%228, %c0_90] : memref<512x64xf32, #tpu.memory_space<vmem>>, vector<1x64xf32>
      %c7_91 = arith.constant 7 : index
      %230 = arith.index_cast %arg9 : i32 to index
      %c0_92 = arith.constant 0 : index
      %231 = vector.load %arg8[%c7_91, %230, %c0_92] : memref<9x64x64xf32, #tpu.memory_space<vmem>>, vector<1x1x64xf32>
      %232 = vector.shape_cast %231 : vector<1x1x64xf32> to vector<1x64xf32>
      %233 = vector.shape_cast %229 : vector<1x64xf32> to vector<1x1x64xf32>
      tpu.vector_store %arg8[%c7_91, %230, %c0_92], %233 {strides = array<i32>} : memref<9x64x64xf32, #tpu.memory_space<vmem>>, vector<1x1x64xf32>,
      %c8_i32_93 = arith.constant 8 : i32
      %234 = arith.muli %149, %c8_i32_93 : i32
      %c7_i32 = arith.constant 7 : i32
      %235 = arith.addi %234, %c7_i32 : i32
      %236 = arith.index_cast %235 : i32 to index
      %237 = memref.load %arg3[%236] : memref<2048xi32, #tpu.memory_space<smem>>
      %238 = arith.index_cast %237 : i32 to index
      %c0_94 = arith.constant 0 : index
      %239 = vector.load %arg5[%238, %c0_94] : memref<512x64xf32, #tpu.memory_space<vmem>>, vector<1x64xf32>
      %c8_95 = arith.constant 8 : index
      %240 = arith.index_cast %arg9 : i32 to index
      %c0_96 = arith.constant 0 : index
      %241 = vector.load %arg8[%c8_95, %240, %c0_96] : memref<9x64x64xf32, #tpu.memory_space<vmem>>, vector<1x1x64xf32>
      %242 = vector.shape_cast %241 : vector<1x1x64xf32> to vector<1x64xf32>
      %243 = vector.shape_cast %239 : vector<1x64xf32> to vector<1x1x64xf32>
      tpu.vector_store %arg8[%c8_95, %240, %c0_96], %243 {strides = array<i32>} : memref<9x64x64xf32, #tpu.memory_space<vmem>>, vector<1x1x64xf32>,
    }
    %c64_i32_1 = arith.constant 64 : i32
    %c0 = arith.constant 0 : index
    %c0_2 = arith.constant 0 : index
    %2 = vector.load %arg7[%c0, %c0_2] : memref<64x64xf32, #tpu.memory_space<vmem>>, vector<64x64xf32>
    %c0_3 = arith.constant 0 : index
    %c0_4 = arith.constant 0 : index
    %c0_5 = arith.constant 0 : index
    %3 = vector.load %arg8[%c0_3, %c0_4, %c0_5] : memref<9x64x64xf32, #tpu.memory_space<vmem>>, vector<1x64x64xf32>
    %4 = vector.shape_cast %3 : vector<1x64x64xf32> to vector<64x64xf32>
    %5 = arith.mulf %2, %4 : vector<64x64xf32>
    %cst = arith.constant dense<0.000000e+00> : vector<64xf32>
    %6 = vector.multi_reduction <add>, %5, %cst [1] : vector<64x64xf32> to vector<64xf32>
    %7 = vector.shape_cast %6 : vector<64xf32> to vector<64x1xf32>
    %cst_6 = arith.constant 0.000000e+00 : f32
    %8 = vector.broadcast %cst_6 : f32 to vector<64x1xf32>
    %9 = arith.minimumf %7, %8 : vector<64x1xf32>
    %10 = math.absf %7 : vector<64x1xf32>
    %cst_7 = arith.constant 0.000000e+00 : f32
    %11 = vector.broadcast %cst_7 : f32 to vector<64x1xf32>
    %12 = arith.subf %11, %10 : vector<64x1xf32>
    %13 = math.exp %12 : vector<64x1xf32>
    %14 = math.log1p %13 : vector<64x1xf32>
    %15 = arith.subf %9, %14 : vector<64x1xf32>
    %c1 = arith.constant 1 : index
    %c0_8 = arith.constant 0 : index
    %c0_9 = arith.constant 0 : index
    %16 = vector.load %arg8[%c1, %c0_8, %c0_9] : memref<9x64x64xf32, #tpu.memory_space<vmem>>, vector<1x64x64xf32>
    %17 = vector.shape_cast %16 : vector<1x64x64xf32> to vector<64x64xf32>
    %18 = arith.mulf %2, %17 : vector<64x64xf32>
    %cst_10 = arith.constant dense<0.000000e+00> : vector<64xf32>
    %19 = vector.multi_reduction <add>, %18, %cst_10 [1] : vector<64x64xf32> to vector<64xf32>
    %20 = vector.shape_cast %19 : vector<64xf32> to vector<64x1xf32>
    %cst_11 = arith.constant 0.000000e+00 : f32
    %21 = vector.broadcast %cst_11 : f32 to vector<64x1xf32>
    %22 = arith.subf %21, %20 : vector<64x1xf32>
    %cst_12 = arith.constant 0.000000e+00 : f32
    %23 = vector.broadcast %cst_12 : f32 to vector<64x1xf32>
    %24 = arith.minimumf %22, %23 : vector<64x1xf32>
    %25 = math.absf %22 : vector<64x1xf32>
    %cst_13 = arith.constant 0.000000e+00 : f32
    %26 = vector.broadcast %cst_13 : f32 to vector<64x1xf32>
    %27 = arith.subf %26, %25 : vector<64x1xf32>
    %28 = math.exp %27 : vector<64x1xf32>
    %29 = math.log1p %28 : vector<64x1xf32>
    %30 = arith.subf %24, %29 : vector<64x1xf32>
    %31 = arith.addf %15, %30 : vector<64x1xf32>
    %c2 = arith.constant 2 : index
    %c0_14 = arith.constant 0 : index
    %c0_15 = arith.constant 0 : index
    %32 = vector.load %arg8[%c2, %c0_14, %c0_15] : memref<9x64x64xf32, #tpu.memory_space<vmem>>, vector<1x64x64xf32>
    %33 = vector.shape_cast %32 : vector<1x64x64xf32> to vector<64x64xf32>
    %34 = arith.mulf %2, %33 : vector<64x64xf32>
    %cst_16 = arith.constant dense<0.000000e+00> : vector<64xf32>
    %35 = vector.multi_reduction <add>, %34, %cst_16 [1] : vector<64x64xf32> to vector<64xf32>
    %36 = vector.shape_cast %35 : vector<64xf32> to vector<64x1xf32>
    %cst_17 = arith.constant 0.000000e+00 : f32
    %37 = vector.broadcast %cst_17 : f32 to vector<64x1xf32>
    %38 = arith.subf %37, %36 : vector<64x1xf32>
    %cst_18 = arith.constant 0.000000e+00 : f32
    %39 = vector.broadcast %cst_18 : f32 to vector<64x1xf32>
    %40 = arith.minimumf %38, %39 : vector<64x1xf32>
    %41 = math.absf %38 : vector<64x1xf32>
    %cst_19 = arith.constant 0.000000e+00 : f32
    %42 = vector.broadcast %cst_19 : f32 to vector<64x1xf32>
    %43 = arith.subf %42, %41 : vector<64x1xf32>
    %44 = math.exp %43 : vector<64x1xf32>
    %45 = math.log1p %44 : vector<64x1xf32>
    %46 = arith.subf %40, %45 : vector<64x1xf32>
    %47 = arith.addf %31, %46 : vector<64x1xf32>
    %c3 = arith.constant 3 : index
    %c0_20 = arith.constant 0 : index
    %c0_21 = arith.constant 0 : index
    %48 = vector.load %arg8[%c3, %c0_20, %c0_21] : memref<9x64x64xf32, #tpu.memory_space<vmem>>, vector<1x64x64xf32>
    %49 = vector.shape_cast %48 : vector<1x64x64xf32> to vector<64x64xf32>
    %50 = arith.mulf %2, %49 : vector<64x64xf32>
    %cst_22 = arith.constant dense<0.000000e+00> : vector<64xf32>
    %51 = vector.multi_reduction <add>, %50, %cst_22 [1] : vector<64x64xf32> to vector<64xf32>
    %52 = vector.shape_cast %51 : vector<64xf32> to vector<64x1xf32>
    %cst_23 = arith.constant 0.000000e+00 : f32
    %53 = vector.broadcast %cst_23 : f32 to vector<64x1xf32>
    %54 = arith.subf %53, %52 : vector<64x1xf32>
    %cst_24 = arith.constant 0.000000e+00 : f32
    %55 = vector.broadcast %cst_24 : f32 to vector<64x1xf32>
    %56 = arith.minimumf %54, %55 : vector<64x1xf32>
    %57 = math.absf %54 : vector<64x1xf32>
    %cst_25 = arith.constant 0.000000e+00 : f32
    %58 = vector.broadcast %cst_25 : f32 to vector<64x1xf32>
    %59 = arith.subf %58, %57 : vector<64x1xf32>
    %60 = math.exp %59 : vector<64x1xf32>
    %61 = math.log1p %60 : vector<64x1xf32>
    %62 = arith.subf %56, %61 : vector<64x1xf32>
    %63 = arith.addf %47, %62 : vector<64x1xf32>
    %c4 = arith.constant 4 : index
    %c0_26 = arith.constant 0 : index
    %c0_27 = arith.constant 0 : index
    %64 = vector.load %arg8[%c4, %c0_26, %c0_27] : memref<9x64x64xf32, #tpu.memory_space<vmem>>, vector<1x64x64xf32>
    %65 = vector.shape_cast %64 : vector<1x64x64xf32> to vector<64x64xf32>
    %66 = arith.mulf %2, %65 : vector<64x64xf32>
    %cst_28 = arith.constant dense<0.000000e+00> : vector<64xf32>
    %67 = vector.multi_reduction <add>, %66, %cst_28 [1] : vector<64x64xf32> to vector<64xf32>
    %68 = vector.shape_cast %67 : vector<64xf32> to vector<64x1xf32>
    %cst_29 = arith.constant 0.000000e+00 : f32
    %69 = vector.broadcast %cst_29 : f32 to vector<64x1xf32>
    %70 = arith.subf %69, %68 : vector<64x1xf32>
    %cst_30 = arith.constant 0.000000e+00 : f32
    %71 = vector.broadcast %cst_30 : f32 to vector<64x1xf32>
    %72 = arith.minimumf %70, %71 : vector<64x1xf32>
    %73 = math.absf %70 : vector<64x1xf32>
    %cst_31 = arith.constant 0.000000e+00 : f32
    %74 = vector.broadcast %cst_31 : f32 to vector<64x1xf32>
    %75 = arith.subf %74, %73 : vector<64x1xf32>
    %76 = math.exp %75 : vector<64x1xf32>
    %77 = math.log1p %76 : vector<64x1xf32>
    %78 = arith.subf %72, %77 : vector<64x1xf32>
    %79 = arith.addf %63, %78 : vector<64x1xf32>
    %c5 = arith.constant 5 : index
    %c0_32 = arith.constant 0 : index
    %c0_33 = arith.constant 0 : index
    %80 = vector.load %arg8[%c5, %c0_32, %c0_33] : memref<9x64x64xf32, #tpu.memory_space<vmem>>, vector<1x64x64xf32>
    %81 = vector.shape_cast %80 : vector<1x64x64xf32> to vector<64x64xf32>
    %82 = arith.mulf %2, %81 : vector<64x64xf32>
    %cst_34 = arith.constant dense<0.000000e+00> : vector<64xf32>
    %83 = vector.multi_reduction <add>, %82, %cst_34 [1] : vector<64x64xf32> to vector<64xf32>
    %84 = vector.shape_cast %83 : vector<64xf32> to vector<64x1xf32>
    %cst_35 = arith.constant 0.000000e+00 : f32
    %85 = vector.broadcast %cst_35 : f32 to vector<64x1xf32>
    %86 = arith.subf %85, %84 : vector<64x1xf32>
    %cst_36 = arith.constant 0.000000e+00 : f32
    %87 = vector.broadcast %cst_36 : f32 to vector<64x1xf32>
    %88 = arith.minimumf %86, %87 : vector<64x1xf32>
    %89 = math.absf %86 : vector<64x1xf32>
    %cst_37 = arith.constant 0.000000e+00 : f32
    %90 = vector.broadcast %cst_37 : f32 to vector<64x1xf32>
    %91 = arith.subf %90, %89 : vector<64x1xf32>
    %92 = math.exp %91 : vector<64x1xf32>
    %93 = math.log1p %92 : vector<64x1xf32>
    %94 = arith.subf %88, %93 : vector<64x1xf32>
    %95 = arith.addf %79, %94 : vector<64x1xf32>
    %c6 = arith.constant 6 : index
    %c0_38 = arith.constant 0 : index
    %c0_39 = arith.constant 0 : index
    %96 = vector.load %arg8[%c6, %c0_38, %c0_39] : memref<9x64x64xf32, #tpu.memory_space<vmem>>, vector<1x64x64xf32>
    %97 = vector.shape_cast %96 : vector<1x64x64xf32> to vector<64x64xf32>
    %98 = arith.mulf %2, %97 : vector<64x64xf32>
    %cst_40 = arith.constant dense<0.000000e+00> : vector<64xf32>
    %99 = vector.multi_reduction <add>, %98, %cst_40 [1] : vector<64x64xf32> to vector<64xf32>
    %100 = vector.shape_cast %99 : vector<64xf32> to vector<64x1xf32>
    %cst_41 = arith.constant 0.000000e+00 : f32
    %101 = vector.broadcast %cst_41 : f32 to vector<64x1xf32>
    %102 = arith.subf %101, %100 : vector<64x1xf32>
    %cst_42 = arith.constant 0.000000e+00 : f32
    %103 = vector.broadcast %cst_42 : f32 to vector<64x1xf32>
    %104 = arith.minimumf %102, %103 : vector<64x1xf32>
    %105 = math.absf %102 : vector<64x1xf32>
    %cst_43 = arith.constant 0.000000e+00 : f32
    %106 = vector.broadcast %cst_43 : f32 to vector<64x1xf32>
    %107 = arith.subf %106, %105 : vector<64x1xf32>
    %108 = math.exp %107 : vector<64x1xf32>
    %109 = math.log1p %108 : vector<64x1xf32>
    %110 = arith.subf %104, %109 : vector<64x1xf32>
    %111 = arith.addf %95, %110 : vector<64x1xf32>
    %c7 = arith.constant 7 : index
    %c0_44 = arith.constant 0 : index
    %c0_45 = arith.constant 0 : index
    %112 = vector.load %arg8[%c7, %c0_44, %c0_45] : memref<9x64x64xf32, #tpu.memory_space<vmem>>, vector<1x64x64xf32>
    %113 = vector.shape_cast %112 : vector<1x64x64xf32> to vector<64x64xf32>
    %114 = arith.mulf %2, %113 : vector<64x64xf32>
    %cst_46 = arith.constant dense<0.000000e+00> : vector<64xf32>
    %115 = vector.multi_reduction <add>, %114, %cst_46 [1] : vector<64x64xf32> to vector<64xf32>
    %116 = vector.shape_cast %115 : vector<64xf32> to vector<64x1xf32>
    %cst_47 = arith.constant 0.000000e+00 : f32
    %117 = vector.broadcast %cst_47 : f32 to vector<64x1xf32>
    %118 = arith.subf %117, %116 : vector<64x1xf32>
    %cst_48 = arith.constant 0.000000e+00 : f32
    %119 = vector.broadcast %cst_48 : f32 to vector<64x1xf32>
    %120 = arith.minimumf %118, %119 : vector<64x1xf32>
    %121 = math.absf %118 : vector<64x1xf32>
    %cst_49 = arith.constant 0.000000e+00 : f32
    %122 = vector.broadcast %cst_49 : f32 to vector<64x1xf32>
    %123 = arith.subf %122, %121 : vector<64x1xf32>
    %124 = math.exp %123 : vector<64x1xf32>
    %125 = math.log1p %124 : vector<64x1xf32>
    %126 = arith.subf %120, %125 : vector<64x1xf32>
    %127 = arith.addf %111, %126 : vector<64x1xf32>
    %c8 = arith.constant 8 : index
    %c0_50 = arith.constant 0 : index
    %c0_51 = arith.constant 0 : index
    %128 = vector.load %arg8[%c8, %c0_50, %c0_51] : memref<9x64x64xf32, #tpu.memory_space<vmem>>, vector<1x64x64xf32>
    %129 = vector.shape_cast %128 : vector<1x64x64xf32> to vector<64x64xf32>
    %130 = arith.mulf %2, %129 : vector<64x64xf32>
    %cst_52 = arith.constant dense<0.000000e+00> : vector<64xf32>
    %131 = vector.multi_reduction <add>, %130, %cst_52 [1] : vector<64x64xf32> to vector<64xf32>
    %132 = vector.shape_cast %131 : vector<64xf32> to vector<64x1xf32>
    %cst_53 = arith.constant 0.000000e+00 : f32
    %133 = vector.broadcast %cst_53 : f32 to vector<64x1xf32>
    %134 = arith.subf %133, %132 : vector<64x1xf32>
    %cst_54 = arith.constant 0.000000e+00 : f32
    %135 = vector.broadcast %cst_54 : f32 to vector<64x1xf32>
    %136 = arith.minimumf %134, %135 : vector<64x1xf32>
    %137 = math.absf %134 : vector<64x1xf32>
    %cst_55 = arith.constant 0.000000e+00 : f32
    %138 = vector.broadcast %cst_55 : f32 to vector<64x1xf32>
    %139 = arith.subf %138, %137 : vector<64x1xf32>
    %140 = math.exp %139 : vector<64x1xf32>
    %141 = math.log1p %140 : vector<64x1xf32>
    %142 = arith.subf %136, %141 : vector<64x1xf32>
    %143 = arith.addf %127, %142 : vector<64x1xf32>
    %cst_56 = arith.constant 0.000000e+00 : f32
    %144 = vector.broadcast %cst_56 : f32 to vector<64x1xf32>
    %145 = arith.subf %144, %143 : vector<64x1xf32>
    %146 = vector.shape_cast %145 : vector<64x1xf32> to vector<64x1xf32>
    %147 = vector.broadcast %146 : vector<64x1xf32> to vector<64x128xf32>
    %c0_57 = arith.constant 0 : index
    %c0_58 = arith.constant 0 : index
    %148 = vector.load %arg6[%c0_57, %c0_58] : memref<64x128xf32, #tpu.memory_space<vmem>>, vector<64x128xf32>
    tpu.vector_store %arg6[%c0_57, %c0_58], %147 {strides = array<i32>} : memref<64x128xf32, #tpu.memory_space<vmem>>, vector<64x128xf32>,
    return
  }
  func.func @transform_0(%arg0: i32, %arg1: memref<256xi32, #tpu.memory_space<smem>>, %arg2: memref<256xi32, #tpu.memory_space<smem>>, %arg3: memref<2048xi32, #tpu.memory_space<smem>>) -> (i32, i32) {
    %c0_i32 = arith.constant 0 : i32
    %c0_i32_0 = arith.constant 0 : i32
    %c0_i32_1 = arith.constant 0 : i32
    return %c0_i32, %c0_i32_0 : i32, i32
  }
  func.func @transform_1(%arg0: i32, %arg1: memref<256xi32, #tpu.memory_space<smem>>, %arg2: memref<256xi32, #tpu.memory_space<smem>>, %arg3: memref<2048xi32, #tpu.memory_space<smem>>) -> (i32, i32) {
    %c0_i32 = arith.constant 0 : i32
    %c0_i32_0 = arith.constant 0 : i32
    %c0_i32_1 = arith.constant 0 : i32
    return %c0_i32, %c0_i32_0 : i32, i32
  }
  func.func @transform_2(%arg0: i32, %arg1: memref<256xi32, #tpu.memory_space<smem>>, %arg2: memref<256xi32, #tpu.memory_space<smem>>, %arg3: memref<2048xi32, #tpu.memory_space<smem>>) -> (i32, i32) {
    %c0_i32 = arith.constant 0 : i32
    %c0_i32_0 = arith.constant 0 : i32
    return %arg0, %c0_i32 : i32, i32
  }
}

</mosaic_0001>

<bundles_post_ra>
// kernel: tpu_custom_call.1
= control target key start
LH: loop header
LB: loop body
LE: loop exit
PB: predicated region body
PF: predicated region fallthrough
CT: control target
= control target key end

     0   :  { %s4401_s0 = inlined_call_operand.vmem [shape: s32[256], index: 0, kind: input, shape index: {}]   ;;  %s4402_s3 = inlined_call_operand.vmem [shape: f32[512,64], index: 3, kind: input, shape index: {}]   ;;  %s4403_s4 = inlined_call_operand.vmem [shape: f32[512,64], index: 4, kind: input, shape index: {}]   ;;  %s4404_s5 = inlined_call_operand.hbm [shape: f32[256,128], index: 5, kind: output, shape index: {}]   ;;  %s4405_s1 = inlined_call_operand.vmem [shape: s32[256], index: 1, kind: input, shape index: {}]   ;;  %s4406_s2 = inlined_call_operand.vmem [shape: s32[2048], index: 2, kind: input, shape index: {}]  }
   0x1   :  { %s10_s20 = sshll.u32 %s4401_s0, 4  ;;  %s14_s23 = sshll.u32 %s4405_s1, 4  ;;  %s11_s20 = int_to_ptr.vmem [resolvable:$true] %s10_s20  ;;  %s15_s23 = int_to_ptr.vmem [resolvable:$true] %s14_s23 }
   0x2   :  { %s2273_s24 = scalar_lea.vmem %s11_s20, 32  ;;  %p2278_p1 = scmp.lt.s32.totalorder %s11_s20, %s11_s20 }
   0x3   :  { %p2274_p0 = scmp.ne.s32.totalorder %s11_s20, %s2273_s24  ;;  %p2279_p2 = scmp.lt.s32.totalorder %s2273_s24, %s2273_s24 }
   0x5   :  { %p2280_p3 = por %p2279_p2, %p2278_p1 }
   0x7   :  { %p2281_p4 = pnand %p2280_p3, %p2274_p0 }
   0x9   :  { %2284 = shalt.err (!%p2281_p4)  }
   0xa   :  { %s2381_s25 = smov [#allocation5]   ;;  %s2285_s26 = scalar_lea.vmem %s15_s23, 32 }
   0xb   :  { %13 = dma.vmem_to_smem %s11_s20, 32, %s2381_s25, [#allocation4] }
   0xc   :  { %p2286_p5 = scmp.ne.s32.totalorder %s15_s23, %s2285_s26  ;;  %p2290_p6 = scmp.lt.s32.totalorder %s15_s23, %s15_s23 }
   0xd   :  { %p2291_p7 = scmp.lt.s32.totalorder %s2285_s26, %s2285_s26 }
   0xf   :  { %p2292_p8 = por %p2291_p7, %p2290_p6 }
  0x11   :  { %p2293_p9 = pnand %p2292_p8, %p2286_p5 }
  0x13   :  { %2296 = shalt.err (!%p2293_p9)  }
  0x14   :  { %s2382_s0 = smov [#allocation6]   ;;  %s18_s28 = sshll.u32 %s4406_s2, 4  ;;  %s19_s28 = int_to_ptr.vmem [resolvable:$true] %s18_s28 }
  0x15   :  { %17 = dma.vmem_to_smem %s15_s23, 32, %s2382_s0, [#allocation4] }
  0x16   :  { %s2297_s29 = scalar_lea.vmem %s19_s28, 256  ;;  %p2302_p11 = scmp.lt.s32.totalorder %s19_s28, %s19_s28 }
  0x17   :  { %p2298_p10 = scmp.ne.s32.totalorder %s19_s28, %s2297_s29  ;;  %p2303_p12 = scmp.lt.s32.totalorder %s2297_s29, %s2297_s29 }
  0x19   :  { %p2304_p13 = por %p2303_p12, %p2302_p11 }
  0x1b   :  { %p2305_p0 = pnand %p2304_p13, %p2298_p10 }
  0x1d   :  { %2308 = shalt.err (!%p2305_p0)  }
  0x1e   :  { %s2383_s30 = smov [#allocation7]  }
  0x1f   :  { %21 = dma.vmem_to_smem %s19_s28, 256, %s2383_s30, [#allocation4] }
  0x20   :  { %2355 = dma.done.wait [#allocation4], 320 }
  0x21   :  { %2356 = vsyncadd [#allocation4], 4294966976 }
  0x22   :  { %23 = sfence }
  0x23   :  { %24 = vsyncpa [#allocation9], 0 }
  0x24   :  { %26 = vsyncpa [#allocation9 + $0x1], 0  ;;  %s2426_s6 = smov 0   ;;  %s2428_s7 = smov 0  }
  0x25   :  { %s2430_s2 = smov 0   ;;  %s2432_s8 = smov 0  }
  0x26 LB: > { %4414 = sst [smem:[#allocation12_spill]] %s2363_s6  ;;  %s2447_s9 = sadd.s32 4294967295, %s2375_s8   ;;  %s2375_s8 = sphi %s2432_s8, %s4524_s8   ;;  %s2371_s2 = sphi %s2430_s2, %s4526_s2   ;;  %s2367_s7 = sphi %s2428_s7, %s4528_s7   ;;  %s2363_s6 = sphi %s2426_s6, %s4527_s6  }
  0x27   : > { %4415 = sst [smem:[#allocation13_spill]] %s2371_s2  ;;  %s1913_s10 = sadd.s32 4294967294, %s2375_s8  }
  0x28   : > { %s2451_s11 = sadd.s32 1, %s2375_s8   ;;  %s81_s12 = sadd.s32 1, %s2371_s2 }
  0x29   : > { %4416 = sst [smem:[#allocation14_spill]] %s2451_s11  ;;  %s78_s13 = ssub.s32 %s2375_s8, %s2451_s11 }
  0x2a   : > { %p91_p1 = scmp.ne.s32.totalorder %s2371_s2, %s2367_s7  ;;  %p79_p2 = scmp.eq.s32.totalorder %s78_s13, 0 }
  0x2b   : > { %p92_p3 = scmp.eq.s32.totalorder %s2447_s9, 3  ;;  %p97_p4 = scmp.ne.s32.totalorder %s2367_s7, %s2363_s6 }
  0x2c   : > { %p98_p5 = scmp.eq.s32.totalorder %s1913_s10, 3  ;;  %p1915_p8 = scmp.ge.s32.totalorder %s2375_s8, 1 }
  0x2d   : > { %s2462_s14 = scalar_select %p79_p2, %s2371_s2, %s81_s12  }
  0x2e   : > { %p2464_p6 = por %p92_p3, %p91_p1  ;;  %p2468_p7 = por %p98_p5, %p97_p4 }
  0x2f   : > { %4417 = sst [smem:[#allocation15_spill]] %s2462_s14  ;;  %p122_p9 = scmp.lt.s32.totalorder %s2375_s8, 5 }
  0x30   : > { %s4419_s16 = scalar_select %p2468_p7, 1, 0 }
  0x31   : > { %p123_p10 = pnand %p1915_p8, %p122_p9 }
  0x32   : > { %4420 = sst [smem:[#allocation16_spill]] %s4419_s16  ;;  %s4407_s17 = sand.u32 (!%p123_p10), 1, %s2367_s7  }
  0x33   : > { %126 = sbr.rel (%p123_p10) target bundleno = 564 (0x234), region = 28  ;;  %s1916_s19 = sshll.u32 (!%p123_p10), %s4407_s17, 6 }
  0x34   : > { %s2478_s20 = scalar_lea.vmem (!%p123_p10), [#allocation8], %s1916_s19  ;;  %s2480_s21 = smov (!%p123_p10), 0  }
  0x38 LB: >> { %s4421_s18 = sshll.u32 %s2447_s9, 6  ;;  %vm152_vm0 = vcmask 516096   ;;  %s157_s6 = scalar_lea.vmem [#allocation3], %s2379_s21  ;;  %s2379_s21 = sphi %s2480_s21, %s146_s21  }
  0x39   : >> { %s147_s22 = sadd.s32 %s2379_s21, %s4421_s18 }
  0x3a   : >> { %s148_s23 = sld [smem:[#allocation5 + %s147_s22]]  ;;  %s2488_s24 = sshll.u32 %s147_s22, 3 }
  0x3b   : >> { %s154_s25 = sld [smem:[#allocation6 + %s147_s22]]  ;;  %s166_s0 = sadd.s32 1, %s2488_s24 }
  0x3c   : >> { %s160_s26 = sld [smem:[#allocation7 + %s2488_s24]]  ;;  %s173_s27 = sadd.s32 2, %s2488_s24 }
  0x3d   : >> { %s167_s1 = sld [smem:[#allocation7 + %s166_s0]]  ;;  %s180_s29 = sadd.s32 3, %s2488_s24 }
  0x3e   : >> { %s174_s28 = sld [smem:[#allocation7 + %s173_s27]]  ;;  %s187_s10 = sadd.s32 4, %s2488_s24 }
  0x3f   : >> { %s181_s30 = sld [smem:[#allocation7 + %s180_s29]]  ;;  %s194_s2 = sadd.s32 5, %s2488_s24 }
  0x40   : >> { %s149_s19 = scalar_lea.vmem %s4402_s3, %s148_s23  ;;  %s188_s18 = sld [smem:[#allocation7 + %s187_s10]] }
  0x41   : >> { %v150_v0 = vld [vmem:[%s149_s19] sm:$0x1]  ;;  %s155_s22 = scalar_lea.vmem %s4403_s4, %s154_s25  ;;  %s151_s0 = scalar_lea.vmem [#allocation2], %s2379_s21 }
  0x42   : >> { %153 = vst.msk [vmem:[%s151_s0] sm:$0x1] %vm152_vm0, %v150_v0  ;;  %v156_v1 = vld [vmem:[%s155_s22] sm:$0x1]  ;;  %s161_s11 = scalar_lea.vmem %s4403_s4, %s160_s26  ;;  %s195_s16 = sld [smem:[#allocation7 + %s194_s2]] }
  0x43   : >> { %158 = vst.msk [vmem:[%s157_s6] sm:$0x1] %vm152_vm0, %v156_v1  ;;  %v162_v2 = vld [vmem:[%s161_s11] sm:$0x1]  ;;  %s168_s14 = scalar_lea.vmem %s4403_s4, %s167_s1  ;;  %s201_s17 = sadd.s32 6, %s2488_s24 }
  0x44   : >> { %1919 = vst.msk [vmem:[%s157_s6 + $0x40] sm:$0x1] %vm152_vm0, %v162_v2  ;;  %v169_v3 = vld [vmem:[%s168_s14] sm:$0x1]  ;;  %s175_s13 = scalar_lea.vmem %s4403_s4, %s174_s28  ;;  %s202_s19 = sld [smem:[#allocation7 + %s201_s17]] }
  0x45   : >> { %1920 = vst.msk [vmem:[%s157_s6 + $0x80] sm:$0x1] %vm152_vm0, %v169_v3  ;;  %v176_v4 = vld [vmem:[%s175_s13] sm:$0x1]  ;;  %s182_s11 = scalar_lea.vmem %s4403_s4, %s181_s30  ;;  %s208_s22 = sadd.s32 7, %s2488_s24 }
  0x46   : >> { %1921 = vst.msk [vmem:[%s157_s6 + $0xc0] sm:$0x1] %vm152_vm0, %v176_v4  ;;  %v183_v5 = vld [vmem:[%s182_s11] sm:$0x1]  ;;  %s189_s27 = scalar_lea.vmem %s4403_s4, %s188_s18  ;;  %s209_s29 = sld [smem:[#allocation7 + %s208_s22]] }
  0x47   : >> { %1922 = vst.msk [vmem:[%s157_s6 + $0x100] sm:$0x1] %vm152_vm0, %v183_v5  ;;  %v190_v6 = vld [vmem:[%s189_s27] sm:$0x1]  ;;  %s146_s21 = sadd.s32 1, %s2379_s21  }
  0x48   : >> { %1923 = vst.msk [vmem:[%s157_s6 + $0x140] sm:$0x1] %vm152_vm0, %v190_v6  ;;  %s196_s10 = scalar_lea.vmem %s4403_s4, %s195_s16  ;;  %p143_p11 = scmp.ge.s32.totalorder %s146_s21, 64  }
  0x49   : >> { %v197_v7 = vld [vmem:[%s196_s10] sm:$0x1]  ;;  %v2543_v10 = vld [vmem:[#allocation2 + $0x10] sm:$0xff] (%p143_p11)  ;;  %vm239_vm1 = vcmask (%p143_p11), 523264   ;;  %v2548_v15 = vld [vmem:[#allocation2 + $0x18] sm:$0xff] (%p143_p11)  ;;  %s1830_s16 = sshll.u32 (%p143_p11), %s2478_s20, 4  ;;  %s4355_s16 = int_to_ptr.vmem [resolvable:$true] %s1830_s16 }
  0x4a   : >> { %1924 = vst.msk [vmem:[%s157_s6 + $0x180] sm:$0x1] %vm152_vm0, %v197_v7  ;;  %s203_s14 = scalar_lea.vmem %s4403_s4, %s202_s19  ;;  %145 = sbr.rel (!%p143_p11) target bundleno = 56 (0x38), region = 95  ;;  %v2545_v12 = vld [vmem:[#allocation2] sm:$0xff] (%p143_p11)  ;;  %v2552_v19 = vld [vmem:[#allocation2 + $0x8] sm:$0xff] (%p143_p11)  ;;  %v2569_v42 = vld [vmem:[#allocation2 + $0x38] sm:$0xff] (%p143_p11) }
  0x4b   : >> { %v204_v8 = vld [vmem:[%s203_s14] sm:$0x1]  ;;  %v2554_v21 = vld [vmem:[#allocation2 + $0x28] sm:$0xff] (%p143_p11)  ;;  %v2571_v44 = vld [vmem:[#allocation2 + $0x30] sm:$0xff] (%p143_p11)  ;;  %s4521_s19 = sand.u32 (%p143_p11), 1, %s2367_s7   ;;  %s2384_s26 = smov (%p143_p11), [#allocation8]  }
  0x4c   : >> { %1925 = vst.msk [vmem:[%s157_s6 + $0x1c0] sm:$0x1] %vm152_vm0, %v204_v8  ;;  %s210_s25 = scalar_lea.vmem %s4403_s4, %s209_s29  ;;  %v2558_v25 = vld [vmem:[#allocation2 + $0x20] sm:$0xff] (%p143_p11)  ;;  %s4361_s2 = scalar_lea.sflag (%p143_p11), [#allocation9], %s4521_s19 }
  0x4d   : >> { %v211_v9 = vld [vmem:[%s210_s25] sm:$0x1]  ;;  %s2313_s11 = sshll.u32 (%p143_p11), %s2384_s26, 4  ;;  %s2314_s11 = int_to_ptr.vmem [resolvable:$false] %s2313_s11 }
  0x4e   : >> { %1926 = vst.msk [vmem:[%s157_s6 + $0x200] sm:$0x1] %vm152_vm0, %v211_v9  ;;  %s1932_s6 = sshll.u32 (%p143_p11), %s2447_s9, 10  ;;  %s2309_s9 = scalar_lea.vmem (%p143_p11), %s4355_s16, 1024 }
  0x4f   : > { %s4353_s13 = scalar_lea.hbm %s4404_s5, %s1932_s6  ;;  %p2310_p12 = scmp.ne.s32.totalorder %s4355_s16, %s2309_s9 }
  0x50   : > { %s2315_s22 = scalar_lea.vmem %s2314_s11, 2048  ;;  %p2316_p1 = scmp.lt.s32.totalorder %s4355_s16, %s2314_s11 }
  0x51   : > { %p2311_p13 = pnand %p2310_p12, %p2464_p6  ;;  %p2317_p2 = scmp.lt.s32.totalorder %s2315_s22, %s2309_s9 }
  0x53   : > { %p2312_p0 = pneg %p2311_p13  ;;  %p2318_p3 = por %p2317_p2, %p2316_p1 }
  0x55   : > { %v225_v11 = vld [vmem:[#allocation3 + $0x10] sm:$0xff]  ;;  %v223_v14 = vld [vmem:[#allocation3] sm:$0xff]  ;;  %v226_v16 = vld [vmem:[#allocation3 + $0x18] sm:$0xff]  ;;  %p2319_p4 = pnand %p2318_p3, %p2312_p0 }
  0x56   : > { %v233_v13 = vmul.f32 %v225_v11, %v2543_v10  ;;  %v231_v17 = vmul.f32 %v223_v14, %v2545_v12  ;;  %v234_v18 = vmul.f32 %v226_v16, %v2548_v15  ;;  %v224_v20 = vld [vmem:[#allocation3 + $0x8] sm:$0xff]  ;;  %v227_v26 = vld [vmem:[#allocation3 + $0x20] sm:$0xff]  ;;  %v388_v36 = vld [vmem:[#allocation3 + $0x58] sm:$0xff] }
  0x57   : > { %v232_v23 = vmul.f32 %v224_v20, %v2552_v19  ;;  %v228_v24 = vld [vmem:[#allocation3 + $0x28] sm:$0xff]  ;;  %v235_v31 = vmul.f32 %v227_v26, %v2558_v25  ;;  %v385_v33 = vld [vmem:[#allocation3 + $0x40] sm:$0xff]  ;;  %v387_v37 = vld [vmem:[#allocation3 + $0x50] sm:$0xff]  ;;  %v396_v46 = vmul.f32 %v388_v36, %v2548_v15 }
  0x58   : > { %v246_v22 = vsel %vm239_vm1, %v233_v13, 0.0  ;;  %v240_v27 = vsel %vm239_vm1, %v231_v17, 0.0  ;;  %v249_v28 = vsel %vm239_vm1, %v234_v18, 0.0  ;;  %v236_v29 = vmul.f32 %v228_v24, %v2554_v21  ;;  %v386_v32 = vld [vmem:[#allocation3 + $0x48] sm:$0xff]  ;;  %v389_v41 = vld [vmem:[#allocation3 + $0x60] sm:$0xff]  ;;  %v392_v43 = vld [vmem:[#allocation3 + $0x78] sm:$0xff] }
  0x59   : > { %247 = vadd.xlane.f32.xlu1 %v246_v22  ;;  %241 = vadd.xlane.f32.xlu0 %v240_v27  ;;  %v243_v30 = vsel %vm239_vm1, %v232_v23, 0.0  ;;  %v394_v35 = vmul.f32 %v386_v32, %v2552_v19  ;;  %v390_v38 = vld [vmem:[#allocation3 + $0x68] sm:$0xff]  ;;  %v252_v39 = vsel %vm239_vm1, %v235_v31, 0.0  ;;  %v393_v40 = vmul.f32 %v385_v33, %v2545_v12  ;;  %v391_v45 = vld [vmem:[#allocation3 + $0x70] sm:$0xff]  ;;  %v230_v48 = vld [vmem:[#allocation3 + $0x38] sm:$0xff] }
  0x5a   : > { %v255_v34 = vsel %vm239_vm1, %v236_v29, 0.0  ;;  %v395_v47 = vmul.f32 %v387_v37, %v2543_v10  ;;  %v229_v49 = vld [vmem:[#allocation3 + $0x30] sm:$0xff]  ;;  %v398_v51 = vmul.f32 %v390_v38, %v2554_v21  ;;  %v397_v52 = vmul.f32 %v389_v41, %v2558_v25  ;;  %v563_v56 = vld [vmem:[#allocation3 + $0x88] sm:$0xff]  ;;  %v562_v59 = vld [vmem:[#allocation3 + $0x80] sm:$0xff] }
  0x5b   : > { %v404_v50 = vsel %vm239_vm1, %v394_v35, 0.0  ;;  %v400_v53 = vmul.f32 %v392_v43, %v2569_v42  ;;  %v401_v54 = vsel %vm239_vm1, %v393_v40, 0.0  ;;  %v399_v55 = vmul.f32 %v391_v45, %v2571_v44  ;;  %v916_v60 = vld [vmem:[#allocation3 + $0x100] sm:$0xff]  ;;  %v919_v61 = vld [vmem:[#allocation3 + $0x118] sm:$0xff]  ;;  %v918_v1 = vld [vmem:[#allocation3 + $0x110] sm:$0xff] }
  0x5c   : > { %v238_v57 = vmul.f32 %v230_v48, %v2569_v42  ;;  %v237_v58 = vmul.f32 %v229_v49, %v2571_v44  ;;  %v410_v62 = vsel %vm239_vm1, %v396_v46, 0.0  ;;  %v407_v63 = vsel %vm239_vm1, %v395_v47, 0.0  ;;  %v565_v0 = vld [vmem:[#allocation3 + $0x98] sm:$0xff]  ;;  %v921_v6 = vld [vmem:[#allocation3 + $0x128] sm:$0xff]  ;;  %v920_v7 = vld [vmem:[#allocation3 + $0x120] sm:$0xff] }
  0x5d   : > { %250 = vadd.xlane.f32.xlu1 %v249_v28  ;;  %244 = vadd.xlane.f32.xlu0 %v243_v30  ;;  %v416_v2 = vsel %vm239_vm1, %v398_v51, 0.0  ;;  %v413_v3 = vsel %vm239_vm1, %v397_v52, 0.0  ;;  %v2588_v4 = vsel %vm239_vm1, %v400_v53, 0.0  ;;  %v571_v5 = vmul.f32 %v563_v56, %v2552_v19  ;;  %v564_v11 = vld [vmem:[#allocation3 + $0x90] sm:$0xff]  ;;  %v1094_v16 = vld [vmem:[#allocation3 + $0x148] sm:$0xff]  ;;  %v1093_v23 = vld [vmem:[#allocation3 + $0x140] sm:$0xff] }
  0x5e   : > { %v2592_v8 = vsel %vm239_vm1, %v399_v55, 0.0  ;;  %v570_v9 = vmul.f32 %v562_v59, %v2545_v12  ;;  %v924_v13 = vmul.f32 %v916_v60, %v2545_v12  ;;  %v927_v14 = vmul.f32 %v919_v61, %v2548_v15  ;;  %v1096_v24 = vld [vmem:[#allocation3 + $0x158] sm:$0xff]  ;;  %v1095_v30 = vld [vmem:[#allocation3 + $0x150] sm:$0xff]  ;;  %v1098_v35 = vld [vmem:[#allocation3 + $0x168] sm:$0xff] }
  0x5f   : > { %v2598_v17 = vsel %vm239_vm1, %v238_v57, 0.0  ;;  %v2601_v18 = vsel %vm239_vm1, %v237_v58, 0.0  ;;  %v573_v20 = vmul.f32 %v565_v0, %v2548_v15  ;;  %v926_v22 = vmul.f32 %v918_v1, %v2543_v10  ;;  %v1097_v36 = vld [vmem:[#allocation3 + $0x160] sm:$0xff]  ;;  %v1100_v41 = vld [vmem:[#allocation3 + $0x178] sm:$0xff]  ;;  %v1099_v43 = vld [vmem:[#allocation3 + $0x170] sm:$0xff] }
  0x60   : > { %v2606_v26 = vsel %vm239_vm1, %v924_v13, 0.0  ;;  %v2609_v27 = vsel %vm239_vm1, %v927_v14, 0.0  ;;  %v929_v28 = vmul.f32 %v921_v6, %v2554_v21  ;;  %v928_v29 = vmul.f32 %v920_v7, %v2558_v25  ;;  %v1271_v45 = vld [vmem:[#allocation3 + $0x188] sm:$0xff]  ;;  %v1273_v51 = vld [vmem:[#allocation3 + $0x198] sm:$0xff]  ;;  %v1272_v56 = vld [vmem:[#allocation3 + $0x190] sm:$0xff] }
  0x61   : > { %256 = vadd.xlane.f32.xlu1 %v255_v34  ;;  %253 = vadd.xlane.f32.xlu0 %v252_v39  ;;  %v2614_v31 = vsel %vm239_vm1, %v571_v5, 0.0  ;;  %v2617_v32 = vmul.f32 %v564_v11, %v2543_v10  ;;  %v2620_v33 = vsel %vm239_vm1, %v926_v22, 0.0  ;;  %v1102_v34 = vmul.f32 %v1094_v16, %v2552_v19  ;;  %v1275_v61 = vld [vmem:[#allocation3 + $0x1a8] sm:$0xff]  ;;  %v1276_v5 = vld [vmem:[#allocation3 + $0x1b0] sm:$0xff]  ;;  %v1447_v14 = vld [vmem:[#allocation3 + $0x1c0] sm:$0xff] }
  0x62   : > { %v2624_v37 = vsel %vm239_vm1, %v929_v28, 0.0  ;;  %v2627_v38 = vsel %vm239_vm1, %v928_v29, 0.0  ;;  %v1101_v39 = vmul.f32 %v1093_v23, %v2545_v12  ;;  %v1104_v40 = vmul.f32 %v1096_v24, %v2548_v15  ;;  %v1448_v6 = vld [vmem:[#allocation3 + $0x1c8] sm:$0xff]  ;;  %v1450_v16 = vld [vmem:[#allocation3 + $0x1d8] sm:$0xff]  ;;  %v1449_v28 = vld [vmem:[#allocation3 + $0x1d0] sm:$0xff] }
  0x63   : > { %v2632_v46 = vsel %vm239_vm1, %v570_v9, 0.0  ;;  %v2635_v47 = vsel %vm239_vm1, %v573_v20, 0.0  ;;  %v2638_v48 = vsel %vm239_vm1, %v1102_v34, 0.0  ;;  %v1103_v49 = vmul.f32 %v1095_v30, %v2543_v10 }
  0x64   : > { %v2642_v52 = vsel %vm239_vm1, %v1101_v39, 0.0  ;;  %v2645_v53 = vsel %vm239_vm1, %v1104_v40, 0.0  ;;  %v1105_v55 = vmul.f32 %v1097_v36, %v2558_v25  ;;  %v1108_v58 = vmul.f32 %v1100_v41, %v2569_v42  ;;  %v1451_v36 = vld [vmem:[#allocation3 + $0x1e0] sm:$0xff] }
  0x65   : > { %405 = vadd.xlane.f32.xlu1 %v404_v50  ;;  %402 = vadd.xlane.f32.xlu0 %v401_v54  ;;  %v1270_v50 = vld [vmem:[#allocation3 + $0x180] sm:$0xff]  ;;  %v1106_v54 = vmul.f32 %v1098_v35, %v2554_v21  ;;  %v2650_v57 = vsel %vm239_vm1, %v1103_v49, 0.0  ;;  %v1107_v59 = vmul.f32 %v1099_v43, %v2571_v44  ;;  %v1279_v60 = vmul.f32 %v1271_v45, %v2552_v19  ;;  %v1452_v35 = vld [vmem:[#allocation3 + $0x1e8] sm:$0xff]  ;;  %v1454_v43 = vld [vmem:[#allocation3 + $0x1f8] sm:$0xff] }
  0x66   : > { %v2659_v0 = vsel %vm239_vm1, %v1105_v55, 0.0  ;;  %v1278_v1 = vmul.f32 %v1270_v50, %v2545_v12  ;;  %v2664_v7 = vsel %vm239_vm1, %v1108_v58, 0.0  ;;  %v1280_v13 = vmul.f32 %v1272_v56, %v2543_v10  ;;  %v1453_v45 = vld [vmem:[#allocation3 + $0x1f0] sm:$0xff]  ;;  %v1625_v49 = vld [vmem:[#allocation3 + $0x208] sm:$0xff]  ;;  %v1624_v56 = vld [vmem:[#allocation3 + $0x200] sm:$0xff] }
  0x67   : > { %v2667_v9 = vsel %vm239_vm1, %v1107_v59, 0.0  ;;  %v2670_v11 = vsel %vm239_vm1, %v1279_v60, 0.0  ;;  %v1283_v23 = vmul.f32 %v1275_v61, %v2554_v21  ;;  %v1456_v34 = vmul.f32 %v1448_v6, %v2552_v19  ;;  %v1627_v58 = vld [vmem:[#allocation3 + $0x218] sm:$0xff]  ;;  %v1629_v6 = vld [vmem:[#allocation3 + $0x228] sm:$0xff] }
  0x68   : > { %v2675_v20 = vsel %vm239_vm1, %v1278_v1, 0.0  ;;  %v2684_v29 = vsel %vm239_vm1, %v1280_v13, 0.0  ;;  %v1455_v41 = vmul.f32 %v1447_v14, %v2545_v12  ;;  %v1457_v55 = vmul.f32 %v1449_v28, %v2543_v10  ;;  %v1626_v1 = vld [vmem:[#allocation3 + $0x210] sm:$0xff]  ;;  %v1628_v13 = vld [vmem:[#allocation3 + $0x220] sm:$0xff]  ;;  %v567_v14 = vld [vmem:[#allocation3 + $0xa8] sm:$0xff] }
  0x69   : > { %411 = vadd.xlane.f32.xlu1 %v410_v62  ;;  %408 = vadd.xlane.f32.xlu0 %v407_v63  ;;  %v1274_v62 = vld [vmem:[#allocation3 + $0x1a0] sm:$0xff]  ;;  %v2656_v63 = vsel %vm239_vm1, %v1106_v54, 0.0  ;;  %v2690_v39 = vsel %vm239_vm1, %v1283_v23, 0.0  ;;  %v2704_v54 = vsel %vm239_vm1, %v1456_v34, 0.0  ;;  %v1460_v61 = vmul.f32 %v1452_v35, %v2554_v21  ;;  %v1631_v28 = vld [vmem:[#allocation3 + $0x238] sm:$0xff] }
  0x6a   : > { %v1282_v24 = vmul.f32 %v1274_v62, %v2558_v25  ;;  %v2709_v59 = vsel %vm239_vm1, %v1455_v41, 0.0  ;;  %v1459_v62 = vmul.f32 %v1451_v36, %v2558_v25  ;;  %v1634_v41 = vmul.f32 %v1626_v1, %v2543_v10  ;;  %v569_v1 = vld [vmem:[#allocation3 + $0xb8] sm:$0xff] }
  0x6c   : > { %v2693_v40 = vsel %vm239_vm1, %v1282_v24, 0.0  ;;  %v2727_v23 = vsel %vm239_vm1, %v1459_v62, 0.0  ;;  %v1635_v24 = vmul.f32 %v1627_v58, %v2548_v15  ;;  %v1639_v58 = vmul.f32 %v1631_v28, %v2569_v42  ;;  %v739_v28 = vld [vmem:[#allocation3 + $0xc0] sm:$0xff] }
  0x6d   : > { %417 = vadd.xlane.f32.xlu1 %v416_v2  ;;  %414 = vadd.xlane.f32.xlu0 %v413_v3  ;;  %v1281_v2 = vmul.f32 %v1273_v51, %v2548_v15  ;;  %v1277_v3 = vld [vmem:[#allocation3 + $0x1b8] sm:$0xff] }
  0x6e   : > { %v1285_v30 = vmul.f32 %v1277_v3, %v2569_v42  ;;  %v1462_v3 = vmul.f32 %v1454_v43, %v2569_v42  ;;  %v2746_v43 = vsel %vm239_vm1, %v1635_v24, 0.0  ;;  %v740_v24 = vld [vmem:[#allocation3 + $0xc8] sm:$0xff] }
  0x6f   : > { %v2678_v22 = vsel %vm239_vm1, %v1281_v2, 0.0  ;;  %v2718_v2 = vsel %vm239_vm1, %v1457_v55, 0.0  ;;  %v575_v55 = vmul.f32 %v567_v14, %v2554_v21 }
  0x70   : > { %v2698_v50 = vsel %vm239_vm1, %v1285_v30, 0.0  ;;  %v1630_v30 = vld [vmem:[#allocation3 + $0x230] sm:$0xff]  ;;  %v2732_v34 = vsel %vm239_vm1, %v1462_v3, 0.0 }
  0x71   : > { %423 = vadd.xlane.f32.xlu1 %v2588_v4  ;;  %420 = vadd.xlane.f32.xlu0 %v2592_v8  ;;  %v1284_v4 = vmul.f32 %v1276_v5, %v2571_v44  ;;  %v1458_v8 = vmul.f32 %v1450_v16, %v2548_v15  ;;  %v1633_v5 = vmul.f32 %v1625_v49, %v2552_v19  ;;  %v2724_v16 = vsel %vm239_vm1, %v1460_v61, 0.0 }
  0x72   : > { %v1636_v49 = vmul.f32 %v1628_v13, %v2558_v25  ;;  %v584_v61 = vsel %vm239_vm1, %v2617_v32, 0.0  ;;  %v593_v32 = vsel %vm239_vm1, %v575_v55, 0.0  ;;  %v577_v13 = vmul.f32 %v569_v1, %v2569_v42  ;;  %v743_v1 = vld [vmem:[#allocation3 + $0xe0] sm:$0xff] }
  0x73   : > { %v2701_v51 = vsel %vm239_vm1, %v1284_v4, 0.0  ;;  %v2712_v60 = vsel %vm239_vm1, %v1458_v8, 0.0  ;;  %v566_v4 = vld [vmem:[#allocation3 + $0xa0] sm:$0xff]  ;;  %v2738_v36 = vsel %vm239_vm1, %v1633_v5, 0.0  ;;  %v2767_v5 = vsel %vm239_vm1, %v1639_v58, 0.0 }
  0x74   : > { %v574_v62 = vmul.f32 %v566_v4, %v2558_v25  ;;  %v748_v4 = vmul.f32 %v740_v24, %v2552_v19 }
  0x75   : > { %262 = vadd.xlane.f32.xlu1 %v2598_v17  ;;  %259 = vadd.xlane.f32.xlu0 %v2601_v18  ;;  %v1461_v17 = vmul.f32 %v1453_v45, %v2571_v44  ;;  %v1632_v18 = vmul.f32 %v1624_v56, %v2545_v12  ;;  %v1637_v45 = vmul.f32 %v1629_v6, %v2554_v21  ;;  %v2753_v56 = vsel %vm239_vm1, %v1634_v41, 0.0 }
  0x76   : > { %v590_v14 = vsel %vm239_vm1, %v574_v62, 0.0  ;;  %v758_v55 = vsel %vm239_vm1, %v748_v4, 0.0  ;;  %v744_v62 = vld [vmem:[#allocation3 + $0xe8] sm:$0xff] }
  0x77   : > { %v2735_v35 = vsel %vm239_vm1, %v1461_v17, 0.0  ;;  %v2743_v8 = vsel %vm239_vm1, %v1632_v18, 0.0  ;;  %v2761_v3 = vsel %vm239_vm1, %v1637_v45, 0.0  ;;  %v568_v17 = vld [vmem:[#allocation3 + $0xb0] sm:$0xff]  ;;  %v742_v45 = vld [vmem:[#allocation3 + $0xd8] sm:$0xff] }
  0x78   : > { %v576_v18 = vmul.f32 %v568_v17, %v2571_v44  ;;  %v750_v58 = vmul.f32 %v742_v45, %v2548_v15  ;;  %v922_v45 = vld [vmem:[#allocation3 + $0x130] sm:$0xff] }
  0x79   : > { %582 = vadd.xlane.f32.xlu1 %v2614_v31  ;;  %579 = vadd.xlane.f32.xlu0 %v2632_v46  ;;  %v1638_v31 = vmul.f32 %v1630_v30, %v2571_v44  ;;  %v2764_v46 = vsel %vm239_vm1, %v1636_v49, 0.0  ;;  %v599_v30 = vsel %vm239_vm1, %v577_v13, 0.0  ;;  %v741_v49 = vld [vmem:[#allocation3 + $0xd0] sm:$0xff]  ;;  %v751_v13 = vmul.f32 %v743_v1, %v2558_v25 }
  0x7a   : > { %v596_v41 = vsel %vm239_vm1, %v576_v18, 0.0  ;;  %v764_v17 = vsel %vm239_vm1, %v750_v58, 0.0  ;;  %v745_v18 = vld [vmem:[#allocation3 + $0xf0] sm:$0xff] }
  0x7b   : > { %v2770_v6 = vsel %vm239_vm1, %v1638_v31, 0.0  ;;  %v767_v24 = vsel %vm239_vm1, %v751_v13, 0.0 }
  0x7d   : > { %588 = vadd.xlane.f32.xlu1 %v2635_v47  ;;  %585 = vadd.xlane.f32.xlu0 %v584_v61  ;;  %v747_v47 = vmul.f32 %v739_v28, %v2545_v12  ;;  %v749_v61 = vmul.f32 %v741_v49, %v2543_v10  ;;  %v752_v12 = vmul.f32 %v744_v62, %v2554_v21 }
  0x7e   : > { %v753_v28 = vmul.f32 %v745_v18, %v2571_v44 }
  0x7f   : > { %v755_v31 = vsel %vm239_vm1, %v747_v47, 0.0  ;;  %v770_v15 = vsel %vm239_vm1, %v752_v12, 0.0  ;;  %v923_v47 = vld [vmem:[#allocation3 + $0x138] sm:$0xff] }
  0x80   : > { %v773_v25 = vsel %vm239_vm1, %v753_v28, 0.0  ;;  %v931_v49 = vmul.f32 %v923_v47, %v2569_v42 }
  0x81   : > { %594 = vadd.xlane.f32.xlu1 %v593_v32  ;;  %591 = vadd.xlane.f32.xlu0 %v590_v14  ;;  %v761_v32 = vsel %vm239_vm1, %v749_v61, 0.0  ;;  %v746_v14 = vld [vmem:[#allocation3 + $0xf8] sm:$0xff] }
  0x82   : > { %v754_v10 = vmul.f32 %v746_v14, %v2569_v42 }
  0x84   : > { %v776_v21 = vsel %vm239_vm1, %v754_v10, 0.0 }
  0x85   : > { %600 = vadd.xlane.f32.xlu1 %v599_v30  ;;  %597 = vadd.xlane.f32.xlu0 %v596_v41  ;;  %v917_v30 = vld [vmem:[#allocation3 + $0x108] sm:$0xff] }
  0x86   : > { %v925_v4 = vmul.f32 %v917_v30, %v2552_v19  ;;  %v953_v19 = vsel %vm239_vm1, %v931_v49, 0.0 }
  0x88   : > { %v935_v41 = vsel %vm239_vm1, %v925_v4, 0.0 }
  0x89   : > { %759 = vadd.xlane.f32.xlu1 %v758_v55  ;;  %756 = vadd.xlane.f32.xlu0 %v755_v31  ;;  %v930_v55 = vmul.f32 %v922_v45, %v2571_v44 }
  0x8b   : > { %v950_v58 = vsel %vm239_vm1, %v930_v55, 0.0 }
  0x8d   : > { %765 = vadd.xlane.f32.xlu1 %v764_v17  ;;  %762 = vadd.xlane.f32.xlu0 %v761_v32 }
  0x91   : > { %771 = vadd.xlane.f32.xlu1 %v770_v15  ;;  %768 = vadd.xlane.f32.xlu0 %v767_v24 }
  0x95   : > { %777 = vadd.xlane.f32.xlu1 %v776_v21  ;;  %774 = vadd.xlane.f32.xlu0 %v773_v25 }
  0x99   : > { %936 = vadd.xlane.f32.xlu1 %v935_v41  ;;  %933 = vadd.xlane.f32.xlu0 %v2606_v26 }
  0x9d   : > { %942 = vadd.xlane.f32.xlu1 %v2609_v27  ;;  %939 = vadd.xlane.f32.xlu0 %v2620_v33 }
  0xa1   : > { %948 = vadd.xlane.f32.xlu1 %v2624_v37  ;;  %945 = vadd.xlane.f32.xlu0 %v2627_v38 }
  0xa5   : > { %954 = vadd.xlane.f32.xlu1 %v953_v19  ;;  %951 = vadd.xlane.f32.xlu0 %v950_v58 }
  0xa9   : > { %1113 = vadd.xlane.f32.xlu1 %v2638_v48  ;;  %1110 = vadd.xlane.f32.xlu0 %v2642_v52 }
  0xad   : > { %1119 = vadd.xlane.f32.xlu1 %v2645_v53  ;;  %1116 = vadd.xlane.f32.xlu0 %v2650_v57 }
  0xb1   : > { %1125 = vadd.xlane.f32.xlu1 %v2656_v63  ;;  %1122 = vadd.xlane.f32.xlu0 %v2659_v0 }
  0xb5   : > { %1131 = vadd.xlane.f32.xlu1 %v2664_v7  ;;  %1128 = vadd.xlane.f32.xlu0 %v2667_v9 }
  0xb9   : > { %1290 = vadd.xlane.f32.xlu1 %v2670_v11  ;;  %1287 = vadd.xlane.f32.xlu0 %v2675_v20 }
  0xbd   : > { %1296 = vadd.xlane.f32.xlu1 %v2678_v22  ;;  %1293 = vadd.xlane.f32.xlu0 %v2684_v29 }
  0xc1   : > { %1302 = vadd.xlane.f32.xlu1 %v2690_v39  ;;  %1299 = vadd.xlane.f32.xlu0 %v2693_v40 }
  0xc5   : > { %1308 = vadd.xlane.f32.xlu1 %v2698_v50  ;;  %1305 = vadd.xlane.f32.xlu0 %v2701_v51 }
  0xc9   : > { %1467 = vadd.xlane.f32.xlu1 %v2704_v54  ;;  %1464 = vadd.xlane.f32.xlu0 %v2709_v59 }
  0xcd   : > { %1473 = vadd.xlane.f32.xlu1 %v2712_v60  ;;  %1470 = vadd.xlane.f32.xlu0 %v2718_v2 }
  0xd1   : > { %1479 = vadd.xlane.f32.xlu1 %v2724_v16  ;;  %1476 = vadd.xlane.f32.xlu0 %v2727_v23 }
  0xd5   : > { %1485 = vadd.xlane.f32.xlu1 %v2732_v34  ;;  %1482 = vadd.xlane.f32.xlu0 %v2735_v35 }
  0xd9   : > { %1644 = vadd.xlane.f32.xlu1 %v2738_v36  ;;  %1641 = vadd.xlane.f32.xlu0 %v2743_v8 }
  0xdd   : > { %1650 = vadd.xlane.f32.xlu1 %v2746_v43  ;;  %1647 = vadd.xlane.f32.xlu0 %v2753_v56 }
  0xe1   : > { %1656 = vadd.xlane.f32.xlu1 %v2761_v3  ;;  %1653 = vadd.xlane.f32.xlu0 %v2764_v46 }
  0xe2   : > { %v2836_v42 = vpop.xlane.xlu1 %247  ;;  %v2839_v26 = vpop.xlane.xlu0 %241 }
  0xe3   : > { %v274_v44 = vand.u32 2147483647, %v2836_v42  ;;  %v272_v27 = vand.u32 2147483647, %v2839_v26  ;;  %v266_v14 = vmin.f32 %v2836_v42, 0.0  ;;  %v264_v10 = vmin.f32 %v2839_v26, 0.0 }
  0xe5   : > { %v282_v33 = vsub.f32 0.0, %v274_v44  ;;  %1662 = vadd.xlane.f32.xlu1 %v2767_v5  ;;  %v280_v37 = vsub.f32 0.0, %v272_v27  ;;  %1659 = vadd.xlane.f32.xlu0 %v2770_v6 }
  0xe6   : > { %v2844_v38 = vpop.xlane.xlu1 %250  ;;  %v2847_v53 = vpop.xlane.xlu0 %244 }
  0xe7   : > { %v292_v48 = vmul.f32 1.442695, %v282_v33  ;;  %v275_v52 = vand.u32 2147483647, %v2844_v38  ;;  %v288_v57 = vmul.f32 1.442695, %v280_v37 }
  0xe8   : > { %v273_v63 = vand.u32 2147483647, %v2847_v53  ;;  %v267_v24 = vmin.f32 %v2844_v38, 0.0  ;;  %v265_v28 = vmin.f32 %v2847_v53, 0.0 }
  0xe9   : > { %1985 = vpow2.f32 %v292_v48  ;;  %v283_v0 = vsub.f32 0.0, %v275_v52 }
  0xea   : > { %1987 = vpow2.f32 %v288_v57  ;;  %v281_v7 = vsub.f32 0.0, %v273_v63  ;;  %v2850_v9 = vpop.xlane.xlu1 %256  ;;  %v2853_v22 = vpop.xlane.xlu0 %253 }
  0xeb   : > { %v294_v11 = vmul.f32 1.442695, %v283_v0  ;;  %v277_v20 = vand.u32 2147483647, %v2850_v9  ;;  %v276_v39 = vand.u32 2147483647, %v2853_v22 }
  0xec   : > { %v290_v29 = vmul.f32 1.442695, %v281_v7  ;;  %v269_v21 = vmin.f32 %v2850_v9, 0.0  ;;  %v268_v4 = vmin.f32 %v2853_v22, 0.0 }
  0xed   : > { %1989 = vpow2.f32 %v294_v11  ;;  %v285_v40 = vsub.f32 0.0, %v277_v20  ;;  %v284_v50 = vsub.f32 0.0, %v276_v39 }
  0xee   : > { %1991 = vpow2.f32 %v290_v29  ;;  %v406_v51 = vpop.xlane.xlu1 %405  ;;  %v403_v60 = vpop.xlane.xlu0 %402 }
  0xef   : > { %v298_v54 = vmul.f32 1.442695, %v285_v40  ;;  %v426_v59 = vsub.f32 0.0, %v406_v51  ;;  %v425_v2 = vsub.f32 0.0, %v403_v60  ;;  %v296_v23 = vmul.f32 1.442695, %v284_v50 }
  0xf1   : > { %v442_v16 = vand.u32 2147483647, %v426_v59  ;;  %1993 = vpow2.f32 %v298_v54  ;;  %v441_v34 = vand.u32 2147483647, %v425_v2  ;;  %v2874_v25 = vmin.f32 %v426_v59, 0.0 }
  0xf2   : > { %v412_v35 = vpop.xlane.xlu1 %411  ;;  %v409_v43 = vpop.xlane.xlu0 %408  ;;  %1995 = vpow2.f32 %v296_v23  ;;  %v2885_v44 = vmin.f32 %v425_v2, 0.0 }
  0xf3   : > { %v450_v36 = vsub.f32 0.0, %v442_v16  ;;  %v428_v8 = vsub.f32 0.0, %v412_v35  ;;  %v449_v56 = vsub.f32 0.0, %v441_v34  ;;  %v427_v3 = vsub.f32 0.0, %v409_v43 }
  0xf5   : > { %v459_v46 = vmul.f32 1.442695, %v450_v36  ;;  %v457_v6 = vmul.f32 1.442695, %v449_v56  ;;  %v444_v61 = vand.u32 2147483647, %v428_v8 }
  0xf6   : > { %v2856_v5 = vpop.eup %1985  ;;  %v443_v1 = vand.u32 2147483647, %v427_v3  ;;  %v2876_v41 = vpop.xlane.xlu1 %417  ;;  %v2887_v27 = vmin.f32 %v428_v8, 0.0  ;;  %v2891_v52 = vmin.f32 %v427_v3, 0.0 }
  0xf7   : > { %v2858_v31 = vpop.eup %1987  ;;  %1997 = vpow2.f32 %v459_v46  ;;  %v322_v62 = vadd.f32 1.0, %v2856_v5  ;;  %v452_v13 = vsub.f32 0.0, %v444_v61  ;;  %v325_v45 = vmul.f32 -0.5, %v2856_v5  ;;  %v2882_v19 = vpop.xlane.xlu0 %414 }
  0xf8   : > { %1999 = vpow2.f32 %v457_v6  ;;  %v304_v17 = vadd.f32 1.0, %v2858_v31  ;;  %v451_v15 = vsub.f32 0.0, %v443_v1  ;;  %v307_v49 = vmul.f32 -0.5, %v2858_v31 }
  0xf9   : > { %2001 = vlog2.f32 %v322_v62  ;;  %v463_v55 = vmul.f32 1.442695, %v452_v13  ;;  %v328_v37 = vand.u32 2147483647, %v2856_v5  ;;  %v430_v57 = vsub.f32 0.0, %v2876_v41 }
  0xfa   : > { %v2862_v12 = vpop.eup %1989  ;;  %2003 = vlog2.f32 %v304_v17  ;;  %v461_v33 = vmul.f32 1.442695, %v451_v15  ;;  %v310_v63 = vand.u32 2147483647, %v2858_v31  ;;  %v429_v7 = vsub.f32 0.0, %v2882_v19  ;;  %v2910_v34 = vpop.xlane.xlu1 %423 }
  0xfb   : > { %v2864_v32 = vpop.eup %1991  ;;  %v331_v30 = vadd.f32 1.0, %v2862_v12  ;;  %v334_v58 = vmul.f32 -0.5, %v2862_v12  ;;  %v326_v20 = vadd.f32 1.0, %v325_v45  ;;  %v308_v29 = vadd.f32 1.0, %v307_v49 }
  0xfc   : > { %v313_v18 = vadd.f32 1.0, %v2864_v32  ;;  %v316_v48 = vmul.f32 -0.5, %v2864_v32  ;;  %v446_v39 = vand.u32 2147483647, %v430_v57  ;;  %v319_v51 = vand.u32 2147483647, %v2864_v32 }
  0xfd   : > { %v335_v50 = vadd.f32 1.0, %v334_v58  ;;  %v445_v54 = vand.u32 2147483647, %v429_v7  ;;  %v2915_v43 = vmul.f32 %v2856_v5, %v326_v20  ;;  %vm2917_vm2 = vcmp.lt.f32.partialorder %v328_v37, 0.0004427343  ;;  %v2931_v5 = vpop.xlane.xlu0 %420 }
  0xfe   : > { %v2878_v47 = vpop.eup %1993  ;;  %2005 = vlog2.f32 %v313_v18  ;;  %v317_v60 = vadd.f32 1.0, %v316_v48  ;;  %v454_v23 = vsub.f32 0.0, %v446_v39  ;;  %v2923_v46 = vmul.f32 %v2858_v31, %v308_v29  ;;  %v2947_v37 = vpop.xlane.xlu1 %262 }
  0xff   : > { %2007 = vlog2.f32 %v331_v30  ;;  %v349_v0 = vadd.f32 1.0, %v2878_v47  ;;  %v2897_v11 = vpop.eup %1995  ;;  %v352_v2 = vmul.f32 -0.5, %v2878_v47  ;;  %v453_v8 = vsub.f32 0.0, %v445_v54 }
 0x100   : > { %2009 = vpow2.f32 %v463_v55  ;;  %v340_v35 = vadd.f32 1.0, %v2897_v11  ;;  %v343_v3 = vmul.f32 -0.5, %v2897_v11  ;;  %vm2925_vm3 = vcmp.lt.f32.partialorder %v310_v63, 0.0004427343 }
 0x101   : > { %2011 = vpow2.f32 %v461_v33  ;;  %v337_v61 = vand.u32 2147483647, %v2862_v12  ;;  %v355_v62 = vand.u32 2147483647, %v2878_v47  ;;  %v2934_v17 = vmul.f32 %v2862_v12, %v335_v50 }
 0x102   : > { %2013 = vlog2.f32 %v349_v0  ;;  %v353_v13 = vadd.f32 1.0, %v352_v2  ;;  %v467_v18 = vmul.f32 1.442695, %v454_v23  ;;  %v465_v15 = vmul.f32 1.442695, %v453_v8 }
 0x103   : > { %v2937_v30 = vmul.f32 %v2864_v32, %v317_v60  ;;  %vm2939_vm4 = vcmp.lt.f32.partialorder %v319_v51, 0.0004427343  ;;  %v432_v55 = vsub.f32 0.0, %v2910_v34  ;;  %v344_v58 = vadd.f32 1.0, %v343_v3 }
 0x104   : > { %v2901_v40 = vpop.eup %1997  ;;  %v431_v33 = vsub.f32 0.0, %v2931_v5  ;;  %vm2950_vm5 = vcmp.lt.f32.partialorder %v337_v61, 0.0004427343  ;;  %v2955_v39 = vmul.f32 %v2878_v47, %v353_v13  ;;  %v346_v50 = vand.u32 2147483647, %v2897_v11  ;;  %v2982_v13 = vpop.xlane.xlu0 %259 }
 0x105   : > { %v2906_v59 = vpop.eup %1999  ;;  %v482_v16 = vadd.f32 1.0, %v2901_v40  ;;  %v485_v49 = vmul.f32 -0.5, %v2901_v40  ;;  %v488_v63 = vand.u32 2147483647, %v2901_v40  ;;  %v448_v0 = vand.u32 2147483647, %v432_v55 }
 0x106   : > { %v473_v36 = vadd.f32 1.0, %v2906_v59  ;;  %v2002_v1 = vpop.eup %2001  ;;  %v476_v12 = vmul.f32 -0.5, %v2906_v59  ;;  %v447_v51 = vand.u32 2147483647, %v431_v33  ;;  %v479_v60 = vand.u32 2147483647, %v2906_v59 }
 0x107   : > { %2015 = vlog2.f32 %v482_v16  ;;  %v2004_v31 = vpop.eup %2003  ;;  %v324_v32 = vmul.f32 0.6931472, %v2002_v1  ;;  %v486_v54 = vadd.f32 1.0, %v485_v49  ;;  %v456_v2 = vsub.f32 0.0, %v448_v0 }
 0x108   : > { %2017 = vlog2.f32 %v473_v36  ;;  %v306_v20 = vmul.f32 0.6931472, %v2004_v31  ;;  %v279_v16 = vand.u32 2147483647, %v2947_v37  ;;  %v477_v36 = vadd.f32 1.0, %v476_v12  ;;  %v3024_v45 = vpop.xlane.xlu0 %579 }
 0x109   : > { %2019 = vlog2.f32 %v340_v35  ;;  %v2963_v35 = vmul.f32 %v2897_v11, %v344_v58  ;;  %v2967_v47 = vmin.f32 %v430_v57, 0.0  ;;  %v330_v3 = vsel %vm2917_vm2, %v2915_v43, %v324_v32  ;;  %v3000_v58 = vpop.xlane.xlu1 %582 }
 0x10a   : > { %2021 = vpow2.f32 %v467_v18  ;;  %vm2974_vm6 = vcmp.lt.f32.partialorder %v488_v63, 0.0004427343  ;;  %v2980_v1 = vmin.f32 %v429_v7, 0.0  ;;  %v455_v11 = vsub.f32 0.0, %v447_v51 }
 0x10b   : > { %v2006_v48 = vpop.eup %2005  ;;  %2023 = vpow2.f32 %v465_v15  ;;  %v312_v57 = vsel %vm2925_vm3, %v2923_v46, %v306_v20  ;;  %v471_v43 = vmul.f32 1.442695, %v456_v2  ;;  %v287_v18 = vsub.f32 0.0, %v279_v16 }
 0x10c   : > { %v2008_v23 = vpop.eup %2007  ;;  %v315_v34 = vmul.f32 0.6931472, %v2006_v48  ;;  %vm2990_vm7 = vcmp.lt.f32.partialorder %v355_v62, 0.0004427343  ;;  %v487_v19 = vmul.f32 %v2901_v40, %v486_v54  ;;  %vm2995_vm8 = vcmp.lt.f32.partialorder %v479_v60, 0.0004427343 }
 0x10d   : > { %v2969_v8 = vpop.eup %2009  ;;  %v333_v15 = vmul.f32 0.6931472, %v2008_v23  ;;  %v3004_v6 = vsub.f32 %v266_v14, %v330_v3  ;;  %v478_v12 = vmul.f32 %v2906_v59, %v477_v36  ;;  %v376_v48 = vsub.f32 %v264_v10, %v312_v57  ;;  %v3051_v57 = vpop.xlane.xlu1 %588 }
 0x10e   : > { %v2984_v41 = vpop.eup %2011  ;;  %v500_v56 = vadd.f32 1.0, %v2969_v8  ;;  %v321_v62 = vsel %vm2939_vm4, %v2937_v30, %v315_v34  ;;  %v3012_v32 = vmin.f32 %v432_v55, 0.0  ;;  %v469_v63 = vmul.f32 1.442695, %v455_v11 }
 0x10f   : > { %v491_v49 = vadd.f32 1.0, %v2984_v41  ;;  %v2014_v46 = vpop.eup %2013  ;;  %v302_v42 = vmul.f32 1.442695, %v287_v18  ;;  %v603_v14 = vsub.f32 0.0, %v3000_v58  ;;  %v339_v30 = vsel %vm2950_vm5, %v2934_v17, %v333_v15 }
 0x110   : > { %2025 = vlog2.f32 %v500_v56  ;;  %v377_v59 = vsub.f32 %v265_v28, %v321_v62  ;;  %vm3020_vm9 = vcmp.lt.f32.partialorder %v346_v50, 0.0004427343  ;;  %v351_v51 = vmul.f32 0.6931472, %v2014_v46 }
 0x111   : > { %2027 = vlog2.f32 %v491_v49  ;;  %v503_v60 = vmul.f32 -0.5, %v2969_v8  ;;  %v494_v29 = vmul.f32 -0.5, %v2984_v41  ;;  %v278_v50 = vand.u32 2147483647, %v2982_v13 }
 0x112   : > { %2029 = vpow2.f32 %v471_v43  ;;  %v619_v34 = vand.u32 2147483647, %v603_v14  ;;  %v602_v36 = vsub.f32 0.0, %v3024_v45  ;;  %v3048_v61 = vmin.f32 %v431_v33, 0.0 }
 0x113   : > { %2031 = vpow2.f32 %v469_v63  ;;  %v271_v11 = vmin.f32 %v2947_v37, 0.0  ;;  %v504_v18 = vadd.f32 1.0, %v503_v60  ;;  %v506_v15 = vand.u32 2147483647, %v2969_v8 }
 0x114   : > { %v2016_v40 = vpop.eup %2015  ;;  %2033 = vpow2.f32 %v302_v42  ;;  %v379_v5 = vsub.f32 %v267_v24, %v339_v30  ;;  %v495_v33 = vadd.f32 1.0, %v494_v29  ;;  %v627_v7 = vsub.f32 0.0, %v619_v34 }
 0x115   : > { %v2018_v0 = vpop.eup %2017  ;;  %v484_v20 = vmul.f32 0.6931472, %v2016_v40  ;;  %v618_v49 = vand.u32 2147483647, %v602_v36  ;;  %v497_v31 = vand.u32 2147483647, %v2984_v41 }
 0x116   : > { %v475_v10 = vmul.f32 0.6931472, %v2018_v0  ;;  %v2020_v55 = vpop.eup %2019  ;;  %v605_v62 = vsub.f32 0.0, %v3051_v57  ;;  %v636_v40 = vmul.f32 1.442695, %v627_v7  ;;  %v505_v0 = vmul.f32 %v2969_v8, %v504_v18 }
 0x117   : > { %v490_v54 = vsel %vm2974_vm6, %v487_v19, %v484_v20  ;;  %v3029_v17 = vpop.eup %2021  ;;  %v342_v56 = vmul.f32 0.6931472, %v2020_v55  ;;  %v286_v19 = vsub.f32 0.0, %v278_v50  ;;  %vm3077_vm10 = vcmp.lt.f32.partialorder %v506_v15, 0.0004427343 }
 0x118   : > { %v546_v53 = vsub.f32 %v2874_v25, %v490_v54  ;;  %v481_v28 = vsel %vm2995_vm8, %v478_v12, %v475_v10  ;;  %v3036_v2 = vpop.eup %2023  ;;  %v518_v23 = vadd.f32 1.0, %v3029_v17  ;;  %v521_v24 = vmul.f32 -0.5, %v3029_v17 }
 0x119   : > { %v545_v16 = vsub.f32 %v2885_v44, %v481_v28  ;;  %v509_v25 = vadd.f32 1.0, %v3036_v2  ;;  %v357_v44 = vsel %vm2990_vm7, %v2955_v39, %v351_v51  ;;  %v270_v39 = vmin.f32 %v2982_v13, 0.0 }
 0x11a   : > { %v3043_v3 = vadd.f32 %v546_v53, %v377_v59  ;;  %2035 = vlog2.f32 %v518_v23  ;;  %v300_v46 = vmul.f32 1.442695, %v286_v19  ;;  %v3068_v12 = vsub.f32 %v269_v21, %v357_v44  ;;  %v3081_v21 = vpop.xlane.xlu1 %594 }
 0x11b   : > { %v3056_v43 = vadd.f32 %v545_v16, %v376_v48  ;;  %2037 = vlog2.f32 %v509_v25  ;;  %v348_v38 = vsel %vm3020_vm9, %v2963_v35, %v342_v56  ;;  %v3074_v48 = vpop.xlane.xlu0 %585  ;;  %v626_v9 = vsub.f32 0.0, %v618_v49 }
 0x11c   : > { %2039 = vpow2.f32 %v300_v46  ;;  %v496_v35 = vmul.f32 %v2984_v41, %v495_v33  ;;  %v621_v59 = vand.u32 2147483647, %v605_v62  ;;  %vm498_vm11 = vcmp.lt.f32.partialorder %v497_v31, 0.0004427343 }
 0x11d   : > { %v2026_v63 = vpop.eup %2025  ;;  %2041 = vpow2.f32 %v636_v40  ;;  %v512_v8 = vmul.f32 -0.5, %v3036_v2  ;;  %v604_v55 = vsub.f32 0.0, %v3074_v48  ;;  %v522_v60 = vadd.f32 1.0, %v521_v24 }
 0x11e   : > { %v2028_v42 = vpop.eup %2027  ;;  %v502_v30 = vmul.f32 0.6931472, %v2026_v63  ;;  %v607_v53 = vsub.f32 0.0, %v3081_v21  ;;  %v634_v23 = vmul.f32 1.442695, %v626_v9  ;;  %v629_v44 = vsub.f32 0.0, %v621_v59 }
 0x11f   : > { %v3086_v26 = vpop.eup %2029  ;;  %v493_v10 = vmul.f32 0.6931472, %v2028_v42  ;;  %v524_v25 = vand.u32 2147483647, %v3029_v17  ;;  %v513_v18 = vadd.f32 1.0, %v512_v8  ;;  %v3107_v33 = vpop.xlane.xlu0 %591  ;;  %v523_v31 = vmul.f32 %v3029_v17, %v522_v60 }
 0x120   : > { %v3090_v51 = vpop.eup %2031  ;;  %v508_v54 = vsel %vm3077_vm10, %v505_v0, %v502_v30  ;;  %v536_v41 = vadd.f32 1.0, %v3086_v26  ;;  %v515_v15 = vand.u32 2147483647, %v3036_v2  ;;  %v620_v19 = vand.u32 2147483647, %v604_v55  ;;  %v3124_v17 = vpop.xlane.xlu1 %600 }
 0x121   : > { %v3096_v28 = vpop.eup %2033  ;;  %v548_v29 = vsub.f32 %v2887_v27, %v508_v54  ;;  %v499_v50 = vsel %vm498_vm11, %v496_v35, %v493_v10  ;;  %v527_v16 = vadd.f32 1.0, %v3090_v51  ;;  %v623_v7 = vand.u32 2147483647, %v607_v53 }
 0x122   : > { %v547_v34 = vsub.f32 %v2891_v52, %v499_v50  ;;  %2043 = vlog2.f32 %v536_v41  ;;  %v367_v52 = vadd.f32 1.0, %v3096_v28  ;;  %v3120_v46 = vmin.f32 %v603_v14, 0.0 }
 0x123   : > { %v3102_v56 = vadd.f32 %v548_v29, %v379_v5  ;;  %2045 = vlog2.f32 %v527_v16  ;;  %v380_v5 = vsub.f32 %v268_v4, %v348_v38  ;;  %v640_v40 = vmul.f32 1.442695, %v629_v44  ;;  %v3139_v8 = vpop.xlane.xlu0 %597 }
 0x124   : > { %v3110_v27 = vadd.f32 %v547_v34, %v3004_v6  ;;  %2047 = vpow2.f32 %v634_v23  ;;  %v606_v63 = vsub.f32 0.0, %v3107_v33  ;;  %vm525_vm12 = vcmp.lt.f32.partialorder %v524_v25, 0.0004427343 }
 0x125   : > { %2049 = vlog2.f32 %v367_v52  ;;  %v514_v20 = vmul.f32 %v3036_v2, %v513_v18  ;;  %v628_v9 = vsub.f32 0.0, %v620_v19  ;;  %vm516_vm13 = vcmp.lt.f32.partialorder %v515_v15, 0.0004427343 }
 0x126   : > { %2051 = vpow2.f32 %v640_v40  ;;  %v631_v4 = vsub.f32 0.0, %v623_v7  ;;  %v539_v38 = vmul.f32 -0.5, %v3086_v26  ;;  %v3130_v42 = vmin.f32 %v602_v36, 0.0 }
 0x127   : > { %v2036_v49 = vpop.eup %2035  ;;  %v530_v35 = vmul.f32 -0.5, %v3090_v51  ;;  %v370_v59 = vmul.f32 -0.5, %v3096_v28  ;;  %v622_v10 = vand.u32 2147483647, %v606_v63  ;;  %v638_v36 = vmul.f32 1.442695, %v628_v9 }
 0x128   : > { %v2038_v24 = vpop.eup %2037  ;;  %v520_v6 = vmul.f32 0.6931472, %v2036_v49  ;;  %v609_v60 = vsub.f32 0.0, %v3124_v17  ;;  %v542_v41 = vand.u32 2147483647, %v3086_v26  ;;  %v3154_v16 = vmin.f32 %v605_v62, 0.0 }
 0x129   : > { %v511_v0 = vmul.f32 0.6931472, %v2038_v24  ;;  %v3132_v30 = vpop.eup %2039  ;;  %v644_v50 = vmul.f32 1.442695, %v631_v4  ;;  %v630_v23 = vsub.f32 0.0, %v622_v10  ;;  %v540_v34 = vadd.f32 1.0, %v539_v38 }
 0x12a   : > { %v526_v22 = vsel %vm525_vm12, %v523_v31, %v520_v6  ;;  %v358_v45 = vadd.f32 1.0, %v3132_v30  ;;  %v531_v25 = vadd.f32 1.0, %v530_v35  ;;  %v373_v44 = vand.u32 2147483647, %v3096_v28  ;;  %v3171_v6 = vpop.xlane.xlu1 %759  ;;  %v3189_v35 = vpop.xlane.xlu0 %756 }
 0x12b   : > { %v550_v58 = vsub.f32 %v2967_v47, %v526_v22  ;;  %v517_v14 = vsel %vm516_vm13, %v514_v20, %v511_v0  ;;  %v3141_v47 = vpop.eup %2041  ;;  %v371_v15 = vadd.f32 1.0, %v370_v59  ;;  %v642_v19 = vmul.f32 1.442695, %v630_v23 }
 0x12c   : > { %v549_v2 = vsub.f32 %v2980_v1, %v517_v14  ;;  %v659_v29 = vadd.f32 1.0, %v3141_v47  ;;  %2053 = vlog2.f32 %v358_v45  ;;  %v625_v52 = vand.u32 2147483647, %v609_v60 }
 0x12d   : > { %v3144_v54 = vadd.f32 %v550_v58, %v3068_v12  ;;  %v608_v12 = vsub.f32 0.0, %v3139_v8  ;;  %vm3160_vm14 = vcmp.lt.f32.partialorder %v542_v41, 0.0004427343  ;;  %v3166_v62 = vmin.f32 %v604_v55, 0.0 }
 0x12e   : > { %v3148_v1 = vadd.f32 %v549_v2, %v380_v5  ;;  %2055 = vlog2.f32 %v659_v29  ;;  %v533_v5 = vand.u32 2147483647, %v3090_v51  ;;  %v633_v31 = vsub.f32 0.0, %v625_v52 }
 0x12f   : > { %v2044_v18 = vpop.eup %2043  ;;  %2057 = vpow2.f32 %v638_v36  ;;  %v624_v24 = vand.u32 2147483647, %v608_v12  ;;  %v541_v0 = vmul.f32 %v3086_v26, %v540_v34  ;;  %v532_v20 = vmul.f32 %v3090_v51, %v531_v25 }
 0x130   : > { %v538_v7 = vmul.f32 0.6931472, %v2044_v18  ;;  %2059 = vpow2.f32 %v644_v50  ;;  %v2046_v49 = vpop.eup %2045  ;;  %v361_v48 = vmul.f32 -0.5, %v3132_v30  ;;  %v662_v55 = vmul.f32 -0.5, %v3141_v47 }
 0x131   : > { %2061 = vpow2.f32 %v642_v19  ;;  %v3173_v40 = vpop.eup %2047  ;;  %v372_v22 = vmul.f32 %v3096_v28, %v371_v15  ;;  %vm3180_vm15 = vcmp.lt.f32.partialorder %v373_v44, 0.0004427343  ;;  %v364_v58 = vand.u32 2147483647, %v3132_v30 }
 0x132   : > { %v2050_v9 = vpop.eup %2049  ;;  %v650_v14 = vadd.f32 1.0, %v3173_v40  ;;  %v544_v26 = vsel %vm3160_vm14, %v541_v0, %v538_v7  ;;  %v648_v51 = vmul.f32 1.442695, %v633_v31  ;;  %v780_v2 = vsub.f32 0.0, %v3171_v6 }
 0x133   : > { %v369_v38 = vmul.f32 0.6931472, %v2050_v9  ;;  %v3191_v59 = vpop.eup %2051  ;;  %v529_v28 = vmul.f32 0.6931472, %v2046_v49  ;;  %v665_v10 = vand.u32 2147483647, %v3141_v47  ;;  %v552_v23 = vsub.f32 %v3012_v32, %v544_v26 }
 0x134   : > { %2063 = vlog2.f32 %v650_v14  ;;  %v632_v45 = vsub.f32 0.0, %v624_v24  ;;  %v362_v41 = vadd.f32 1.0, %v361_v48  ;;  %v663_v29 = vadd.f32 1.0, %v662_v55 }
 0x135   : > { %v375_v36 = vsel %vm3180_vm15, %v372_v22, %v369_v38  ;;  %v677_v50 = vadd.f32 1.0, %v3191_v59  ;;  %2065 = vpow2.f32 %v648_v51  ;;  %v779_v25 = vsub.f32 0.0, %v3189_v35  ;;  %v3238_v51 = vpop.xlane.xlu0 %762 }
 0x136   : > { %v383_v34 = vsub.f32 %v271_v11, %v375_v36  ;;  %vm3201_vm0 = vcmp.lt.f32.partialorder %v533_v5, 0.0004427343  ;;  %v646_v18 = vmul.f32 1.442695, %v632_v45  ;;  %v796_v15 = vand.u32 2147483647, %v780_v2  ;;  %v3216_v11 = vpop.xlane.xlu1 %765 }
 0x137   : > { %2067 = vlog2.f32 %v677_v50  ;;  %v535_v19 = vsel %vm3201_vm0, %v532_v20, %v529_v28  ;;  %vm3211_vm1 = vcmp.lt.f32.partialorder %v364_v58, 0.0004427343  ;;  %v653_v32 = vmul.f32 -0.5, %v3173_v40 }
 0x138   : > { %v3209_v52 = vadd.f32 %v552_v23, %v383_v34  ;;  %v363_v57 = vmul.f32 %v3132_v30, %v362_v41  ;;  %vm3219_vm2 = vcmp.lt.f32.partialorder %v665_v10, 0.0004427343  ;;  %2069 = vpow2.f32 %v646_v18 }
 0x139   : > { %v2054_v7 = vpop.eup %2053  ;;  %v804_v5 = vsub.f32 0.0, %v796_v15  ;;  %v664_v0 = vmul.f32 %v3141_v47, %v663_v29  ;;  %v680_v20 = vmul.f32 -0.5, %v3191_v59  ;;  %v795_v48 = vand.u32 2147483647, %v779_v25 }
 0x13a   : > { %v360_v24 = vmul.f32 0.6931472, %v2054_v7  ;;  %v551_v9 = vsub.f32 %v3048_v61, %v535_v19  ;;  %v656_v22 = vand.u32 2147483647, %v3173_v40  ;;  %v782_v4 = vsub.f32 0.0, %v3216_v11  ;;  %v3265_v15 = vpop.xlane.xlu1 %771 }
 0x13b   : > { %v2056_v31 = vpop.eup %2055  ;;  %v654_v47 = vadd.f32 1.0, %v653_v32  ;;  %v683_v26 = vand.u32 2147483647, %v3191_v59  ;;  %v813_v36 = vmul.f32 1.442695, %v804_v5  ;;  %v681_v29 = vadd.f32 1.0, %v680_v20  ;;  %v3288_v20 = vpop.xlane.xlu0 %768 }
 0x13c   : > { %v3227_v55 = vpop.eup %2057  ;;  %v661_v30 = vmul.f32 0.6931472, %v2056_v31  ;;  %v366_v14 = vsel %vm3211_vm1, %v363_v57, %v360_v24  ;;  %v803_v50 = vsub.f32 0.0, %v795_v48  ;;  %v798_v34 = vand.u32 2147483647, %v782_v4 }
 0x13d   : > { %v3232_v58 = vpop.eup %2059  ;;  %v668_v38 = vadd.f32 1.0, %v3227_v55  ;;  %v382_v61 = vsub.f32 %v270_v39, %v366_v14  ;;  %v781_v13 = vsub.f32 0.0, %v3238_v51  ;;  %v3258_v44 = vmin.f32 %v607_v53, 0.0 }
 0x13e   : > { %v3240_v28 = vpop.eup %2061  ;;  %v667_v10 = vsel %vm3219_vm2, %v664_v0, %v661_v30  ;;  %v695_v45 = vadd.f32 1.0, %v3232_v58  ;;  %v655_v37 = vmul.f32 %v3173_v40, %v654_v47  ;;  %vm3268_vm3 = vcmp.lt.f32.partialorder %v656_v22, 0.0004427343 }
 0x13f   : > { %v723_v41 = vsub.f32 %v3120_v46, %v667_v10  ;;  %2071 = vlog2.f32 %v668_v38  ;;  %v3248_v23 = vadd.f32 %v551_v9, %v382_v61  ;;  %v3262_v46 = vmin.f32 %v606_v63, 0.0 }
 0x140   : > { %2073 = vlog2.f32 %v695_v45  ;;  %v686_v18 = vadd.f32 1.0, %v3240_v28  ;;  %vm3272_vm4 = vcmp.lt.f32.partialorder %v683_v26, 0.0004427343  ;;  %v682_v53 = vmul.f32 %v3191_v59, %v681_v29 }
 0x141   : > { %v3254_v39 = vadd.f32 %v723_v41, %v3043_v3  ;;  %v2064_v19 = vpop.eup %2063  ;;  %2075 = vpow2.f32 %v813_v36  ;;  %v811_v33 = vmul.f32 1.442695, %v803_v50  ;;  %v671_v7 = vmul.f32 -0.5, %v3227_v55 }
 0x142   : > { %v652_v21 = vmul.f32 0.6931472, %v2064_v19  ;;  %2077 = vlog2.f32 %v686_v18  ;;  %v3277_v63 = vpop.eup %2065  ;;  %v806_v57 = vsub.f32 0.0, %v798_v34  ;;  %v797_v40 = vand.u32 2147483647, %v781_v13  ;;  %v3310_v18 = vpop.xlane.xlu1 %777 }
 0x143   : > { %v784_v49 = vsub.f32 0.0, %v3265_v15  ;;  %v674_v24 = vand.u32 2147483647, %v3227_v55  ;;  %v698_v59 = vmul.f32 -0.5, %v3232_v58  ;;  %v713_v0 = vadd.f32 1.0, %v3277_v63 }
 0x144   : > { %v2068_v5 = vpop.eup %2067  ;;  %v658_v31 = vsel %vm3268_vm3, %v655_v37, %v652_v21  ;;  %v701_v30 = vand.u32 2147483647, %v3232_v58  ;;  %2079 = vpow2.f32 %v811_v33  ;;  %v689_v14 = vmul.f32 -0.5, %v3240_v28 }
 0x145   : > { %v722_v48 = vsub.f32 %v3130_v42, %v658_v31  ;;  %v679_v9 = vmul.f32 0.6931472, %v2068_v5  ;;  %v3292_v22 = vpop.eup %2069  ;;  %2081 = vlog2.f32 %v713_v0  ;;  %v817_v47 = vmul.f32 1.442695, %v806_v57 }
 0x146   : > { %v805_v26 = vsub.f32 0.0, %v797_v40  ;;  %v704_v10 = vadd.f32 1.0, %v3292_v22  ;;  %v783_v42 = vsub.f32 0.0, %v3288_v20  ;;  %v672_v36 = vadd.f32 1.0, %v671_v7 }
 0x147   : > { %v3296_v38 = vadd.f32 %v722_v48, %v3056_v43  ;;  %v685_v61 = vsel %vm3272_vm4, %v682_v53, %v679_v9  ;;  %vm3303_vm5 = vcmp.lt.f32.partialorder %v674_v24, 0.0004427343  ;;  %v692_v29 = vand.u32 2147483647, %v3240_v28 }
 0x148   : > { %v725_v45 = vsub.f32 %v3154_v16, %v685_v61  ;;  %v699_v50 = vadd.f32 1.0, %v698_v59  ;;  %2083 = vlog2.f32 %v704_v10  ;;  %v815_v43 = vmul.f32 1.442695, %v805_v26 }
 0x149   : > { %v800_v34 = vand.u32 2147483647, %v784_v49  ;;  %vm3315_vm6 = vcmp.lt.f32.partialorder %v701_v30, 0.0004427343  ;;  %v690_v37 = vadd.f32 1.0, %v689_v14  ;;  %2085 = vpow2.f32 %v817_v47  ;;  %v3337_v14 = vpop.xlane.xlu0 %774 }
 0x14a   : > { %v3313_v19 = vadd.f32 %v725_v45, %v3102_v56  ;;  %v716_v3 = vmul.f32 -0.5, %v3277_v63  ;;  %2087 = vpow2.f32 %v815_v43  ;;  %v799_v53 = vand.u32 2147483647, %v783_v42 }
 0x14b   : > { %v808_v21 = vsub.f32 0.0, %v800_v34  ;;  %v673_v57 = vmul.f32 %v3227_v55, %v672_v36  ;;  %vm3323_vm7 = vcmp.lt.f32.partialorder %v692_v29, 0.0004427343  ;;  %v786_v40 = vsub.f32 0.0, %v3310_v18 }
 0x14c   : > { %v2072_v32 = vpop.eup %2071  ;;  %v700_v31 = vmul.f32 %v3232_v58, %v699_v50  ;;  %v807_v59 = vsub.f32 0.0, %v799_v53  ;;  %v691_v9 = vmul.f32 %v3240_v28, %v690_v37  ;;  %v707_v55 = vmul.f32 -0.5, %v3292_v22 }
 0x14d   : > { %v2074_v33 = vpop.eup %2073  ;;  %v670_v7 = vmul.f32 0.6931472, %v2072_v32  ;;  %v821_v24 = vmul.f32 1.442695, %v808_v21  ;;  %v802_v30 = vand.u32 2147483647, %v786_v40 }
 0x14e   : > { %v697_v5 = vmul.f32 0.6931472, %v2074_v33  ;;  %v3329_v0 = vpop.eup %2075  ;;  %v717_v61 = vadd.f32 1.0, %v716_v3  ;;  %v719_v28 = vand.u32 2147483647, %v3277_v63  ;;  %v785_v50 = vsub.f32 0.0, %v3337_v14 }
 0x14f   : > { %v676_v48 = vsel %vm3303_vm5, %v673_v57, %v670_v7  ;;  %v2078_v47 = vpop.eup %2077  ;;  %v836_v10 = vadd.f32 1.0, %v3329_v0  ;;  %2089 = vpow2.f32 %v821_v24  ;;  %v819_v29 = vmul.f32 1.442695, %v807_v59  ;;  %v3367_v57 = vpop.xlane.xlu1 %936 }
 0x150   : > { %v724_v26 = vsub.f32 %v3166_v62, %v676_v48  ;;  %v703_v58 = vsel %vm3315_vm6, %v700_v31, %v697_v5  ;;  %v688_v36 = vmul.f32 0.6931472, %v2078_v47  ;;  %v810_v16 = vsub.f32 0.0, %v802_v30 }
 0x151   : > { %v727_v45 = vsub.f32 %v3258_v44, %v703_v58  ;;  %2091 = vlog2.f32 %v836_v10  ;;  %v3349_v62 = vpop.eup %2079  ;;  %v708_v44 = vadd.f32 1.0, %v707_v55  ;;  %v718_v3 = vmul.f32 %v3277_v63, %v717_v61 }
 0x152   : > { %v3346_v41 = vadd.f32 %v724_v26, %v3110_v27  ;;  %v694_v34 = vsel %vm3323_vm7, %v691_v9, %v688_v36  ;;  %v2082_v37 = vpop.eup %2081  ;;  %v617_v27 = vmin.f32 %v609_v60, 0.0  ;;  %v827_v21 = vadd.f32 1.0, %v3349_v62 }
 0x153   : > { %v3352_v43 = vadd.f32 %v727_v45, %v3144_v54  ;;  %v726_v32 = vsub.f32 %v3262_v46, %v694_v34  ;;  %v715_v53 = vmul.f32 0.6931472, %v2082_v37  ;;  %v710_v33 = vand.u32 2147483647, %v3292_v22  ;;  %v3383_v10 = vpop.xlane.xlu1 %942 }
 0x154   : > { %2093 = vpow2.f32 %v819_v29  ;;  %v825_v54 = vmul.f32 1.442695, %v810_v16  ;;  %vm720_vm8 = vcmp.lt.f32.partialorder %v719_v28, 0.0004427343  ;;  %v801_v46 = vand.u32 2147483647, %v785_v50  ;;  %v3396_v29 = vpop.xlane.xlu0 %933 }
 0x155   : > { %v3363_v7 = vadd.f32 %v726_v32, %v3148_v1  ;;  %2095 = vlog2.f32 %v827_v21  ;;  %v2084_v17 = vpop.eup %2083  ;;  %v721_v60 = vsel %vm720_vm8, %v718_v3, %v715_v53  ;;  %v709_v63 = vmul.f32 %v3292_v22, %v708_v44 }
 0x156   : > { %2097 = vpow2.f32 %v825_v54  ;;  %v3370_v56 = vpop.eup %2085  ;;  %v729_v5 = vsub.f32 %v617_v27, %v721_v60  ;;  %v706_v31 = vmul.f32 0.6931472, %v2084_v17  ;;  %v839_v24 = vmul.f32 -0.5, %v3329_v0 }
 0x157   : > { %v809_v1 = vsub.f32 0.0, %v801_v46  ;;  %v3373_v59 = vpop.eup %2087  ;;  %v616_v48 = vmin.f32 %v608_v12, 0.0  ;;  %vm711_vm9 = vcmp.lt.f32.partialorder %v710_v33, 0.0004427343  ;;  %v854_v9 = vadd.f32 1.0, %v3370_v56 }
 0x158   : > { %v3379_v55 = vadd.f32 %v729_v5, %v3209_v52  ;;  %v712_v22 = vsel %vm711_vm9, %v709_v63, %v706_v31  ;;  %v845_v30 = vadd.f32 1.0, %v3373_v59  ;;  %v830_v26 = vmul.f32 -0.5, %v3349_v62 }
 0x159   : > { %v728_v47 = vsub.f32 %v616_v48, %v712_v22  ;;  %2099 = vlog2.f32 %v854_v9  ;;  %v840_v58 = vadd.f32 1.0, %v839_v24  ;;  %v823_v61 = vmul.f32 1.442695, %v809_v1 }
 0x15a   : > { %2101 = vlog2.f32 %v845_v30  ;;  %v842_v12 = vand.u32 2147483647, %v3329_v0  ;;  %v788_v52 = vmin.f32 %v780_v2, 0.0  ;;  %v787_v36 = vmin.f32 %v779_v25, 0.0  ;;  %v3439_v30 = vpop.xlane.xlu1 %948 }
 0x15b   : > { %v3386_v8 = vadd.f32 %v728_v47, %v3248_v23  ;;  %2103 = vpow2.f32 %v823_v61  ;;  %v957_v28 = vsub.f32 0.0, %v3367_v57  ;;  %v831_v44 = vadd.f32 1.0, %v830_v26 }
 0x15c   : > { %v3389_v45 = vpop.eup %2089  ;;  %v790_v23 = vmin.f32 %v782_v4, 0.0  ;;  %v959_v37 = vsub.f32 0.0, %v3383_v10  ;;  %v841_v6 = vmul.f32 %v3329_v0, %v840_v58  ;;  %v857_v2 = vmul.f32 -0.5, %v3370_v56 }
 0x15d   : > { %v872_v16 = vadd.f32 1.0, %v3389_v45  ;;  %v848_v35 = vmul.f32 -0.5, %v3373_v59  ;;  %vm843_vm10 = vcmp.lt.f32.partialorder %v842_v12, 0.0004427343  ;;  %v833_v25 = vand.u32 2147483647, %v3349_v62 }
 0x15e   : > { %v2092_v34 = vpop.eup %2091  ;;  %v789_v27 = vmin.f32 %v781_v13, 0.0  ;;  %v860_v3 = vand.u32 2147483647, %v3370_v56  ;;  %v3413_v21 = vmin.f32 %v784_v49, 0.0  ;;  %v973_v0 = vand.u32 2147483647, %v957_v28  ;;  %v3424_v49 = vpop.xlane.xlu0 %939 }
 0x15f   : > { %v838_v32 = vmul.f32 0.6931472, %v2092_v34  ;;  %2105 = vlog2.f32 %v872_v16  ;;  %v832_v54 = vmul.f32 %v3349_v62, %v831_v44  ;;  %v975_v13 = vand.u32 2147483647, %v959_v37 }
 0x160   : > { %v858_v60 = vadd.f32 1.0, %v857_v2  ;;  %v849_v63 = vadd.f32 1.0, %v848_v35  ;;  %v851_v15 = vand.u32 2147483647, %v3373_v59  ;;  %vm834_vm11 = vcmp.lt.f32.partialorder %v833_v25, 0.0004427343 }
 0x161   : > { %v3408_v11 = vpop.eup %2093  ;;  %v844_v4 = vsel %vm843_vm10, %v841_v6, %v838_v32  ;;  %vm3430_vm12 = vcmp.lt.f32.partialorder %v860_v3, 0.0004427343  ;;  %v3436_v1 = vmin.f32 %v783_v42, 0.0  ;;  %v981_v48 = vsub.f32 0.0, %v973_v0 }
 0x162   : > { %v2096_v53 = vpop.eup %2095  ;;  %v900_v33 = vsub.f32 %v788_v52, %v844_v4  ;;  %v863_v51 = vadd.f32 1.0, %v3408_v11  ;;  %v875_v22 = vmul.f32 -0.5, %v3389_v45  ;;  %v859_v26 = vmul.f32 %v3370_v56, %v858_v60  ;;  %v3456_v32 = vpop.xlane.xlu0 %945 }
 0x163   : > { %v3421_v46 = vpop.eup %2097  ;;  %v829_v17 = vmul.f32 0.6931472, %v2096_v53  ;;  %v850_v58 = vmul.f32 %v3373_v59, %v849_v63  ;;  %vm3443_vm13 = vcmp.lt.f32.partialorder %v851_v15, 0.0004427343  ;;  %v956_v20 = vsub.f32 0.0, %v3396_v29 }
 0x164   : > { %v3427_v5 = vadd.f32 %v900_v33, %v3254_v39  ;;  %2107 = vlog2.f32 %v863_v51  ;;  %v890_v62 = vadd.f32 1.0, %v3421_v46  ;;  %v983_v39 = vsub.f32 0.0, %v975_v13  ;;  %v3471_v13 = vpop.xlane.xlu1 %954 }
 0x165   : > { %v835_v31 = vsel %vm834_vm11, %v832_v54, %v829_v17  ;;  %v866_v16 = vmul.f32 -0.5, %v3408_v11  ;;  %v3453_v56 = vmul.f32 1.442695, %v981_v48  ;;  %v961_v59 = vsub.f32 0.0, %v3439_v30 }
 0x166   : > { %v899_v9 = vsub.f32 %v787_v36, %v835_v31  ;;  %2109 = vlog2.f32 %v890_v62  ;;  %v2100_v47 = vpop.eup %2099  ;;  %v878_v36 = vand.u32 2147483647, %v3389_v45  ;;  %v994_v34 = vmul.f32 1.442695, %v983_v39 }
 0x167   : > { %v2102_v42 = vpop.eup %2101  ;;  %v856_v52 = vmul.f32 0.6931472, %v2100_v47  ;;  %v893_v35 = vmul.f32 -0.5, %v3421_v46  ;;  %v958_v0 = vsub.f32 0.0, %v3424_v49  ;;  %v869_v33 = vand.u32 2147483647, %v3408_v11 }
 0x168   : > { %v3449_v12 = vadd.f32 %v899_v9, %v3296_v38  ;;  %v847_v44 = vmul.f32 0.6931472, %v2102_v42  ;;  %v3458_v6 = vpop.eup %2103  ;;  %v876_v38 = vadd.f32 1.0, %v875_v22  ;;  %2111 = vpow2.f32 %v994_v34 }
 0x169   : > { %v862_v2 = vsel %vm3430_vm12, %v859_v26, %v856_v52  ;;  %v881_v3 = vadd.f32 1.0, %v3458_v6  ;;  %v972_v54 = vand.u32 2147483647, %v956_v20  ;;  %v960_v51 = vsub.f32 0.0, %v3456_v32 }
 0x16a   : > { %v902_v25 = vsub.f32 %v790_v23, %v862_v2  ;;  %v853_v4 = vsel %vm3443_vm13, %v850_v58, %v847_v44  ;;  %v867_v60 = vadd.f32 1.0, %v866_v16  ;;  %v977_v63 = vand.u32 2147483647, %v961_v59 }
 0x16b   : > { %v901_v53 = vsub.f32 %v789_v27, %v853_v4  ;;  %2113 = vlog2.f32 %v881_v3  ;;  %v877_v62 = vmul.f32 %v3389_v45, %v876_v38  ;;  %v894_v31 = vadd.f32 1.0, %v893_v35 }
 0x16c   : > { %v2106_v17 = vpop.eup %2105  ;;  %v3474_v23 = vadd.f32 %v902_v25, %v3313_v19  ;;  %vm879_vm14 = vcmp.lt.f32.partialorder %v878_v36, 0.0004427343  ;;  %v794_v24 = vmin.f32 %v786_v40, 0.0  ;;  %v974_v19 = vand.u32 2147483647, %v958_v0  ;;  %v3497_v36 = vpop.xlane.xlu0 %951 }
 0x16d   : > { %v3479_v27 = vadd.f32 %v901_v53, %v3346_v41  ;;  %v874_v15 = vmul.f32 0.6931472, %v2106_v17  ;;  %v963_v48 = vsub.f32 0.0, %v3471_v13  ;;  %v980_v22 = vsub.f32 0.0, %v972_v54 }
 0x16e   : > { %v985_v39 = vsub.f32 0.0, %v977_v63  ;;  %v976_v41 = vand.u32 2147483647, %v960_v51  ;;  %v868_v45 = vmul.f32 %v3408_v11, %v867_v60  ;;  %vm3491_vm15 = vcmp.lt.f32.partialorder %v869_v33, 0.0004427343 }
 0x16f   : > { %v880_v9 = vsel %vm879_vm14, %v877_v62, %v874_v15  ;;  %v896_v18 = vand.u32 2147483647, %v3421_v46  ;;  %v895_v61 = vmul.f32 %v3421_v46, %v894_v31  ;;  %v982_v11 = vsub.f32 0.0, %v974_v19 }
 0x170   : > { %v904_v26 = vsub.f32 %v3413_v21, %v880_v9  ;;  %v998_v42 = vmul.f32 1.442695, %v985_v39  ;;  %v984_v52 = vsub.f32 0.0, %v976_v41  ;;  %v884_v21 = vmul.f32 -0.5, %v3458_v6  ;;  %v3522_v41 = vpop.xlane.xlu1 %1113 }
 0x171   : > { %v2108_v47 = vpop.eup %2107  ;;  %v979_v16 = vand.u32 2147483647, %v963_v48  ;;  %vm897_vm0 = vcmp.lt.f32.partialorder %v896_v18, 0.0004427343  ;;  %v988_v25 = vmul.f32 1.442695, %v980_v22 }
 0x172   : > { %v865_v40 = vmul.f32 0.6931472, %v2108_v47  ;;  %v3500_v44 = vadd.f32 %v904_v26, %v3352_v43  ;;  %2115 = vpow2.f32 %v998_v42  ;;  %v996_v46 = vmul.f32 1.442695, %v984_v52 }
 0x173   : > { %v2110_v34 = vpop.eup %2109  ;;  %v962_v4 = vsub.f32 0.0, %v3497_v36  ;;  %v987_v3 = vsub.f32 0.0, %v979_v16  ;;  %v885_v17 = vadd.f32 1.0, %v884_v21  ;;  %v887_v60 = vand.u32 2147483647, %v3458_v6 }
 0x174   : > { %v871_v2 = vsel %vm3491_vm15, %v868_v45, %v865_v40  ;;  %v892_v38 = vmul.f32 0.6931472, %v2110_v34  ;;  %2117 = vpow2.f32 %v996_v46  ;;  %v992_v15 = vmul.f32 1.442695, %v982_v11  ;;  %v3527_v45 = vpop.xlane.xlu0 %1110 }
 0x175   : > { %v903_v35 = vsub.f32 %v3436_v1, %v871_v2  ;;  %v2112_v53 = vpop.eup %2111  ;;  %2119 = vpow2.f32 %v3453_v56  ;;  %v1002_v62 = vmul.f32 1.442695, %v987_v3  ;;  %v978_v31 = vand.u32 2147483647, %v962_v4 }
 0x176   : > { %v898_v43 = vsel %vm897_vm0, %v895_v61, %v892_v38  ;;  %v1031_v63 = vadd.f32 1.0, %v2112_v53  ;;  %2121 = vpow2.f32 %v988_v25  ;;  %v793_v56 = vmin.f32 %v785_v50, 0.0  ;;  %v3536_v61 = vpop.xlane.xlu1 %1119 }
 0x177   : > { %v3510_v33 = vadd.f32 %v903_v35, %v3363_v7  ;;  %v906_v54 = vsub.f32 %v794_v24, %v898_v43  ;;  %v886_v24 = vmul.f32 %v3458_v6, %v885_v17  ;;  %v986_v9 = vsub.f32 0.0, %v978_v31 }
 0x178   : > { %v2114_v19 = vpop.eup %2113  ;;  %2123 = vlog2.f32 %v1031_v63  ;;  %vm888_vm1 = vcmp.lt.f32.partialorder %v887_v60, 0.0004427343  ;;  %v1034_v26 = vmul.f32 -0.5, %v2112_v53  ;;  %v1134_v58 = vsub.f32 0.0, %v3522_v41 }
 0x179   : > { %v3515_v1 = vadd.f32 %v906_v54, %v3379_v55  ;;  %v883_v7 = vmul.f32 0.6931472, %v2114_v19  ;;  %2125 = vpow2.f32 %v1002_v62  ;;  %v1000_v55 = vmul.f32 1.442695, %v986_v9  ;;  %v3558_v62 = vpop.xlane.xlu0 %1116 }
 0x17a   : > { %2127 = vpow2.f32 %v992_v15  ;;  %v1133_v18 = vsub.f32 0.0, %v3527_v45  ;;  %v1035_v40 = vadd.f32 1.0, %v1034_v26  ;;  %v1150_v34 = vand.u32 2147483647, %v1134_v58 }
 0x17b   : > { %v889_v22 = vsel %vm888_vm1, %v886_v24, %v883_v7  ;;  %2129 = vpow2.f32 %v1000_v55  ;;  %v1136_v2 = vsub.f32 0.0, %v3536_v61  ;;  %v967_v3 = vmin.f32 %v959_v37, 0.0  ;;  %v3562_v7 = vpop.xlane.xlu1 %1125 }
 0x17c   : > { %v905_v39 = vsub.f32 %v793_v56, %v889_v22  ;;  %v1149_v16 = vand.u32 2147483647, %v1133_v18  ;;  %v1036_v25 = vmul.f32 %v2112_v53, %v1035_v40  ;;  %v1158_v17 = vsub.f32 0.0, %v1150_v34 }
 0x17d   : > { %v1135_v55 = vsub.f32 0.0, %v3558_v62  ;;  %v1138_v26 = vsub.f32 0.0, %v3562_v7  ;;  %v3693_v49 = vmin.f32 %v1133_v18, 0.0 }
 0x17e   : > { %v3525_v47 = vadd.f32 %v905_v39, %v3386_v8  ;;  %v1037_v8 = vand.u32 2147483647, %v2112_v53  ;;  %v1157_v19 = vsub.f32 0.0, %v1149_v16  ;;  %v1152_v53 = vand.u32 2147483647, %v1136_v2 }
 0x17f   : > { %v3529_v6 = vpop.eup %2115  ;;  %v1167_v22 = vmul.f32 1.442695, %v1158_v17  ;;  %v969_v16 = vmin.f32 %v961_v59, 0.0  ;;  %v1154_v17 = vand.u32 2147483647, %v1138_v26  ;;  %v3712_v18 = vmin.f32 %v1135_v55, 0.0 }
 0x180   : > { %v1049_v14 = vadd.f32 1.0, %v3529_v6  ;;  %vm1038_vm2 = vcmp.lt.f32.partialorder %v1037_v8, 0.0004427343  ;;  %v1052_v15 = vmul.f32 -0.5, %v3529_v6  ;;  %v1165_v40 = vmul.f32 1.442695, %v1157_v19 }
 0x181   : > { %v3533_v50 = vpop.eup %2117  ;;  %v1160_v8 = vsub.f32 0.0, %v1152_v53  ;;  %v3716_v61 = vmin.f32 %v1138_v26, 0.0 }
 0x182   : > { %2131 = vlog2.f32 %v1049_v14  ;;  %v3538_v42 = vpop.eup %2119  ;;  %v1040_v52 = vadd.f32 1.0, %v3533_v50  ;;  %v1043_v24 = vmul.f32 -0.5, %v3533_v50  ;;  %v1053_v39 = vadd.f32 1.0, %v1052_v15 }
 0x183   : > { %v3543_v21 = vpop.eup %2121  ;;  %v1013_v46 = vadd.f32 1.0, %v3538_v42  ;;  %v1055_v14 = vand.u32 2147483647, %v3529_v6 }
 0x184   : > { %2133 = vlog2.f32 %v1040_v52  ;;  %v1004_v60 = vadd.f32 1.0, %v3543_v21  ;;  %v1044_v52 = vadd.f32 1.0, %v1043_v24 }
 0x185   : > { %v2124_v11 = vpop.eup %2123  ;;  %vm1056_vm3 = vcmp.lt.f32.partialorder %v1055_v14, 0.0004427343 }
 0x186   : > { %v3548_v38 = vpop.eup %2125  ;;  %v1033_v35 = vmul.f32 0.6931472, %v2124_v11  ;;  %v1045_v15 = vmul.f32 %v3533_v50, %v1044_v52 }
 0x187   : > { %v3551_v43 = vpop.eup %2127  ;;  %v1067_v54 = vadd.f32 1.0, %v3548_v38  ;;  %v1070_v34 = vmul.f32 -0.5, %v3548_v38 }
 0x188   : > { %v1039_v63 = vsel %vm1038_vm2, %v1036_v25, %v1033_v35  ;;  %v3564_v10 = vpop.eup %2129  ;;  %v1022_v37 = vadd.f32 1.0, %v3551_v43  ;;  %v3582_v35 = vpop.xlane.xlu1 %1131 }
 0x189   : > { %v1079_v31 = vsub.f32 %v967_v3, %v1039_v63  ;;  %2135 = vlog2.f32 %v1067_v54  ;;  %v1058_v56 = vadd.f32 1.0, %v3564_v10  ;;  %v1054_v3 = vmul.f32 %v3529_v6, %v1053_v39 }
 0x18a   : > { %2137 = vlog2.f32 %v1013_v46  ;;  %v1151_v46 = vand.u32 2147483647, %v1135_v55  ;;  %v1046_v54 = vand.u32 2147483647, %v3533_v50  ;;  %v1140_v19 = vsub.f32 0.0, %v3582_v35 }
 0x18b   : > { %v3569_v9 = vadd.f32 %v1079_v31, %v3474_v23  ;;  %2139 = vlog2.f32 %v1004_v60  ;;  %v3576_v23 = vpop.xlane.xlu0 %1122  ;;  %v1171_v60 = vmul.f32 1.442695, %v1160_v8  ;;  %v1071_v31 = vadd.f32 1.0, %v1070_v34 }
 0x18c   : > { %2141 = vlog2.f32 %v1058_v56  ;;  %v1137_v30 = vsub.f32 0.0, %v3576_v23  ;;  %v1061_v6 = vmul.f32 -0.5, %v3564_v10  ;;  %v1159_v24 = vsub.f32 0.0, %v1151_v46 }
 0x18d   : > { %2143 = vlog2.f32 %v1022_v37  ;;  %v968_v56 = vmin.f32 %v960_v51, 0.0  ;;  %vm1047_vm4 = vcmp.lt.f32.partialorder %v1046_v54, 0.0004427343  ;;  %v1162_v39 = vsub.f32 0.0, %v1154_v17 }
 0x18e   : > { %2145 = vpow2.f32 %v1167_v22  ;;  %v1073_v22 = vand.u32 2147483647, %v3548_v38  ;;  %v1153_v50 = vand.u32 2147483647, %v1137_v30  ;;  %v971_v34 = vmin.f32 %v963_v48, 0.0 }
 0x18f   : > { %v2132_v11 = vpop.eup %2131  ;;  %2147 = vpow2.f32 %v1165_v40  ;;  %v1156_v32 = vand.u32 2147483647, %v1140_v19  ;;  %v1062_v46 = vadd.f32 1.0, %v1061_v6  ;;  %v1064_v54 = vand.u32 2147483647, %v3564_v10 }
 0x190   : > { %v1051_v25 = vmul.f32 0.6931472, %v2132_v11  ;;  %2149 = vpow2.f32 %v1171_v60  ;;  %vm1074_vm5 = vcmp.lt.f32.partialorder %v1073_v22, 0.0004427343  ;;  %v1175_v17 = vmul.f32 1.442695, %v1162_v39 }
 0x191   : > { %v2134_v59 = vpop.eup %2133  ;;  %v1016_v48 = vmul.f32 -0.5, %v3538_v42  ;;  %v970_v6 = vmin.f32 %v962_v4, 0.0  ;;  %vm1065_vm6 = vcmp.lt.f32.partialorder %v1064_v54, 0.0004427343  ;;  %v3741_v23 = vmin.f32 %v1140_v19, 0.0 }
 0x192   : > { %v1057_v63 = vsel %vm1056_vm3, %v1054_v3, %v1051_v25  ;;  %v1042_v37 = vmul.f32 0.6931472, %v2134_v59  ;;  %v3605_v25 = vpop.xlane.xlu0 %1128  ;;  %v1161_v59 = vsub.f32 0.0, %v1153_v50  ;;  %v1025_v50 = vmul.f32 -0.5, %v3551_v43 }
 0x193   : > { %v1081_v53 = vsub.f32 %v969_v16, %v1057_v63  ;;  %v1072_v16 = vmul.f32 %v3548_v38, %v1071_v31  ;;  %v3612_v63 = vpop.xlane.xlu1 %1290  ;;  %v1007_v38 = vmul.f32 -0.5, %v3543_v21 }
 0x194   : > { %v1048_v40 = vsel %vm1047_vm4, %v1045_v15, %v1042_v37  ;;  %v1139_v37 = vsub.f32 0.0, %v3605_v25 }
 0x195   : > { %v3596_v14 = vadd.f32 %v1081_v53, %v3500_v44  ;;  %v1080_v52 = vsub.f32 %v968_v56, %v1048_v40  ;;  %v1169_v44 = vmul.f32 1.442695, %v1159_v24  ;;  %v1164_v53 = vsub.f32 0.0, %v1156_v32 }
 0x196   : > { %v2136_v8 = vpop.eup %2135  ;;  %v1063_v56 = vmul.f32 %v3564_v10, %v1062_v46  ;;  %v1311_v40 = vsub.f32 0.0, %v3612_v63  ;;  %v1155_v10 = vand.u32 2147483647, %v1139_v37  ;;  %v965_v32 = vmin.f32 %v957_v28, 0.0  ;;  %v3634_v46 = vpop.xlane.xlu0 %1287 }
 0x197   : > { %v2138_v51 = vpop.eup %2137  ;;  %v1069_v11 = vmul.f32 0.6931472, %v2136_v8  ;;  %v3608_v3 = vadd.f32 %v1080_v52, %v3510_v33  ;;  %2151 = vpow2.f32 %v1169_v44  ;;  %v1173_v52 = vmul.f32 1.442695, %v1161_v59  ;;  %v3642_v59 = vpop.xlane.xlu1 %1296 }
 0x198   : > { %v2140_v13 = vpop.eup %2139  ;;  %2153 = vpow2.f32 %v1175_v17  ;;  %v1179_v4 = vmul.f32 1.442695, %v1164_v53  ;;  %v1008_v44 = vadd.f32 1.0, %v1007_v38  ;;  %v1015_v57 = vmul.f32 0.6931472, %v2138_v51 }
 0x199   : > { %v1075_v60 = vsel %vm1074_vm5, %v1072_v16, %v1069_v11  ;;  %v2142_v15 = vpop.eup %2141  ;;  %v1019_v11 = vand.u32 2147483647, %v3538_v42  ;;  %v1010_v16 = vand.u32 2147483647, %v3543_v21  ;;  %v1026_v28 = vadd.f32 1.0, %v1025_v50 }
 0x19a   : > { %v1083_v31 = vsub.f32 %v971_v34, %v1075_v60  ;;  %v2144_v33 = vpop.eup %2143  ;;  %v1060_v24 = vmul.f32 0.6931472, %v2142_v15  ;;  %v1327_v60 = vand.u32 2147483647, %v1311_v40  ;;  %2155 = vpow2.f32 %v1173_v52 }
 0x19b   : > { %v3619_v22 = vpop.eup %2145  ;;  %2157 = vpow2.f32 %v1179_v4  ;;  %v1163_v38 = vsub.f32 0.0, %v1155_v10  ;;  %vm3651_vm7 = vcmp.lt.f32.partialorder %v1019_v11, 0.0004427343  ;;  %v1009_v50 = vmul.f32 %v3543_v21, %v1008_v44 }
 0x19c   : > { %v3622_v39 = vadd.f32 %v1083_v31, %v3515_v1  ;;  %v1066_v8 = vsel %vm1065_vm6, %v1063_v56, %v1060_v24  ;;  %v3626_v34 = vpop.eup %2147  ;;  %v1017_v1 = vadd.f32 1.0, %v1016_v48  ;;  %v1190_v17 = vadd.f32 1.0, %v3619_v22 }
 0x19d   : > { %v1082_v36 = vsub.f32 %v970_v6, %v1066_v8  ;;  %v1028_v48 = vand.u32 2147483647, %v3551_v43  ;;  %v3645_v15 = vpop.eup %2149  ;;  %v1006_v31 = vmul.f32 0.6931472, %v2140_v13  ;;  %v1024_v6 = vmul.f32 0.6931472, %v2144_v33 }
 0x19e   : > { %v1018_v53 = vmul.f32 %v3538_v42, %v1017_v1  ;;  %v1181_v24 = vadd.f32 1.0, %v3626_v34  ;;  %v1313_v56 = vsub.f32 0.0, %v3642_v59  ;;  %2159 = vlog2.f32 %v1190_v17 }
 0x19f   : > { %v3637_v54 = vadd.f32 %v1082_v36, %v3525_v47  ;;  %v1310_v47 = vsub.f32 0.0, %v3634_v46  ;;  %v1335_v8 = vsub.f32 0.0, %v1327_v60  ;;  %vm3658_vm8 = vcmp.lt.f32.partialorder %v1010_v16, 0.0004427343 }
 0x1a0   : > { %v1021_v13 = vsel %vm3651_vm7, %v1018_v53, %v1015_v57  ;;  %v1027_v42 = vmul.f32 %v3551_v43, %v1026_v28  ;;  %v1208_v33 = vadd.f32 1.0, %v3645_v15  ;;  %v1012_v36 = vsel %vm3658_vm8, %v1009_v50, %v1006_v31  ;;  %v3682_v57 = vpop.xlane.xlu0 %1293 }
 0x1a1   : > { %vm3666_vm9 = vcmp.lt.f32.partialorder %v1028_v48, 0.0004427343  ;;  %v1177_v21 = vmul.f32 1.442695, %v1163_v38  ;;  %v1326_v10 = vand.u32 2147483647, %v1310_v47  ;;  %2161 = vlog2.f32 %v1181_v24  ;;  %v3705_v24 = vpop.xlane.xlu1 %1302 }
 0x1a2   : > { %v964_v1 = vmin.f32 %v956_v20, 0.0  ;;  %v1030_v11 = vsel %vm3666_vm9, %v1027_v42, %v1024_v6  ;;  %v1329_v43 = vand.u32 2147483647, %v1313_v56  ;;  %v1077_v44 = vsub.f32 %v965_v32, %v1021_v13 }
 0x1a3   : > { %v966_v17 = vmin.f32 %v958_v0, 0.0  ;;  %v1344_v60 = vmul.f32 1.442695, %v1335_v8  ;;  %v3688_v20 = vmin.f32 %v1134_v58, 0.0  ;;  %2163 = vlog2.f32 %v1208_v33 }
 0x1a4   : > { %v3678_v16 = vpop.eup %2151  ;;  %v1076_v29 = vsub.f32 %v964_v1, %v1012_v36  ;;  %v1193_v31 = vmul.f32 -0.5, %v3619_v22  ;;  %2165 = vpow2.f32 %v1177_v21  ;;  %v1334_v38 = vsub.f32 0.0, %v1326_v10  ;;  %v3728_v62 = vpop.xlane.xlu0 %1299 }
 0x1a5   : > { %v3684_v28 = vpop.eup %2153  ;;  %v1078_v48 = vsub.f32 %v966_v17, %v1030_v11  ;;  %v3697_v0 = vmin.f32 %v1136_v2, 0.0  ;;  %v1199_v32 = vadd.f32 1.0, %v3678_v16  ;;  %v1337_v53 = vsub.f32 0.0, %v1329_v43 }
 0x1a6   : > { %v3701_v41 = vadd.f32 %v1077_v44, %v3427_v5  ;;  %v1196_v58 = vand.u32 2147483647, %v3619_v22  ;;  %v1226_v6 = vadd.f32 1.0, %v3684_v28  ;;  %2167 = vpow2.f32 %v1344_v60 }
 0x1a7   : > { %v3708_v45 = vadd.f32 %v1076_v29, %v3449_v12  ;;  %v1312_v5 = vsub.f32 0.0, %v3682_v57  ;;  %v3719_v2 = vpop.eup %2155  ;;  %v3722_v51 = vadd.f32 %v1078_v48, %v3479_v27  ;;  %v1194_v50 = vadd.f32 1.0, %v1193_v31 }
 0x1a8   : > { %v3726_v12 = vmin.f32 %v1137_v30, 0.0  ;;  %v1342_v8 = vmul.f32 1.442695, %v1334_v38  ;;  %v3730_v55 = vpop.eup %2157  ;;  %v1184_v7 = vmul.f32 -0.5, %v3626_v34  ;;  %2169 = vlog2.f32 %v1199_v32  ;;  %v3765_v38 = vpop.xlane.xlu1 %1308 }
 0x1a9   : > { %v1348_v26 = vmul.f32 1.442695, %v1337_v53  ;;  %v1315_v13 = vsub.f32 0.0, %v3705_v24  ;;  %vm3734_vm10 = vcmp.lt.f32.partialorder %v1196_v58, 0.0004427343  ;;  %v1211_v27 = vmul.f32 -0.5, %v3645_v15 }
 0x1aa   : > { %2171 = vlog2.f32 %v1226_v6  ;;  %v1187_v42 = vand.u32 2147483647, %v3626_v34  ;;  %v1217_v33 = vadd.f32 1.0, %v3719_v2  ;;  %v1328_v36 = vand.u32 2147483647, %v1312_v5 }
 0x1ab   : > { %v2160_v30 = vpop.eup %2159  ;;  %v1314_v4 = vsub.f32 0.0, %v3728_v62  ;;  %v1214_v21 = vand.u32 2147483647, %v3645_v15  ;;  %v1202_v10 = vmul.f32 -0.5, %v3678_v16  ;;  %v1244_v1 = vadd.f32 1.0, %v3730_v55 }
 0x1ac   : > { %2173 = vpow2.f32 %v1342_v8  ;;  %v1195_v35 = vmul.f32 %v3619_v22, %v1194_v50  ;;  %v1185_v19 = vadd.f32 1.0, %v1184_v7  ;;  %v1331_v11 = vand.u32 2147483647, %v1315_v13 }
 0x1ad   : > { %2175 = vpow2.f32 %v1348_v26  ;;  %v1192_v44 = vmul.f32 0.6931472, %v2160_v30  ;;  %v1212_v17 = vadd.f32 1.0, %v1211_v27  ;;  %v1229_v60 = vmul.f32 -0.5, %v3684_v28 }
 0x1ae   : > { %v2162_v43 = vpop.eup %2161  ;;  %v3757_v29 = vmin.f32 %v1139_v37, 0.0  ;;  %vm3759_vm11 = vcmp.lt.f32.partialorder %v1187_v42, 0.0004427343  ;;  %2177 = vlog2.f32 %v1217_v33  ;;  %v1336_v22 = vsub.f32 0.0, %v1328_v36  ;;  %v3772_v37 = vpop.xlane.xlu0 %1305 }
 0x1af   : > { %v1330_v31 = vand.u32 2147483647, %v1314_v4  ;;  %vm3767_vm12 = vcmp.lt.f32.partialorder %v1214_v21, 0.0004427343  ;;  %v1203_v58 = vadd.f32 1.0, %v1202_v10  ;;  %2179 = vlog2.f32 %v1244_v1 }
 0x1b0   : > { %v2164_v32 = vpop.eup %2163  ;;  %v1205_v25 = vand.u32 2147483647, %v3678_v16  ;;  %v1183_v50 = vmul.f32 0.6931472, %v2162_v43  ;;  %v1186_v8 = vmul.f32 %v3626_v34, %v1185_v19  ;;  %v1232_v7 = vand.u32 2147483647, %v3684_v28 }
 0x1b1   : > { %v3774_v6 = vpop.eup %2165  ;;  %v1339_v26 = vsub.f32 0.0, %v1331_v11  ;;  %v1198_v27 = vsel %vm3734_vm10, %v1195_v35, %v1192_v44  ;;  %v1213_v30 = vmul.f32 %v3645_v15, %v1212_v17  ;;  %v1230_v42 = vadd.f32 1.0, %v1229_v60 }
 0x1b2   : > { %v1317_v33 = vsub.f32 0.0, %v3765_v38  ;;  %v3786_v21 = vmin.f32 %v1311_v40, 0.0  ;;  %v1346_v10 = vmul.f32 1.442695, %v1336_v22  ;;  %v1338_v1 = vsub.f32 0.0, %v1330_v31 }
 0x1b3   : > { %v3782_v36 = vpop.eup %2167  ;;  %v1316_v34 = vsub.f32 0.0, %v3772_v37  ;;  %v1210_v19 = vmul.f32 0.6931472, %v2164_v32  ;;  %v1204_v11 = vmul.f32 %v3678_v16, %v1203_v58  ;;  %vm3790_vm13 = vcmp.lt.f32.partialorder %v1205_v25, 0.0004427343  ;;  %v3814_v25 = vpop.xlane.xlu1 %1467 }
 0x1b4   : > { %v1220_v15 = vmul.f32 -0.5, %v3719_v2  ;;  %v1235_v35 = vadd.f32 1.0, %v3774_v6  ;;  %v1254_v43 = vsub.f32 %v3688_v20, %v1198_v27  ;;  %v1189_v63 = vsel %vm3759_vm11, %v1186_v8, %v1183_v50 }
 0x1b5   : > { %vm3799_vm14 = vcmp.lt.f32.partialorder %v1232_v7, 0.0004427343  ;;  %v1352_v44 = vmul.f32 1.442695, %v1339_v26  ;;  %v2170_v17 = vpop.eup %2169  ;;  %v1231_v16 = vmul.f32 %v3684_v28, %v1230_v42  ;;  %v1367_v60 = vadd.f32 1.0, %v3782_v36 }
 0x1b6   : > { %v3807_v22 = vmin.f32 %v1310_v47, 0.0  ;;  %v1333_v20 = vand.u32 2147483647, %v1317_v33  ;;  %v1223_v48 = vand.u32 2147483647, %v3719_v2  ;;  %2181 = vpow2.f32 %v1346_v10 }
 0x1b7   : > { %v2172_v31 = vpop.eup %2171  ;;  %v1350_v32 = vmul.f32 1.442695, %v1338_v1  ;;  %v1332_v58 = vand.u32 2147483647, %v1316_v34  ;;  %v1253_v28 = vsub.f32 %v3693_v49, %v1189_v63  ;;  %v1216_v46 = vsel %vm3767_vm12, %v1213_v30, %v1210_v19 }
 0x1b8   : > { %v1221_v47 = vadd.f32 1.0, %v1220_v15  ;;  %2183 = vlog2.f32 %v1235_v35  ;;  %v3822_v8 = vadd.f32 %v1254_v43, %v3701_v41  ;;  %v1201_v7 = vmul.f32 0.6931472, %v2170_v17 }
 0x1b9   : > { %v3819_v50 = vpop.eup %2173  ;;  %v3826_v26 = vmin.f32 %v1313_v56, 0.0  ;;  %2185 = vpow2.f32 %v1352_v44  ;;  %v1228_v42 = vmul.f32 0.6931472, %v2172_v31  ;;  %v1247_v49 = vmul.f32 -0.5, %v3730_v55  ;;  %v3850_v44 = vpop.xlane.xlu1 %1473 }
 0x1ba   : > { %v3828_v27 = vpop.eup %2175  ;;  %2187 = vlog2.f32 %v1367_v60  ;;  %v1341_v53 = vsub.f32 0.0, %v1333_v20  ;;  %v1256_v30 = vsub.f32 %v3697_v0, %v1216_v46  ;;  %v1250_v10 = vand.u32 2147483647, %v3730_v55 }
 0x1bb   : > { %2189 = vpow2.f32 %v1350_v32  ;;  %v1340_v41 = vsub.f32 0.0, %v1332_v58  ;;  %v2178_v1 = vpop.eup %2177  ;;  %v3834_v19 = vadd.f32 %v1253_v28, %v3708_v45  ;;  %v1222_v59 = vmul.f32 %v3719_v2, %v1221_v47  ;;  %v3869_v58 = vpop.xlane.xlu0 %1464 }
 0x1bc   : > { %vm3837_vm15 = vcmp.lt.f32.partialorder %v1223_v48, 0.0004427343  ;;  %v1358_v15 = vadd.f32 1.0, %v3819_v50  ;;  %v2180_v35 = vpop.eup %2179  ;;  %v1207_v0 = vsel %vm3790_vm13, %v1204_v11, %v1201_v7  ;;  %v1238_v43 = vmul.f32 -0.5, %v3774_v6 }
 0x1bd   : > { %v1385_v63 = vadd.f32 1.0, %v3828_v27  ;;  %v3848_v45 = vmin.f32 %v1312_v5, 0.0  ;;  %v1234_v2 = vsel %vm3799_vm14, %v1231_v16, %v1228_v42  ;;  %v1248_v17 = vadd.f32 1.0, %v1247_v49  ;;  %v3879_v47 = vpop.xlane.xlu1 %1479 }
 0x1be   : > { %v1356_v60 = vmul.f32 1.442695, %v1341_v53  ;;  %v1488_v20 = vsub.f32 0.0, %v3814_v25  ;;  %v3856_v52 = vadd.f32 %v1256_v30, %v3569_v9  ;;  %v1219_v11 = vmul.f32 0.6931472, %v2178_v1 }
 0x1bf   : > { %vm3858_vm0 = vcmp.lt.f32.partialorder %v1250_v10, 0.0004427343  ;;  %v1354_v57 = vmul.f32 1.442695, %v1340_v41  ;;  %v1255_v5 = vsub.f32 %v3712_v18, %v1207_v0  ;;  %v1246_v48 = vmul.f32 0.6931472, %v2180_v35 }
 0x1c0   : > { %2191 = vlog2.f32 %v1358_v15  ;;  %v3865_v40 = vmin.f32 %v1315_v13, 0.0  ;;  %v1258_v16 = vsub.f32 %v3716_v61, %v1234_v2  ;;  %v1239_v32 = vadd.f32 1.0, %v1238_v43 }
 0x1c1   : > { %v1241_v9 = vand.u32 2147483647, %v3774_v6  ;;  %2193 = vlog2.f32 %v1385_v63  ;;  %v1249_v28 = vmul.f32 %v3730_v55, %v1248_v17  ;;  %v1370_v46 = vmul.f32 -0.5, %v3782_v36  ;;  %v3915_v63 = vpop.xlane.xlu0 %1470 }
 0x1c2   : > { %2195 = vpow2.f32 %v1356_v60  ;;  %v1504_v18 = vand.u32 2147483647, %v1488_v20  ;;  %v1225_v24 = vsel %vm3837_vm15, %v1222_v59, %v1219_v11  ;;  %v1373_v13 = vand.u32 2147483647, %v3782_v36 }
 0x1c3   : > { %v1361_v61 = vmul.f32 -0.5, %v3819_v50  ;;  %2197 = vpow2.f32 %v1354_v57  ;;  %v3881_v7 = vpop.eup %2181  ;;  %v3884_v55 = vadd.f32 %v1255_v5, %v3722_v51  ;;  %v1252_v42 = vsel %vm3858_vm0, %v1249_v28, %v1246_v48  ;;  %v3927_v57 = vpop.xlane.xlu1 %1485 }
 0x1c4   : > { %v3890_v49 = vmin.f32 %v1314_v4, 0.0  ;;  %v1487_v53 = vsub.f32 0.0, %v3869_v58  ;;  %v3894_v10 = vadd.f32 %v1258_v16, %v3596_v14  ;;  %v1240_v41 = vmul.f32 %v3774_v6, %v1239_v32 }
 0x1c5   : > { %v2184_v30 = vpop.eup %2183  ;;  %vm3897_vm1 = vcmp.lt.f32.partialorder %v1241_v9, 0.0004427343  ;;  %v1388_v51 = vmul.f32 -0.5, %v3828_v27  ;;  %v1257_v62 = vsub.f32 %v3726_v12, %v1225_v24  ;;  %v1371_v4 = vadd.f32 1.0, %v1370_v46 }
 0x1c6   : > { %v3902_v59 = vpop.eup %2185  ;;  %v3907_v56 = vmin.f32 %v1317_v33, 0.0  ;;  %v1512_v15 = vsub.f32 0.0, %v1504_v18  ;;  %v1260_v35 = vsub.f32 %v3741_v23, %v1252_v42  ;;  %vm3910_vm2 = vcmp.lt.f32.partialorder %v1373_v13, 0.0004427343  ;;  %v3954_v13 = vpop.xlane.xlu0 %1476 }
 0x1c7   : > { %v2188_v14 = vpop.eup %2187  ;;  %v1362_v0 = vadd.f32 1.0, %v1361_v61  ;;  %v1364_v43 = vand.u32 2147483647, %v3819_v50  ;;  %v1237_v12 = vmul.f32 0.6931472, %v2184_v30  ;;  %v1376_v38 = vadd.f32 1.0, %v3881_v7 }
 0x1c8   : > { %v3917_v2 = vpop.eup %2189  ;;  %v1503_v33 = vand.u32 2147483647, %v1487_v53  ;;  %v1490_v17 = vsub.f32 0.0, %v3850_v44  ;;  %v1389_v60 = vadd.f32 1.0, %v1388_v51  ;;  %v1379_v23 = vmul.f32 -0.5, %v3881_v7 }
 0x1c9   : > { %v1403_v11 = vadd.f32 1.0, %v3902_v59  ;;  %v3925_v31 = vmin.f32 %v1316_v34, 0.0  ;;  %v3930_v5 = vadd.f32 %v1257_v62, %v3608_v3  ;;  %v1372_v48 = vmul.f32 %v3782_v36, %v1371_v4  ;;  %v3970_v62 = vpop.xlane.xlu1 %1644 }
 0x1ca   : > { %v1391_v16 = vand.u32 2147483647, %v3828_v27  ;;  %v1521_v32 = vmul.f32 1.442695, %v1512_v15  ;;  %v3935_v9 = vadd.f32 %v1260_v35, %v3622_v39  ;;  %v1369_v58 = vmul.f32 0.6931472, %v2188_v14 }
 0x1cb   : > { %v1363_v28 = vmul.f32 %v3819_v50, %v1362_v0  ;;  %vm3938_vm3 = vcmp.lt.f32.partialorder %v1364_v43, 0.0004427343  ;;  %v1394_v34 = vadd.f32 1.0, %v3917_v2  ;;  %v1243_v3 = vsel %vm3897_vm1, %v1240_v41, %v1237_v12 }
 0x1cc   : > { %2199 = vlog2.f32 %v1376_v38  ;;  %v1511_v36 = vsub.f32 0.0, %v1503_v33  ;;  %v1506_v46 = vand.u32 2147483647, %v1490_v17  ;;  %v3948_v39 = vmul.f32 %v3828_v27, %v1389_v60 }
 0x1cd   : > { %v2192_v18 = vpop.eup %2191  ;;  %v1380_v24 = vadd.f32 1.0, %v1379_v23  ;;  %2201 = vlog2.f32 %v1403_v11  ;;  %v3952_v50 = vmin.f32 %v1488_v20, 0.0  ;;  %v1406_v42 = vmul.f32 -0.5, %v3902_v59  ;;  %v3988_v11 = vpop.xlane.xlu0 %1482 }
 0x1ce   : > { %v2194_v61 = vpop.eup %2193  ;;  %2203 = vpow2.f32 %v1521_v32  ;;  %v3957_v30 = vmin.f32 %v1487_v53, 0.0  ;;  %v1489_v41 = vsub.f32 0.0, %v3915_v63  ;;  %v1259_v27 = vsub.f32 %v3757_v29, %v1243_v3 }
 0x1cf   : > { %v3960_v1 = vpop.eup %2195  ;;  %v1375_v51 = vsel %vm3910_vm2, %v1372_v48, %v1369_v58  ;;  %vm3965_vm4 = vcmp.lt.f32.partialorder %v1391_v16, 0.0004427343  ;;  %v1382_v20 = vand.u32 2147483647, %v3881_v7  ;;  %2205 = vlog2.f32 %v1394_v34 }
 0x1d0   : > { %v3972_v53 = vpop.eup %2197  ;;  %v1360_v4 = vmul.f32 0.6931472, %v2192_v18  ;;  %v1519_v15 = vmul.f32 1.442695, %v1511_v36  ;;  %v1514_v14 = vsub.f32 0.0, %v1506_v46  ;;  %v1492_v35 = vsub.f32 0.0, %v3879_v47 }
 0x1d1   : > { %v3976_v29 = vmul.f32 %v3881_v7, %v1380_v24  ;;  %v1409_v6 = vand.u32 2147483647, %v3902_v59  ;;  %v1397_v0 = vmul.f32 -0.5, %v3917_v2  ;;  %v1491_v43 = vsub.f32 0.0, %v3954_v13 }
 0x1d2   : > { %v1407_v63 = vadd.f32 1.0, %v1406_v42  ;;  %v1421_v12 = vadd.f32 1.0, %v3960_v1  ;;  %v1505_v38 = vand.u32 2147483647, %v1489_v41  ;;  %v1665_v33 = vsub.f32 0.0, %v3970_v62 }
 0x1d3   : > { %v3984_v60 = vadd.f32 %v1259_v27, %v3637_v54  ;;  %v1431_v47 = vsub.f32 %v3786_v21, %v1375_v51  ;;  %v1387_v23 = vmul.f32 0.6931472, %v2194_v61  ;;  %v1412_v7 = vadd.f32 1.0, %v3972_v53  ;;  %v4025_v51 = vpop.xlane.xlu0 %1641 }
 0x1d4   : > { %v1366_v48 = vsel %vm3938_vm3, %v1363_v28, %v1360_v4  ;;  %2207 = vpow2.f32 %v1519_v15  ;;  %v1525_v16 = vmul.f32 1.442695, %v1514_v14  ;;  %v1508_v32 = vand.u32 2147483647, %v1492_v35 }
 0x1d5   : > { %v1398_v58 = vadd.f32 1.0, %v1397_v0  ;;  %v1400_v34 = vand.u32 2147483647, %v3917_v2  ;;  %v1507_v3 = vand.u32 2147483647, %v1491_v43  ;;  %v1494_v54 = vsub.f32 0.0, %v3927_v57 }
 0x1d6   : > { %v3995_v36 = vmul.f32 %v3902_v59, %v1407_v63  ;;  %2209 = vlog2.f32 %v1421_v12  ;;  %v1513_v21 = vsub.f32 0.0, %v1505_v38  ;;  %v1681_v46 = vand.u32 2147483647, %v1665_v33  ;;  %v4041_v12 = vpop.xlane.xlu1 %1650 }
 0x1d7   : > { %v4000_v37 = vadd.f32 %v1431_v47, %v3822_v8  ;;  %v1430_v28 = vsub.f32 %v3807_v22, %v1366_v48  ;;  %vm4003_vm5 = vcmp.lt.f32.partialorder %v1382_v20, 0.0004427343  ;;  %2211 = vlog2.f32 %v1412_v7 }
 0x1d8   : > { %v4009_v24 = vmin.f32 %v1490_v17, 0.0  ;;  %v1393_v59 = vsel %vm3965_vm4, %v3948_v39, %v1387_v23  ;;  %vm4014_vm6 = vcmp.lt.f32.partialorder %v1409_v6, 0.0004427343  ;;  %2213 = vpow2.f32 %v1525_v16 }
 0x1d9   : > { %v1516_v8 = vsub.f32 0.0, %v1508_v32  ;;  %v1689_v22 = vsub.f32 0.0, %v1681_v46  ;;  %v2200_v61 = vpop.eup %2199  ;;  %v4019_v42 = vmul.f32 %v3917_v2, %v1398_v58  ;;  %v4021_v27 = vmin.f32 %v1489_v41, 0.0  ;;  %v4056_v46 = vpop.xlane.xlu0 %1647 }
 0x1da   : > { %v1515_v44 = vsub.f32 0.0, %v1507_v3  ;;  %v1510_v17 = vand.u32 2147483647, %v1494_v54  ;;  %v2202_v39 = vpop.eup %2201  ;;  %vm4027_vm7 = vcmp.lt.f32.partialorder %v1400_v34, 0.0004427343  ;;  %v4031_v4 = vmin.f32 %v1492_v35, 0.0 }
 0x1db   : > { %v1523_v20 = vmul.f32 1.442695, %v1513_v21  ;;  %v4033_v15 = vmin.f32 %v1491_v43, 0.0  ;;  %v1698_v2 = vmul.f32 1.442695, %v1689_v22  ;;  %v4035_v14 = vpop.eup %2203  ;;  %v1433_v41 = vsub.f32 %v3826_v26, %v1393_v59 }
 0x1dc   : > { %v1424_v6 = vmul.f32 -0.5, %v3960_v1  ;;  %v1427_v0 = vand.u32 2147483647, %v3960_v1  ;;  %v1493_v63 = vsub.f32 0.0, %v3988_v11  ;;  %v2206_v38 = vpop.eup %2205  ;;  %v4044_v47 = vadd.f32 %v1430_v28, %v3834_v19 }
 0x1dd   : > { %v1378_v35 = vmul.f32 0.6931472, %v2200_v61  ;;  %v1529_v43 = vmul.f32 1.442695, %v1516_v8  ;;  %v1664_v23 = vsub.f32 0.0, %v4025_v51  ;;  %v1518_v16 = vsub.f32 0.0, %v1510_v17 }
 0x1de   : > { %v1405_v7 = vmul.f32 0.6931472, %v2202_v39  ;;  %v1527_v48 = vmul.f32 1.442695, %v1515_v44  ;;  %2215 = vpow2.f32 %v1698_v2  ;;  %v1415_v26 = vmul.f32 -0.5, %v3972_v53 }
 0x1df   : > { %v1544_v32 = vadd.f32 1.0, %v4035_v14  ;;  %2217 = vpow2.f32 %v1523_v20  ;;  %v1667_v58 = vsub.f32 0.0, %v4041_v12  ;;  %v4051_v34 = vadd.f32 %v1433_v41, %v3856_v52 }
 0x1e0   : > { %v1396_v19 = vmul.f32 0.6931472, %v2206_v38  ;;  %v1418_v3 = vand.u32 2147483647, %v3972_v53  ;;  %v1509_v21 = vand.u32 2147483647, %v1493_v63  ;;  %v1384_v28 = vsel %vm4003_vm5, %v3976_v29, %v1378_v35 }
 0x1e1   : > { %v1425_v59 = vadd.f32 1.0, %v1424_v6  ;;  %2219 = vpow2.f32 %v1529_v43  ;;  %v1680_v8 = vand.u32 2147483647, %v1664_v23  ;;  %v4063_v22 = vpop.eup %2207  ;;  %v1411_v52 = vsel %vm4014_vm6, %v3995_v36, %v1405_v7 }
 0x1e2   : > { %v1547_v61 = vmul.f32 -0.5, %v4035_v14  ;;  %2221 = vpow2.f32 %v1527_v48  ;;  %v1533_v44 = vmul.f32 1.442695, %v1518_v16  ;;  %v1683_v29 = vand.u32 2147483647, %v1667_v58 }
 0x1e3   : > { %2223 = vlog2.f32 %v1544_v32  ;;  %v1688_v17 = vsub.f32 0.0, %v1680_v8  ;;  %v1666_v18 = vsub.f32 0.0, %v4056_v46  ;;  %v2210_v39 = vpop.eup %2209  ;;  %v1402_v20 = vsel %vm4027_vm7, %v4019_v42, %v1396_v19 }
 0x1e4   : > { %vm4075_vm8 = vcmp.lt.f32.partialorder %v1427_v0, 0.0004427343  ;;  %v1416_v36 = vadd.f32 1.0, %v1415_v26  ;;  %v1517_v13 = vsub.f32 0.0, %v1509_v21  ;;  %v2212_v41 = vpop.eup %2211  ;;  %v1426_v6 = vmul.f32 %v3960_v1, %v1425_v59 }
 0x1e5   : > { %vm4080_vm9 = vcmp.lt.f32.partialorder %v1418_v3, 0.0004427343  ;;  %v1535_v35 = vadd.f32 1.0, %v4063_v22  ;;  %v1696_v43 = vmul.f32 1.442695, %v1688_v17  ;;  %v4085_v7 = vpop.eup %2213  ;;  %v1432_v42 = vsub.f32 %v3848_v45, %v1384_v28  ;;  %v4096_v28 = vpop.xlane.xlu1 %1656 }
 0x1e6   : > { %v1435_v25 = vsub.f32 %v3865_v40, %v1411_v52  ;;  %v1548_v0 = vadd.f32 1.0, %v1547_v61  ;;  %2225 = vpow2.f32 %v1533_v44  ;;  %v1434_v48 = vsub.f32 %v3890_v49, %v1402_v20  ;;  %v4098_v49 = vpop.xlane.xlu0 %1653 }
 0x1e7   : > { %v1423_v16 = vmul.f32 0.6931472, %v2210_v39  ;;  %v1691_v26 = vsub.f32 0.0, %v1683_v29  ;;  %v1682_v1 = vand.u32 2147483647, %v1666_v18  ;;  %v1417_v32 = vmul.f32 %v3972_v53, %v1416_v36 }
 0x1e8   : > { %v1538_v19 = vmul.f32 -0.5, %v4063_v22  ;;  %v1531_v3 = vmul.f32 1.442695, %v1517_v13  ;;  %2227 = vpow2.f32 %v1696_v43  ;;  %v1414_v21 = vmul.f32 0.6931472, %v2212_v41 }
 0x1e9   : > { %v1550_v45 = vand.u32 2147483647, %v4035_v14  ;;  %2229 = vlog2.f32 %v1535_v35  ;;  %v1562_v40 = vadd.f32 1.0, %v4085_v7  ;;  %v4101_v59 = vadd.f32 %v1432_v42, %v3884_v55 }
 0x1ea   : > { %v4104_v8 = vadd.f32 %v1435_v25, %v3894_v10  ;;  %v4107_v53 = vmul.f32 %v4035_v14, %v1548_v0  ;;  %v4111_v52 = vmin.f32 %v1494_v54, 0.0  ;;  %v4116_v44 = vadd.f32 %v1434_v48, %v3930_v5  ;;  %v4149_v25 = vpop.xlane.xlu0 %1659 }
 0x1eb   : > { %v4113_v61 = vpop.eup %2215  ;;  %v1429_v17 = vsel %vm4075_vm8, %v1426_v6, %v1423_v16  ;;  %v1702_v55 = vmul.f32 1.442695, %v1691_v26  ;;  %v1690_v29 = vsub.f32 0.0, %v1682_v1  ;;  %v1539_v10 = vadd.f32 1.0, %v1538_v19 }
 0x1ec   : > { %v4120_v39 = vpop.eup %2217  ;;  %v1565_v14 = vmul.f32 -0.5, %v4085_v7  ;;  %2231 = vpow2.f32 %v1531_v3  ;;  %v1721_v57 = vadd.f32 1.0, %v4113_v61  ;;  %v1420_v54 = vsel %vm4080_vm9, %v1417_v32, %v1414_v21 }
 0x1ed   : > { %2233 = vlog2.f32 %v1562_v40  ;;  %v1669_v5 = vsub.f32 0.0, %v4096_v28  ;;  %v1668_v20 = vsub.f32 0.0, %v4098_v49  ;;  %v1437_v36 = vsub.f32 %v3907_v56, %v1429_v17  ;;  %v4147_v56 = vpop.xlane.xlu1 %1662 }
 0x1ee   : > { %v4128_v2 = vpop.eup %2219  ;;  %v1541_v13 = vand.u32 2147483647, %v4063_v22  ;;  %2235 = vlog2.f32 %v1721_v57  ;;  %v1700_v41 = vmul.f32 1.442695, %v1690_v29  ;;  %vm4134_vm10 = vcmp.lt.f32.partialorder %v1550_v45, 0.0004427343 }
 0x1ef   : > { %v4132_v6 = vpop.eup %2221  ;;  %v1553_v38 = vadd.f32 1.0, %v4120_v39  ;;  %v4141_v43 = vmin.f32 %v1493_v63, 0.0  ;;  %v4145_v42 = vmin.f32 %v1665_v33, 0.0  ;;  %2237 = vpow2.f32 %v1702_v55 }
 0x1f0   : > { %v2224_v0 = vpop.eup %2223  ;;  %v1436_v48 = vsub.f32 %v3925_v31, %v1420_v54  ;;  %v4153_v16 = vmul.f32 %v4063_v22, %v1539_v10  ;;  %v1566_v26 = vadd.f32 1.0, %v1565_v14  ;;  %v1568_v11 = vand.u32 2147483647, %v4085_v7 }
 0x1f1   : > { %v1580_v63 = vadd.f32 1.0, %v4128_v2  ;;  %2239 = vpow2.f32 %v1700_v41  ;;  %v1685_v62 = vand.u32 2147483647, %v1669_v5  ;;  %v1684_v33 = vand.u32 2147483647, %v1668_v20 }
 0x1f2   : > { %v4162_v1 = vadd.f32 %v1437_v36, %v3935_v9  ;;  %v1571_v31 = vadd.f32 1.0, %v4132_v6  ;;  %v1671_v22 = vsub.f32 0.0, %v4147_v56  ;;  %v4413_v32 = vsub.f32 0.0, %v4149_v25 }
 0x1f3   : > { %v4167_v19 = vpop.eup %2225  ;;  %v1546_v3 = vmul.f32 0.6931472, %v2224_v0  ;;  %2241 = vlog2.f32 %v1553_v38  ;;  %v1693_v21 = vsub.f32 0.0, %v1685_v62  ;;  %v1692_v45 = vsub.f32 0.0, %v1684_v33 }
 0x1f4   : > { %vm4169_vm11 = vcmp.lt.f32.partialorder %v1541_v13, 0.0004427343  ;;  %v1556_v17 = vmul.f32 -0.5, %v4120_v39  ;;  %v1724_v9 = vmul.f32 -0.5, %v4113_v61  ;;  %v1687_v55 = vand.u32 2147483647, %v1671_v22 }
 0x1f5   : > { %v1686_v29 = vand.u32 2147483647, %v4413_v32  ;;  %v4179_v10 = vpop.eup %2227  ;;  %v1559_v14 = vand.u32 2147483647, %v4120_v39  ;;  %2243 = vlog2.f32 %v1580_v63  ;;  %v1706_v57 = vmul.f32 1.442695, %v1693_v21 }
 0x1f6   : > { %v1704_v54 = vmul.f32 1.442695, %v1692_v45  ;;  %v2230_v36 = vpop.eup %2229  ;;  %2245 = vlog2.f32 %v1571_v31  ;;  %v1598_v13 = vadd.f32 1.0, %v4167_v19  ;;  %v1712_v41 = vadd.f32 1.0, %v4179_v10 }
 0x1f7   : > { %v1695_v38 = vsub.f32 0.0, %v1687_v55  ;;  %v4185_v0 = vadd.f32 %v1436_v48, %v3984_v60  ;;  %v1583_v62 = vmul.f32 -0.5, %v4128_v2  ;;  %2247 = vpow2.f32 %v1706_v57 }
 0x1f8   : > { %v1694_v33 = vsub.f32 0.0, %v1686_v29  ;;  %v1552_v63 = vsel %vm4134_vm10, %v4107_v53, %v1546_v3  ;;  %v4192_v21 = vmul.f32 %v4085_v7, %v1566_v26  ;;  %v1725_v31 = vadd.f32 1.0, %v1724_v9 }
 0x1f9   : > { %2249 = vlog2.f32 %v1712_v41  ;;  %v4194_v45 = vpop.eup %2231  ;;  %v1537_v32 = vmul.f32 0.6931472, %v2230_v36  ;;  %v1727_v55 = vand.u32 2147483647, %v4113_v61  ;;  %v1710_v60 = vmul.f32 1.442695, %v1695_v38 }
 0x1fa   : > { %2251 = vpow2.f32 %v1704_v54  ;;  %v2234_v48 = vpop.eup %2233  ;;  %vm4197_vm12 = vcmp.lt.f32.partialorder %v1568_v11, 0.0004427343  ;;  %v1557_v29 = vadd.f32 1.0, %v1556_v17  ;;  %v4203_v7 = vmin.f32 %v1664_v23, 0.0 }
 0x1fb   : > { %2253 = vlog2.f32 %v1598_v13  ;;  %v1708_v53 = vmul.f32 1.442695, %v1694_v33  ;;  %v2236_v35 = vpop.eup %2235  ;;  %v1608_v26 = vsub.f32 %v3952_v50, %v1552_v63  ;;  %v1584_v3 = vadd.f32 1.0, %v1583_v62 }
 0x1fc   : > { %v1586_v9 = vand.u32 2147483647, %v4128_v2  ;;  %2255 = vpow2.f32 %v1710_v60  ;;  %v4207_v54 = vpop.eup %2237  ;;  %v1589_v11 = vadd.f32 1.0, %v4194_v45  ;;  %v1723_v36 = vmul.f32 0.6931472, %v2236_v35 }
 0x1fd   : > { %v1726_v17 = vmul.f32 %v4113_v61, %v1725_v31  ;;  %2257 = vpow2.f32 %v1708_v53  ;;  %v1543_v51 = vsel %vm4169_vm11, %v4153_v16, %v1537_v32  ;;  %v1574_v23 = vmul.f32 -0.5, %v4132_v6 }
 0x1fe   : > { %vm1728_vm13 = vcmp.lt.f32.partialorder %v1727_v55, 0.0004427343  ;;  %v1739_v50 = vadd.f32 1.0, %v4207_v54  ;;  %v4216_v13 = vpop.eup %2239  ;;  %v4219_v41 = vmul.f32 %v4120_v39, %v1557_v29  ;;  %vm4221_vm14 = vcmp.lt.f32.partialorder %v1559_v14, 0.0004427343 }
 0x1ff   : > { %v1729_v61 = vsel %vm1728_vm13, %v1726_v17, %v1723_v36  ;;  %v1715_v62 = vmul.f32 -0.5, %v4179_v10  ;;  %v4228_v16 = vmin.f32 %v1667_v58, 0.0  ;;  %v1616_v32 = vadd.f32 %v1608_v26, %v4000_v37 }
 0x200   : > { %v1564_v40 = vmul.f32 0.6931472, %v2234_v48  ;;  %v1785_v33 = vsub.f32 %v4145_v42, %v1729_v61  ;;  %2259 = vlog2.f32 %v1739_v50  ;;  %v2242_v63 = vpop.eup %2241  ;;  %v1607_v39 = vsub.f32 %v3957_v30, %v1543_v51 }
 0x201   : > { %v1601_v14 = vmul.f32 -0.5, %v4167_v19  ;;  %2261 = vlog2.f32 %v1589_v11  ;;  %v1730_v31 = vadd.f32 1.0, %v4216_v13  ;;  %v4236_v55 = vmul.f32 %v4128_v2, %v1584_v3 }
 0x202   : > { %vm4238_vm15 = vcmp.lt.f32.partialorder %v1586_v9, 0.0004427343  ;;  %v1575_v37 = vadd.f32 1.0, %v1574_v23  ;;  %v1592_v58 = vmul.f32 -0.5, %v4194_v45  ;;  %v1793_v42 = vadd.f32 %v1785_v33, %v1616_v32  ;;  %v2244_v60 = vpop.eup %2243 }
 0x203   : > { %v1577_v48 = vand.u32 2147483647, %v4132_v6  ;;  %v1716_v30 = vadd.f32 1.0, %v1715_v62  ;;  %v4246_v29 = vmin.f32 %v1666_v18, 0.0  ;;  %2263 = vlog2.f32 %v1730_v31  ;;  %v2246_v2 = vpop.eup %2245 }
 0x204   : > { %v1570_v53 = vsel %vm4197_vm12, %v4192_v21, %v1564_v40  ;;  %v1555_v35 = vmul.f32 0.6931472, %v2242_v63  ;;  %v1801_v26 = vsub.f32 0.0, %v1793_v42  ;;  %v1718_v3 = vand.u32 2147483647, %v4179_v10  ;;  %v4252_v9 = vpop.eup %2247 }
 0x205   : > { %v1615_v11 = vadd.f32 %v1607_v39, %v4044_v47  ;;  %v1602_v36 = vadd.f32 1.0, %v1601_v14  ;;  %v1604_v46 = vand.u32 2147483647, %v4167_v19  ;;  %v1742_v18 = vmul.f32 -0.5, %v4207_v54 }
 0x206   : > { %v2250_v17 = vpop.eup %2249  ;;  %v4258_v51 = vmul.f32 %v4132_v6, %v1575_v37  ;;  %v1593_v23 = vadd.f32 1.0, %v1592_v58  ;;  %v1595_v21 = vand.u32 2147483647, %v4194_v45  ;;  %1809 = vst [vmem:[%s2478_s20 + $0x8] sm:$0xff] %v1801_v26  ;;  %v1757_v57 = vadd.f32 1.0, %v4252_v9 }
 0x207   : > { %v4263_v50 = vpop.eup %2251  ;;  %v1610_v61 = vsub.f32 %v4009_v24, %v1570_v53  ;;  %v1582_v47 = vmul.f32 0.6931472, %v2244_v60  ;;  %vm4266_vm0 = vcmp.lt.f32.partialorder %v1577_v48, 0.0004427343  ;;  %v1714_v32 = vmul.f32 0.6931472, %v2250_v17 }
 0x208   : > { %v1717_v40 = vmul.f32 %v4179_v10, %v1716_v30  ;;  %v2254_v6 = vpop.eup %2253  ;;  %v1561_v33 = vsel %vm4221_vm14, %v4219_v41, %v1555_v35  ;;  %vm1719_vm1 = vcmp.lt.f32.partialorder %v1718_v3, 0.0004427343  ;;  %2265 = vlog2.f32 %v1757_v57 }
 0x209   : > { %v1748_v63 = vadd.f32 1.0, %v4263_v50  ;;  %v4275_v39 = vpop.eup %2255  ;;  %v1603_v24 = vmul.f32 %v4167_v19, %v1602_v36  ;;  %vm4278_vm2 = vcmp.lt.f32.partialorder %v1604_v46, 0.0004427343  ;;  %v1743_v37 = vadd.f32 1.0, %v1742_v18 }
 0x20a   : > { %v1720_v31 = vsel %vm1719_vm1, %v1717_v40, %v1714_v32  ;;  %v1733_v10 = vmul.f32 -0.5, %v4216_v13  ;;  %v4283_v58 = vpop.eup %2257  ;;  %v4286_v41 = vmul.f32 %v4194_v45, %v1593_v23  ;;  %v1775_v42 = vadd.f32 1.0, %v4275_v39 }
 0x20b   : > { %v1784_v38 = vsub.f32 %v4203_v7, %v1720_v31  ;;  %2267 = vlog2.f32 %v1748_v63  ;;  %v1618_v19 = vadd.f32 %v1610_v61, %v4051_v34  ;;  %v1609_v60 = vsub.f32 %v4021_v27, %v1561_v33 }
 0x20c   : > { %v1588_v48 = vsel %vm4238_vm15, %v4236_v55, %v1582_v47  ;;  %v1745_v30 = vand.u32 2147483647, %v4207_v54  ;;  %v1573_v53 = vmul.f32 0.6931472, %v2246_v2  ;;  %2269 = vlog2.f32 %v1775_v42 }
 0x20d   : > { %v1792_v35 = vadd.f32 %v1784_v38, %v1615_v11  ;;  %v1766_v45 = vadd.f32 1.0, %v4283_v58  ;;  %v2260_v26 = vpop.eup %2259  ;;  %v1600_v7 = vmul.f32 0.6931472, %v2254_v6  ;;  %v1744_v3 = vmul.f32 %v4207_v54, %v1743_v37 }
 0x20e   : > { %v1734_v36 = vadd.f32 1.0, %v1733_v10  ;;  %v1736_v34 = vand.u32 2147483647, %v4216_v13  ;;  %v2262_v27 = vpop.eup %2261  ;;  %vm4299_vm3 = vcmp.lt.f32.partialorder %v1595_v21, 0.0004427343  ;;  %v1760_v2 = vmul.f32 -0.5, %v4252_v9 }
 0x20f   : > { %v1800_v55 = vsub.f32 0.0, %v1792_v35  ;;  %v1741_v12 = vmul.f32 0.6931472, %v2260_v26  ;;  %2271 = vlog2.f32 %v1766_v45  ;;  %vm1746_vm4 = vcmp.lt.f32.partialorder %v1745_v30, 0.0004427343 }
 0x210   : > { %v1677_v11 = vmin.f32 %v1669_v5, 0.0  ;;  %v1676_v54 = vmin.f32 %v1668_v20, 0.0  ;;  %v1751_v18 = vmul.f32 -0.5, %v4263_v50  ;;  %v2264_v17 = vpop.eup %2263  ;;  %v1617_v23 = vadd.f32 %v1609_v60, %v4101_v59 }
 0x211   : > { %v1612_v21 = vsub.f32 %v4031_v4, %v1588_v48  ;;  %v1579_v57 = vsel %vm4266_vm0, %v4258_v51, %v1573_v53  ;;  %1808 = vst [vmem:[%s2478_s20] sm:$0xff] %v1800_v55  ;;  %v1747_v61 = vsel %vm1746_vm4, %v1744_v3, %v1741_v12  ;;  %v1591_v47 = vmul.f32 0.6931472, %v2262_v27 }
 0x212   : > { %v1787_v28 = vsub.f32 %v4228_v16, %v1747_v61  ;;  %v1732_v5 = vmul.f32 0.6931472, %v2264_v17  ;;  %v1735_v49 = vmul.f32 %v4216_v13, %v1734_v36  ;;  %v1606_v20 = vsel %vm4278_vm2, %v1603_v24, %v1600_v7 }
 0x213   : > { %vm1737_vm5 = vcmp.lt.f32.partialorder %v1736_v34, 0.0004427343  ;;  %v1761_v32 = vadd.f32 1.0, %v1760_v2  ;;  %v1778_v59 = vmul.f32 -0.5, %v4275_v39  ;;  %v1763_v62 = vand.u32 2147483647, %v4252_v9 }
 0x214   : > { %v1795_v4 = vadd.f32 %v1787_v28, %v1618_v19  ;;  %v1738_v40 = vsel %vm1737_vm5, %v1735_v49, %v1732_v5  ;;  %v1752_v51 = vadd.f32 1.0, %v1751_v18  ;;  %v1679_v16 = vmin.f32 %v1671_v22, 0.0 }
 0x215   : > { %v1786_v6 = vsub.f32 %v4246_v29, %v1738_v40  ;;  %v4520_v13 = vsub.f32 0.0, %v4149_v25  ;;  %v1769_v63 = vmul.f32 -0.5, %v4283_v58  ;;  %v2266_v24 = vpop.eup %2265  ;;  %v1611_v14 = vsub.f32 %v4033_v15, %v1579_v57 }
 0x216   : > { %v1614_v31 = vsub.f32 %v4111_v52, %v1606_v20  ;;  %v1803_v37 = vsub.f32 0.0, %v1795_v4  ;;  %v1754_v10 = vand.u32 2147483647, %v4263_v50  ;;  %v1759_v42 = vmul.f32 0.6931472, %v2266_v24 }
 0x217   : > { %v1678_v33 = vmin.f32 %v4520_v13, 0.0  ;;  %v1794_v38 = vadd.f32 %v1786_v6, %v1617_v23  ;;  %v1762_v29 = vmul.f32 %v4252_v9, %v1761_v32  ;;  %v1779_v19 = vadd.f32 1.0, %v1778_v59 }
 0x218   : > { %v2268_v56 = vpop.eup %2267  ;;  %v1597_v25 = vsel %vm4299_vm3, %v4286_v41, %v1591_v47  ;;  %1811 = vst [vmem:[%s2478_s20 + $0x18] sm:$0xff] %v1803_v37  ;;  %vm1764_vm6 = vcmp.lt.f32.partialorder %v1763_v62, 0.0004427343  ;;  %v1753_v15 = vmul.f32 %v4263_v50, %v1752_v51  ;;  %v1781_v52 = vand.u32 2147483647, %v4275_v39 }
 0x219   : > { %v1802_v22 = vsub.f32 0.0, %v1794_v38  ;;  %v1765_v60 = vsel %vm1764_vm6, %v1762_v29, %v1759_v42  ;;  %v1750_v48 = vmul.f32 0.6931472, %v2268_v56  ;;  %v1770_v30 = vadd.f32 1.0, %v1769_v63  ;;  %v2270_v53 = vpop.eup %2269 }
 0x21a   : > { %v1620_v9 = vadd.f32 %v1612_v21, %v4104_v8  ;;  %v1789_v35 = vsub.f32 %v1677_v11, %v1765_v60  ;;  %vm1755_vm7 = vcmp.lt.f32.partialorder %v1754_v10, 0.0004427343  ;;  %v1772_v45 = vand.u32 2147483647, %v4283_v58 }
 0x21b   : > { %v1619_v26 = vadd.f32 %v1611_v14, %v4116_v44  ;;  %1810 = vst [vmem:[%s2478_s20 + $0x10] sm:$0xff] %v1802_v22  ;;  %v1756_v41 = vsel %vm1755_vm7, %v1753_v15, %v1750_v48  ;;  %v1777_v7 = vmul.f32 0.6931472, %v2270_v53  ;;  %v1780_v50 = vmul.f32 %v4275_v39, %v1779_v19 }
 0x21c   : > { %v2272_v3 = vpop.eup %2271  ;;  %v1613_v36 = vsub.f32 %v4141_v43, %v1597_v25  ;;  %v1797_v34 = vadd.f32 %v1789_v35, %v1620_v9  ;;  %v1788_v27 = vsub.f32 %v1676_v54, %v1756_v41  ;;  %vm1782_vm8 = vcmp.lt.f32.partialorder %v1781_v52, 0.0004427343 }
 0x21d   : > { %v1622_v8 = vadd.f32 %v1614_v31, %v4162_v1  ;;  %v1783_v46 = vsel %vm1782_vm8, %v1780_v50, %v1777_v7  ;;  %v1768_v55 = vmul.f32 0.6931472, %v2272_v3  ;;  %v1771_v44 = vmul.f32 %v4283_v58, %v1770_v30 }
 0x21e   : > { %v1805_v12 = vsub.f32 0.0, %v1797_v34  ;;  %v1796_v2 = vadd.f32 %v1788_v27, %v1619_v26  ;;  %v1791_v39 = vsub.f32 %v1679_v16, %v1783_v46  ;;  %vm1773_vm9 = vcmp.lt.f32.partialorder %v1772_v45, 0.0004427343 }
 0x21f   : > { %v1774_v11 = vsel %vm1773_vm9, %v1771_v44, %v1768_v55  ;;  %v1621_v43 = vadd.f32 %v1613_v36, %v4185_v0 }
 0x220   : > { %1813 = vst [vmem:[%s2478_s20 + $0x28] sm:$0xff] %v1805_v12  ;;  %v1804_v54 = vsub.f32 0.0, %v1796_v2  ;;  %v1799_v18 = vadd.f32 %v1791_v39, %v1622_v8  ;;  %v1790_v1 = vsub.f32 %v1678_v33, %v1774_v11 }
 0x222   : > { %1812 = vst [vmem:[%s2478_s20 + $0x20] sm:$0xff] %v1804_v54  ;;  %v1807_v17 = vsub.f32 0.0, %v1799_v18  ;;  %v1798_v58 = vadd.f32 %v1790_v1, %v1621_v43 }
 0x224   : > { %1815 = vst [vmem:[%s2478_s20 + $0x38] sm:$0xff] %v1807_v17  ;;  %v1806_v0 = vsub.f32 0.0, %v1798_v58 }
 0x226   : > { %1814 = vst [vmem:[%s2478_s20 + $0x30] sm:$0xff] %v1806_v0 }
 0x227   : > { %2322 = shalt.err (!%p2319_p4)
}
 0x228   : > { %s2323_s20 = scalar_lea.hbm %s4353_s13, 1024  ;;  %s2327_s27 = scalar_lea.hbm %s4404_s5, 4096 }
 0x229   : > { %p2324_p5 = scmp.ne.s32.totalorder %s4353_s13, %s2323_s20  ;;  %p2328_p10 = scmp.lt.s32.totalorder %s4353_s13, %s4404_s5 }
 0x22a   : > { %p2329_p11 = scmp.lt.s32.totalorder %s2327_s27, %s2323_s20 }
 0x22b   : > { %p2325_p8 = pnand %p2324_p5, %p2464_p6 }
 0x22c   : > { %p2330_p12 = por %p2329_p11, %p2328_p10 }
 0x22d   : > { %p2326_p9 = pneg %p2325_p8 }
 0x22f   : > { %p2331_p13 = pnand %p2330_p12, %p2326_p9 }
 0x231   : > { %2334 = shalt.err (!%p2331_p13)
}
 0x232   : > { %s2385_s23 = smov 128   ;;  %s2386_s10 = smov 8  }
 0x233   : > { %1933 = dma.vmem_to_hbm [thread:$0]  (%p2464_p6), %s4355_s16, 1024, %s4353_s13, %s4361_s2, %s2385_s23, %s2385_s23, %s2386_s10  }
 0x234 PF: > { %s4522_s24 = sld [smem:[#allocation12_spill]]  ;;  %p1939_p0 = scmp.ge.s32.totalorder %s2375_s8, 2 }
 0x236   : > { %p1936_p1 = pnand %p1939_p0, %p2468_p7 }
 0x238   : > { %p1937_p2 = pneg %p1936_p1 }
 0x23a   : > { %s1845_s14 = sand.u32 1, %s4522_s24  }
 0x23b   : > { %s1846_s18 = scalar_lea.sflag [#allocation9], %s1845_s14 }
 0x23c   : > { %2358 = dma.done.wait (%p1937_p2), %s1846_s18, 1024  }
 0x23d   : > { %2360 = vsyncadd (%p1937_p2), %s1846_s18, 4294966272  ;;  %s4524_s8 = sld [smem:[#allocation14_spill]]  ;;  %s4527_s6 = smov %s2367_s7 }
 0x23e   : > { %s4525_s17 = sld [smem:[#allocation13_spill]] }
 0x23f   : > { %s4526_s2 = sld [smem:[#allocation15_spill]] }
 0x243   : > { %p29_p3 = scmp.ge.s32.totalorder %s4524_s8, 6  }
 0x244   : > { %s4528_s7 = smov %s4525_s17 }
 0x245   :  { %31 = sbr.rel (!%p29_p3) target bundleno = 38 (0x26), region = 106 }
 0x24a   :  { %1851 = vsyncpa [#allocation9], 1 }
 0x24b   :  { %1853 = vsyncpa [#allocation9 + $0x1], 1 }

</bundles_post_ra>
